<compile_context>
chip_gen: v6e
topology: v6e:2x2x1
jax: 0.10.0
libtpu: 0.0.40
codegen_flags: <defaults>
</compile_context>

<pallas_src>
import functools

import jax
import jax.numpy as jnp
from jax.experimental import pallas as pl
from jax.experimental.pallas import tpu as pltpu

_BN_EPS = 1e-5
_LANES = 128


def _round_up(x, m):
    return (x + m - 1) // m * m


# ----------------------------------------------------------------------------
# The fused Pallas kernel: whole network, one invocation.
# ----------------------------------------------------------------------------
def _fused_kernel(p1_ref, w1_ref, w2_ref, w3_ref, pb_ref, out_ref,
                  xpad2_ref, xpad3_ref, *,
                  n, m1, m1p, ph1, pw1, hp2, wp2, l2, ph2, pw2,
                  hp3, wp3, l3, ph3, pw3, m3, m3p, n_classes):
    f32 = jnp.float32
    bf16 = jnp.bfloat16

    def bn_stats(x, count, mask=None):
        # Training-mode BatchNorm statistics (biased variance).
        inv = 1.0 / float(count)
        xm = x if mask is None else x * mask
        mean = jnp.sum(xm, axis=0, keepdims=True) * inv
        xc = (x - mean) if mask is None else (x - mean) * mask
        var = jnp.sum(xc * xc, axis=0, keepdims=True) * inv
        return mean, var

    def bn_apply(x, mean, var, grow):
        # pb rows: grow = gamma, grow + 1 = beta.
        return ((x - mean) * jax.lax.rsqrt(var + _BN_EPS)
                * pb_ref[grow:grow + 1, :] + pb_ref[grow + 1:grow + 2, :])

    def pool_bias_relu(y, wpad, l, brow):
        # 2x2 / stride-2 max-pool candidates: elementwise max of 4 contiguous
        # shifted slices (offsets 0, 1, wpad, wpad+1) of the flat conv output,
        # then conv bias + ReLU (exact: bias is per-channel, ReLU/max commute).
        lz = l - wpad - 1
        zmax = jnp.maximum(
            jnp.maximum(y[0:lz, :], y[1:lz + 1, :]),
            jnp.maximum(y[wpad:wpad + lz, :], y[wpad + 1:wpad + 1 + lz, :]))
        return jnp.maximum(zmax + pb_ref[brow:brow + 1, :], 0.0)

    # ---- block 1: one (4*m1p, 9) GEMM, pool-group max on aligned slices ----
    pooled_all = jnp.dot(p1_ref[...], w1_ref[...], preferred_element_type=f32)
    pooled = pooled_all[0:m1p, :]
    for g in range(1, 4):
        pooled = jnp.maximum(pooled, pooled_all[g * m1p:(g + 1) * m1p, :])
    x1 = jnp.maximum(pooled + pb_ref[0:1, :], 0.0)
    rmask = (jax.lax.broadcasted_iota(jnp.int32, (m1p, 1), 0) < m1).astype(f32)
    mean1, var1 = bn_stats(x1, m1, rmask)
    act1 = bn_apply(x1, mean1, var1, 1)

    # ---- blocks 2 & 3: scatter -> wide-K conv GEMM -> pool -> BN -----------
    def conv_pool_bn(act_prev, xpad_ref, w_ref, ph_in, pw_in, hp, wp, l,
                     ph_out, pw_out, brow):
        # Scatter BN'd activations into the zero-padded flat (n, hp, wp) grid
        # (static contiguous row-strip copies; border rows stay exactly 0).
        xpad_ref[...] = jnp.zeros_like(xpad_ref)
        for b in range(n):
            for i in range(ph_in):
                src = b * ph_in * pw_in + i * pw_in
                dst = b * hp * wp + (i + 1) * wp + 1
                xpad_ref[dst:dst + pw_in, :] = act_prev[src:src + pw_in, :]
        # Wide-K LHS: one hoisted bf16 cast of the padded slab, 9 shifted row
        # slices concatenated along lanes -> a single K = 9*128 GEMM.
        xp = xpad_ref[...].astype(bf16)
        lhs = jnp.concatenate(
            [xp[kh * wp + kw:kh * wp + kw + l, :]
             for kh in range(3) for kw in range(3)], axis=-1)
        y = jnp.dot(lhs, w_ref[...], preferred_element_type=f32)
        z = pool_bias_relu(y, wp, l, brow)
        # Gather the valid pooled rows into the compact layout (exact, f32);
        # BN stats over these rows need no masking.
        pooled = jnp.concatenate(
            [z[b * hp * wp + 2 * pi * wp + 2 * pj:
               b * hp * wp + 2 * pi * wp + 2 * pj + 1, :]
             for b in range(n) for pi in range(ph_out) for pj in range(pw_out)],
            axis=0)
        mean, var = bn_stats(pooled, n * ph_out * pw_out)
        return bn_apply(pooled, mean, var, brow + 1)

    act2 = conv_pool_bn(act1, xpad2_ref, w2_ref, ph1, pw1, hp2, wp2, l2,
                        ph2, pw2, 3)
    act3 = conv_pool_bn(act2, xpad3_ref, w3_ref, ph2, pw2, hp3, wp3, l3,
                        ph3, pw3, 6)

    # ---- softmax over the real class lanes (padded lanes masked out) -------
    lane = jax.lax.broadcasted_iota(jnp.int32, act3.shape, 1)
    logits = jnp.where(lane < n_classes, act3, -1e30)
    logits = logits - jnp.max(logits, axis=-1, keepdims=True)
    e = jnp.exp(logits)
    denom = jnp.sum(e, axis=-1, keepdims=True)
    probs = e * pl.reciprocal(denom, approx=True)
    if m3p > m3:
        probs = jnp.concatenate(
            [probs, jnp.zeros((m3p - m3, probs.shape[1]), f32)], axis=0)
    out_ref[...] = probs


# ----------------------------------------------------------------------------
# Wrapper-side layout preparation (tiny, one-time, lane/sublane aligned).
# ----------------------------------------------------------------------------
def _pool_grouped_patches(x_nhwc, stride, pad, k=3):
    """Block-1 im2col patches grouped by the 4 positions of each 2x2 pool
    window, stacked to (4*M_pad, k*k*Cin) bf16 (rows padded to mult of 8)."""
    n, h, w, c = x_nhwc.shape
    xp = jnp.pad(x_nhwc, ((0, 0), (pad, pad), (pad, pad), (0, 0)))
    oh = (h + 2 * pad - k) // stride + 1
    ow = (w + 2 * pad - k) // stride + 1
    taps = []
    for kh in range(k):
        for kw in range(k):
            taps.append(xp[:, kh:kh + stride * (oh - 1) + 1:stride,
                              kw:kw + stride * (ow - 1) + 1:stride, :])
    patches = jnp.concatenate(taps, axis=-1)             # (n, oh, ow, k*k*c)
    ph, pw = oh // 2, ow // 2                             # floor-mode MaxPool2d
    groups = []
    for dh in range(2):
        for dw in range(2):
            g = patches[:, dh:dh + 2 * ph:2, dw:dw + 2 * pw:2, :]
            groups.append(g.reshape(n * ph * pw, k * k * c))
    m = n * ph * pw
    mp = _round_up(m, 8)
    grouped = jnp.stack(groups, axis=0)                   # (4, m, k*k*c)
    grouped = jnp.pad(grouped, ((0, 0), (0, mp - m), (0, 0)))
    grouped = grouped.reshape(4 * mp, k * k * c)
    return grouped.astype(jnp.bfloat16), (ph, pw, m, mp)


def _pack_w1(w_hwio):
    kh, kw, cin, cout = w_hwio.shape
    w2d = w_hwio.reshape(kh * kw * cin, cout)
    return jnp.pad(w2d, ((0, 0), (0, _LANES - cout))).astype(jnp.bfloat16)


def _pack_conv_w_wide(w_hwio):
    """Stack HWIO weights along K: row t*128 + cin -> (9*128, 128) bf16."""
    kh, kw, cin, cout = w_hwio.shape
    w = w_hwio.reshape(kh * kw, cin, cout)
    w = jnp.pad(w, ((0, 0), (0, _LANES - cin), (0, _LANES - cout)))
    return w.reshape(kh * kw * _LANES, _LANES).astype(jnp.bfloat16)


def _pack_params(params):
    """Single (9, 128) f32 slab: [bias, gamma, beta] x 3 blocks, lane-padded."""
    def lane_pad(v):
        return jnp.pad(v.astype(jnp.float32), (0, _LANES - v.shape[0]))
    rows = []
    for (_, b, gamma, beta) in params:
        rows += [lane_pad(b), lane_pad(gamma), lane_pad(beta)]
    return jnp.stack(rows, axis=0)


# ----------------------------------------------------------------------------
# Forward pass.
# ----------------------------------------------------------------------------
def mnist_net_forward(x_nchw, params):
    """Forward pass of MnistNet. x_nchw: (N, 1, 28, 28) f32. Returns (N, 10)."""
    x = jnp.transpose(x_nchw, (0, 2, 3, 1)).astype(jnp.float32)  # NCHW -> NHWC
    n = x.shape[0]
    (w1, _, _, _), (w2, _, _, _), (w3, _, _, _) = params
    n_classes = w3.shape[-1]

    # Block-1 im2col patches (stride 2, pad 2), grouped by 2x2 pool offset.
    p1, (ph1, pw1, m1, m1p) = _pool_grouped_patches(x, stride=2, pad=2)

    # Static spatial bookkeeping for in-kernel blocks 2 / 3 (stride-1, pad-1
    # convs keep spatial size; pooling floors /2).
    hp2, wp2 = ph1 + 2, pw1 + 2
    ph2, pw2 = (hp2 - 2) // 2, (wp2 - 2) // 2
    hp3, wp3 = ph2 + 2, pw2 + 2
    ph3, pw3 = (hp3 - 2) // 2, (wp3 - 2) // 2
    l2, l3 = n * hp2 * wp2, n * hp3 * wp3
    r2 = _round_up(l2 + 2 * wp2 + 2, 8)    # flat-grid rows + tap-shift slack
    r3 = _round_up(l3 + 2 * wp3 + 2, 8)
    m3 = n * ph3 * pw3
    m3p = _round_up(m3, 8)

    kernel = functools.partial(
        _fused_kernel, n=n, m1=m1, m1p=m1p, ph1=ph1, pw1=pw1,
        hp2=hp2, wp2=wp2, l2=l2, ph2=ph2, pw2=pw2,
        hp3=hp3, wp3=wp3, l3=l3, ph3=ph3, pw3=pw3,
        m3=m3, m3p=m3p, n_classes=n_classes)

    flops = 2 * _LANES * (4 * m1p * 9 + l2 * 9 * _LANES + l3 * 9 * _LANES)
    bytes_accessed = (p1.size * 2 + 9 * _LANES * 2
                      + 2 * 9 * _LANES * _LANES * 2
                      + 9 * _LANES * 4 + m3p * _LANES * 4)

    vmem = pl.BlockSpec(memory_space=pltpu.MemorySpace.VMEM)
    out = pl.pallas_call(
        kernel,
        out_shape=jax.ShapeDtypeStruct((m3p, _LANES), jnp.float32),
        in_specs=[vmem] * 5,
        out_specs=vmem,
        scratch_shapes=[pltpu.VMEM((r2, _LANES), jnp.float32),
                        pltpu.VMEM((r3, _LANES), jnp.float32)],
        compiler_params=pltpu.CompilerParams(
            vmem_limit_bytes=32 * 1024 * 1024),
        cost_estimate=pl.CostEstimate(flops=flops,
                                      transcendentals=m3p * _LANES,
                                      bytes_accessed=bytes_accessed),
    )(p1, _pack_w1(w1), _pack_conv_w_wide(w2), _pack_conv_w_wide(w3),
      _pack_params(params))
    return out[:m3, :n_classes]


# ----------------------------------------------------------------------------
# Pure-JAX reference (lax.conv / reduce_window) for correctness checking.
# ----------------------------------------------------------------------------
def reference_forward(x_nchw, params):
    y = jnp.transpose(x_nchw, (0, 2, 3, 1)).astype(jnp.float32)
    strides = (2, 1, 1)
    pads = (2, 1, 1)
    for idx, (w, b, gamma, beta) in enumerate(params):
        y = jax.lax.conv_general_dilated(
            y, w, window_strides=(strides[idx],) * 2,
            padding=[(pads[idx],) * 2] * 2,
            dimension_numbers=("NHWC", "HWIO", "NHWC"))
        y = jnp.maximum(y + b, 0.0)
        y = jax.lax.reduce_window(y, -jnp.inf, jax.lax.max,
                                  (1, 2, 2, 1), (1, 2, 2, 1), "VALID")
        mean = jnp.mean(y, axis=(0, 1, 2), keepdims=True)
        var = jnp.mean(jnp.square(y - mean), axis=(0, 1, 2), keepdims=True)
        y = (y - mean) * jax.lax.rsqrt(var + _BN_EPS) * gamma + beta
    y = y.reshape(-1, 10)
    return jax.nn.softmax(y, axis=-1)


# ----------------------------------------------------------------------------
# Deterministic parameter init (shapes from MnistNet.__init__).
# ----------------------------------------------------------------------------
def init_params(key):
    shapes = [(3, 3, 1, 32), (3, 3, 32, 64), (3, 3, 64, 10)]  # HWIO
    params = []
    for s in shapes:
        key, k1, k2 = jax.random.split(key, 3)
        fan_in = s[0] * s[1] * s[2]
        w = jax.random.normal(k1, s, jnp.float32) * (2.0 / fan_in) ** 0.5
        b = jax.random.normal(k2, (s[3],), jnp.float32) * 0.1
        gamma = jnp.ones((s[3],), jnp.float32)   # BatchNorm2d weight init
        beta = jnp.zeros((s[3],), jnp.float32)   # BatchNorm2d bias init
        params.append((w, b, gamma, beta))
    return params


if __name__ == "__main__":
    key = jax.random.PRNGKey(0)
    kx, kp = jax.random.split(key)
    # Small MNIST-like batch, NCHW as in PyTorch: (N=4, C=1, H=28, W=28).
    x = jax.random.normal(kx, (4, 1, 28, 28), jnp.float32)
    params = init_params(kp)

    fwd = jax.jit(mnist_net_forward)
    out = jax.block_until_ready(fwd(x, params))
    ref = jax.block_until_ready(reference_forward(x, params))

    assert out.shape == (4, 10), out.shape
    assert jnp.allclose(jnp.sum(out, axis=-1), 1.0, atol=1e-2)
    assert jnp.allclose(out, ref, atol=2e-2, rtol=2e-2), (out, ref)
    print("KERNEL_OK")
</pallas_src>

<mosaic_0001>
module attributes {stable_mosaic.version = 11 : i64} {
  func.func @_fused_kernel(%arg0: memref<800x9xbf16, #tpu.memory_space<vmem>>, %arg1: memref<9x128xbf16, #tpu.memory_space<vmem>>, %arg2: memref<1152x128xbf16, #tpu.memory_space<vmem>>, %arg3: memref<1152x128xbf16, #tpu.memory_space<vmem>>, %arg4: memref<9x128xf32, #tpu.memory_space<vmem>>, %arg5: memref<8x128xf32, #tpu.memory_space<vmem>>, %arg6: memref<344x128xf32, #tpu.memory_space<vmem>>, %arg7: memref<112x128xf32, #tpu.memory_space<vmem>>) attributes {dimension_semantics = [], scalar_prefetch = 0 : i64, scratch_operands = 2 : i64, tpu.core_type = #tpu.core_type<tc>} {
    %c0 = arith.constant 0 : index
    %c0_0 = arith.constant 0 : index
    %0 = vector.load %arg0[%c0, %c0_0] : memref<800x9xbf16, #tpu.memory_space<vmem>>, vector<800x9xbf16>
    %c0_1 = arith.constant 0 : index
    %c0_2 = arith.constant 0 : index
    %1 = vector.load %arg1[%c0_1, %c0_2] : memref<9x128xbf16, #tpu.memory_space<vmem>>, vector<9x128xbf16>
    %cst = arith.constant dense<0.000000e+00> : vector<800x128xf32>
    %2 = tpu.matmul %0, %1, %cst {dimension_numbers = #tpu.dot_dimension_numbers<[1], [0], [0], [1], [0, 0, 1, 1], [], []>} : vector<800x9xbf16>, vector<9x128xbf16>, vector<800x128xf32> -> vector<800x128xf32>
    %3 = vector.extract_strided_slice %2 {offsets = [0, 0], sizes = [200, 128], strides = [1, 1]} : vector<800x128xf32> to vector<200x128xf32>
    %4 = vector.extract_strided_slice %2 {offsets = [200, 0], sizes = [200, 128], strides = [1, 1]} : vector<800x128xf32> to vector<200x128xf32>
    %5 = arith.maximumf %3, %4 : vector<200x128xf32>
    %6 = vector.extract_strided_slice %2 {offsets = [400, 0], sizes = [200, 128], strides = [1, 1]} : vector<800x128xf32> to vector<200x128xf32>
    %7 = arith.maximumf %5, %6 : vector<200x128xf32>
    %8 = vector.extract_strided_slice %2 {offsets = [600, 0], sizes = [200, 128], strides = [1, 1]} : vector<800x128xf32> to vector<200x128xf32>
    %9 = arith.maximumf %7, %8 : vector<200x128xf32>
    %c0_3 = arith.constant 0 : index
    %c0_4 = arith.constant 0 : index
    %10 = vector.load %arg4[%c0_3, %c0_4] : memref<9x128xf32, #tpu.memory_space<vmem>>, vector<1x128xf32>
    %11 = vector.broadcast %10 : vector<1x128xf32> to vector<200x128xf32>
    %12 = arith.addf %9, %11 : vector<200x128xf32>
    %cst_5 = arith.constant 0.000000e+00 : f32
    %13 = vector.broadcast %cst_5 : f32 to vector<200x128xf32>
    %14 = arith.maximumf %12, %13 : vector<200x128xf32>
    %15 = tpu.iota {dimensions = array<i32: 0>} : vector<200x1xi32>
    %c196_i32 = arith.constant 196 : i32
    %16 = vector.broadcast %c196_i32 : i32 to vector<200x1xi32>
    %17 = arith.cmpi slt, %15, %16 : vector<200x1xi32>
    %18 = arith.extui %17 : vector<200x1xi1> to vector<200x1xi32>
    %19 = arith.sitofp %18 : vector<200x1xi32> to vector<200x1xf32>
    %20 = vector.broadcast %19 : vector<200x1xf32> to vector<200x128xf32>
    %21 = arith.mulf %14, %20 : vector<200x128xf32>
    %cst_6 = arith.constant dense<0.000000e+00> : vector<128xf32>
    %22 = vector.multi_reduction <add>, %21, %cst_6 [0] : vector<200x128xf32> to vector<128xf32>
    %23 = vector.shape_cast %22 : vector<128xf32> to vector<1x128xf32>
    %cst_7 = arith.constant 0.00510204071 : f32
    %24 = vector.broadcast %cst_7 : f32 to vector<1x128xf32>
    %25 = arith.mulf %23, %24 : vector<1x128xf32>
    %26 = vector.broadcast %25 : vector<1x128xf32> to vector<200x128xf32>
    %27 = arith.subf %14, %26 : vector<200x128xf32>
    %28 = vector.broadcast %19 : vector<200x1xf32> to vector<200x128xf32>
    %29 = arith.mulf %27, %28 : vector<200x128xf32>
    %30 = arith.mulf %29, %29 : vector<200x128xf32>
    %cst_8 = arith.constant dense<0.000000e+00> : vector<128xf32>
    %31 = vector.multi_reduction <add>, %30, %cst_8 [0] : vector<200x128xf32> to vector<128xf32>
    %32 = vector.shape_cast %31 : vector<128xf32> to vector<1x128xf32>
    %cst_9 = arith.constant 0.00510204071 : f32
    %33 = vector.broadcast %cst_9 : f32 to vector<1x128xf32>
    %34 = arith.mulf %32, %33 : vector<1x128xf32>
    %35 = vector.broadcast %25 : vector<1x128xf32> to vector<200x128xf32>
    %36 = arith.subf %14, %35 : vector<200x128xf32>
    %cst_10 = arith.constant 9.99999974E-6 : f32
    %37 = vector.broadcast %cst_10 : f32 to vector<1x128xf32>
    %38 = arith.addf %34, %37 : vector<1x128xf32>
    %39 = math.rsqrt %38 : vector<1x128xf32>
    %40 = vector.broadcast %39 : vector<1x128xf32> to vector<200x128xf32>
    %41 = arith.mulf %36, %40 : vector<200x128xf32>
    %c1 = arith.constant 1 : index
    %c0_11 = arith.constant 0 : index
    %42 = vector.load %arg4[%c1, %c0_11] : memref<9x128xf32, #tpu.memory_space<vmem>>, vector<1x128xf32>
    %43 = vector.broadcast %42 : vector<1x128xf32> to vector<200x128xf32>
    %44 = arith.mulf %41, %43 : vector<200x128xf32>
    %c2 = arith.constant 2 : index
    %c0_12 = arith.constant 0 : index
    %45 = vector.load %arg4[%c2, %c0_12] : memref<9x128xf32, #tpu.memory_space<vmem>>, vector<1x128xf32>
    %46 = vector.broadcast %45 : vector<1x128xf32> to vector<200x128xf32>
    %47 = arith.addf %44, %46 : vector<200x128xf32>
    %cst_13 = arith.constant 0.000000e+00 : f32
    %48 = vector.broadcast %cst_13 : f32 to vector<344x128xf32>
    %c0_14 = arith.constant 0 : index
    %c0_15 = arith.constant 0 : index
    %49 = vector.load %arg6[%c0_14, %c0_15] : memref<344x128xf32, #tpu.memory_space<vmem>>, vector<344x128xf32>
    tpu.vector_store %arg6[%c0_14, %c0_15], %48 {strides = array<i32>} : memref<344x128xf32, #tpu.memory_space<vmem>>, vector<344x128xf32>,
    %50 = vector.extract_strided_slice %47 {offsets = [0, 0], sizes = [7, 128], strides = [1, 1]} : vector<200x128xf32> to vector<7x128xf32>
    %c10 = arith.constant 10 : index
    %c0_16 = arith.constant 0 : index
    %51 = vector.load %arg6[%c10, %c0_16] : memref<344x128xf32, #tpu.memory_space<vmem>>, vector<7x128xf32>
    tpu.vector_store %arg6[%c10, %c0_16], %50 {strides = array<i32>} : memref<344x128xf32, #tpu.memory_space<vmem>>, vector<7x128xf32>,
    %52 = vector.extract_strided_slice %47 {offsets = [7, 0], sizes = [7, 128], strides = [1, 1]} : vector<200x128xf32> to vector<7x128xf32>
    %c19 = arith.constant 19 : index
    %c0_17 = arith.constant 0 : index
    %53 = vector.load %arg6[%c19, %c0_17] : memref<344x128xf32, #tpu.memory_space<vmem>>, vector<7x128xf32>
    tpu.vector_store %arg6[%c19, %c0_17], %52 {strides = array<i32>} : memref<344x128xf32, #tpu.memory_space<vmem>>, vector<7x128xf32>,
    %54 = vector.extract_strided_slice %47 {offsets = [14, 0], sizes = [7, 128], strides = [1, 1]} : vector<200x128xf32> to vector<7x128xf32>
    %c28 = arith.constant 28 : index
    %c0_18 = arith.constant 0 : index
    %55 = vector.load %arg6[%c28, %c0_18] : memref<344x128xf32, #tpu.memory_space<vmem>>, vector<7x128xf32>
    tpu.vector_store %arg6[%c28, %c0_18], %54 {strides = array<i32>} : memref<344x128xf32, #tpu.memory_space<vmem>>, vector<7x128xf32>,
    %56 = vector.extract_strided_slice %47 {offsets = [21, 0], sizes = [7, 128], strides = [1, 1]} : vector<200x128xf32> to vector<7x128xf32>
    %c37 = arith.constant 37 : index
    %c0_19 = arith.constant 0 : index
    %57 = vector.load %arg6[%c37, %c0_19] : memref<344x128xf32, #tpu.memory_space<vmem>>, vector<7x128xf32>
    tpu.vector_store %arg6[%c37, %c0_19], %56 {strides = array<i32>} : memref<344x128xf32, #tpu.memory_space<vmem>>, vector<7x128xf32>,
    %58 = vector.extract_strided_slice %47 {offsets = [28, 0], sizes = [7, 128], strides = [1, 1]} : vector<200x128xf32> to vector<7x128xf32>
    %c46 = arith.constant 46 : index
    %c0_20 = arith.constant 0 : index
    %59 = vector.load %arg6[%c46, %c0_20] : memref<344x128xf32, #tpu.memory_space<vmem>>, vector<7x128xf32>
    tpu.vector_store %arg6[%c46, %c0_20], %58 {strides = array<i32>} : memref<344x128xf32, #tpu.memory_space<vmem>>, vector<7x128xf32>,
    %60 = vector.extract_strided_slice %47 {offsets = [35, 0], sizes = [7, 128], strides = [1, 1]} : vector<200x128xf32> to vector<7x128xf32>
    %c55 = arith.constant 55 : index
    %c0_21 = arith.constant 0 : index
    %61 = vector.load %arg6[%c55, %c0_21] : memref<344x128xf32, #tpu.memory_space<vmem>>, vector<7x128xf32>
    tpu.vector_store %arg6[%c55, %c0_21], %60 {strides = array<i32>} : memref<344x128xf32, #tpu.memory_space<vmem>>, vector<7x128xf32>,
    %62 = vector.extract_strided_slice %47 {offsets = [42, 0], sizes = [7, 128], strides = [1, 1]} : vector<200x128xf32> to vector<7x128xf32>
    %c64 = arith.constant 64 : index
    %c0_22 = arith.constant 0 : index
    %63 = vector.load %arg6[%c64, %c0_22] : memref<344x128xf32, #tpu.memory_space<vmem>>, vector<7x128xf32>
    tpu.vector_store %arg6[%c64, %c0_22], %62 {strides = array<i32>} : memref<344x128xf32, #tpu.memory_space<vmem>>, vector<7x128xf32>,
    %64 = vector.extract_strided_slice %47 {offsets = [49, 0], sizes = [7, 128], strides = [1, 1]} : vector<200x128xf32> to vector<7x128xf32>
    %c91 = arith.constant 91 : index
    %c0_23 = arith.constant 0 : index
    %65 = vector.load %arg6[%c91, %c0_23] : memref<344x128xf32, #tpu.memory_space<vmem>>, vector<7x128xf32>
    tpu.vector_store %arg6[%c91, %c0_23], %64 {strides = array<i32>} : memref<344x128xf32, #tpu.memory_space<vmem>>, vector<7x128xf32>,
    %66 = vector.extract_strided_slice %47 {offsets = [56, 0], sizes = [7, 128], strides = [1, 1]} : vector<200x128xf32> to vector<7x128xf32>
    %c100 = arith.constant 100 : index
    %c0_24 = arith.constant 0 : index
    %67 = vector.load %arg6[%c100, %c0_24] : memref<344x128xf32, #tpu.memory_space<vmem>>, vector<7x128xf32>
    tpu.vector_store %arg6[%c100, %c0_24], %66 {strides = array<i32>} : memref<344x128xf32, #tpu.memory_space<vmem>>, vector<7x128xf32>,
    %68 = vector.extract_strided_slice %47 {offsets = [63, 0], sizes = [7, 128], strides = [1, 1]} : vector<200x128xf32> to vector<7x128xf32>
    %c109 = arith.constant 109 : index
    %c0_25 = arith.constant 0 : index
    %69 = vector.load %arg6[%c109, %c0_25] : memref<344x128xf32, #tpu.memory_space<vmem>>, vector<7x128xf32>
    tpu.vector_store %arg6[%c109, %c0_25], %68 {strides = array<i32>} : memref<344x128xf32, #tpu.memory_space<vmem>>, vector<7x128xf32>,
    %70 = vector.extract_strided_slice %47 {offsets = [70, 0], sizes = [7, 128], strides = [1, 1]} : vector<200x128xf32> to vector<7x128xf32>
    %c118 = arith.constant 118 : index
    %c0_26 = arith.constant 0 : index
    %71 = vector.load %arg6[%c118, %c0_26] : memref<344x128xf32, #tpu.memory_space<vmem>>, vector<7x128xf32>
    tpu.vector_store %arg6[%c118, %c0_26], %70 {strides = array<i32>} : memref<344x128xf32, #tpu.memory_space<vmem>>, vector<7x128xf32>,
    %72 = vector.extract_strided_slice %47 {offsets = [77, 0], sizes = [7, 128], strides = [1, 1]} : vector<200x128xf32> to vector<7x128xf32>
    %c127 = arith.constant 127 : index
    %c0_27 = arith.constant 0 : index
    %73 = vector.load %arg6[%c127, %c0_27] : memref<344x128xf32, #tpu.memory_space<vmem>>, vector<7x128xf32>
    tpu.vector_store %arg6[%c127, %c0_27], %72 {strides = array<i32>} : memref<344x128xf32, #tpu.memory_space<vmem>>, vector<7x128xf32>,
    %74 = vector.extract_strided_slice %47 {offsets = [84, 0], sizes = [7, 128], strides = [1, 1]} : vector<200x128xf32> to vector<7x128xf32>
    %c136 = arith.constant 136 : index
    %c0_28 = arith.constant 0 : index
    %75 = vector.load %arg6[%c136, %c0_28] : memref<344x128xf32, #tpu.memory_space<vmem>>, vector<7x128xf32>
    tpu.vector_store %arg6[%c136, %c0_28], %74 {strides = array<i32>} : memref<344x128xf32, #tpu.memory_space<vmem>>, vector<7x128xf32>,
    %76 = vector.extract_strided_slice %47 {offsets = [91, 0], sizes = [7, 128], strides = [1, 1]} : vector<200x128xf32> to vector<7x128xf32>
    %c145 = arith.constant 145 : index
    %c0_29 = arith.constant 0 : index
    %77 = vector.load %arg6[%c145, %c0_29] : memref<344x128xf32, #tpu.memory_space<vmem>>, vector<7x128xf32>
    tpu.vector_store %arg6[%c145, %c0_29], %76 {strides = array<i32>} : memref<344x128xf32, #tpu.memory_space<vmem>>, vector<7x128xf32>,
    %78 = vector.extract_strided_slice %47 {offsets = [98, 0], sizes = [7, 128], strides = [1, 1]} : vector<200x128xf32> to vector<7x128xf32>
    %c172 = arith.constant 172 : index
    %c0_30 = arith.constant 0 : index
    %79 = vector.load %arg6[%c172, %c0_30] : memref<344x128xf32, #tpu.memory_space<vmem>>, vector<7x128xf32>
    tpu.vector_store %arg6[%c172, %c0_30], %78 {strides = array<i32>} : memref<344x128xf32, #tpu.memory_space<vmem>>, vector<7x128xf32>,
    %80 = vector.extract_strided_slice %47 {offsets = [105, 0], sizes = [7, 128], strides = [1, 1]} : vector<200x128xf32> to vector<7x128xf32>
    %c181 = arith.constant 181 : index
    %c0_31 = arith.constant 0 : index
    %81 = vector.load %arg6[%c181, %c0_31] : memref<344x128xf32, #tpu.memory_space<vmem>>, vector<7x128xf32>
    tpu.vector_store %arg6[%c181, %c0_31], %80 {strides = array<i32>} : memref<344x128xf32, #tpu.memory_space<vmem>>, vector<7x128xf32>,
    %82 = vector.extract_strided_slice %47 {offsets = [112, 0], sizes = [7, 128], strides = [1, 1]} : vector<200x128xf32> to vector<7x128xf32>
    %c190 = arith.constant 190 : index
    %c0_32 = arith.constant 0 : index
    %83 = vector.load %arg6[%c190, %c0_32] : memref<344x128xf32, #tpu.memory_space<vmem>>, vector<7x128xf32>
    tpu.vector_store %arg6[%c190, %c0_32], %82 {strides = array<i32>} : memref<344x128xf32, #tpu.memory_space<vmem>>, vector<7x128xf32>,
    %84 = vector.extract_strided_slice %47 {offsets = [119, 0], sizes = [7, 128], strides = [1, 1]} : vector<200x128xf32> to vector<7x128xf32>
    %c199 = arith.constant 199 : index
    %c0_33 = arith.constant 0 : index
    %85 = vector.load %arg6[%c199, %c0_33] : memref<344x128xf32, #tpu.memory_space<vmem>>, vector<7x128xf32>
    tpu.vector_store %arg6[%c199, %c0_33], %84 {strides = array<i32>} : memref<344x128xf32, #tpu.memory_space<vmem>>, vector<7x128xf32>,
    %86 = vector.extract_strided_slice %47 {offsets = [126, 0], sizes = [7, 128], strides = [1, 1]} : vector<200x128xf32> to vector<7x128xf32>
    %c208 = arith.constant 208 : index
    %c0_34 = arith.constant 0 : index
    %87 = vector.load %arg6[%c208, %c0_34] : memref<344x128xf32, #tpu.memory_space<vmem>>, vector<7x128xf32>
    tpu.vector_store %arg6[%c208, %c0_34], %86 {strides = array<i32>} : memref<344x128xf32, #tpu.memory_space<vmem>>, vector<7x128xf32>,
    %88 = vector.extract_strided_slice %47 {offsets = [133, 0], sizes = [7, 128], strides = [1, 1]} : vector<200x128xf32> to vector<7x128xf32>
    %c217 = arith.constant 217 : index
    %c0_35 = arith.constant 0 : index
    %89 = vector.load %arg6[%c217, %c0_35] : memref<344x128xf32, #tpu.memory_space<vmem>>, vector<7x128xf32>
    tpu.vector_store %arg6[%c217, %c0_35], %88 {strides = array<i32>} : memref<344x128xf32, #tpu.memory_space<vmem>>, vector<7x128xf32>,
    %90 = vector.extract_strided_slice %47 {offsets = [140, 0], sizes = [7, 128], strides = [1, 1]} : vector<200x128xf32> to vector<7x128xf32>
    %c226 = arith.constant 226 : index
    %c0_36 = arith.constant 0 : index
    %91 = vector.load %arg6[%c226, %c0_36] : memref<344x128xf32, #tpu.memory_space<vmem>>, vector<7x128xf32>
    tpu.vector_store %arg6[%c226, %c0_36], %90 {strides = array<i32>} : memref<344x128xf32, #tpu.memory_space<vmem>>, vector<7x128xf32>,
    %92 = vector.extract_strided_slice %47 {offsets = [147, 0], sizes = [7, 128], strides = [1, 1]} : vector<200x128xf32> to vector<7x128xf32>
    %c253 = arith.constant 253 : index
    %c0_37 = arith.constant 0 : index
    %93 = vector.load %arg6[%c253, %c0_37] : memref<344x128xf32, #tpu.memory_space<vmem>>, vector<7x128xf32>
    tpu.vector_store %arg6[%c253, %c0_37], %92 {strides = array<i32>} : memref<344x128xf32, #tpu.memory_space<vmem>>, vector<7x128xf32>,
    %94 = vector.extract_strided_slice %47 {offsets = [154, 0], sizes = [7, 128], strides = [1, 1]} : vector<200x128xf32> to vector<7x128xf32>
    %c262 = arith.constant 262 : index
    %c0_38 = arith.constant 0 : index
    %95 = vector.load %arg6[%c262, %c0_38] : memref<344x128xf32, #tpu.memory_space<vmem>>, vector<7x128xf32>
    tpu.vector_store %arg6[%c262, %c0_38], %94 {strides = array<i32>} : memref<344x128xf32, #tpu.memory_space<vmem>>, vector<7x128xf32>,
    %96 = vector.extract_strided_slice %47 {offsets = [161, 0], sizes = [7, 128], strides = [1, 1]} : vector<200x128xf32> to vector<7x128xf32>
    %c271 = arith.constant 271 : index
    %c0_39 = arith.constant 0 : index
    %97 = vector.load %arg6[%c271, %c0_39] : memref<344x128xf32, #tpu.memory_space<vmem>>, vector<7x128xf32>
    tpu.vector_store %arg6[%c271, %c0_39], %96 {strides = array<i32>} : memref<344x128xf32, #tpu.memory_space<vmem>>, vector<7x128xf32>,
    %98 = vector.extract_strided_slice %47 {offsets = [168, 0], sizes = [7, 128], strides = [1, 1]} : vector<200x128xf32> to vector<7x128xf32>
    %c280 = arith.constant 280 : index
    %c0_40 = arith.constant 0 : index
    %99 = vector.load %arg6[%c280, %c0_40] : memref<344x128xf32, #tpu.memory_space<vmem>>, vector<7x128xf32>
    tpu.vector_store %arg6[%c280, %c0_40], %98 {strides = array<i32>} : memref<344x128xf32, #tpu.memory_space<vmem>>, vector<7x128xf32>,
    %100 = vector.extract_strided_slice %47 {offsets = [175, 0], sizes = [7, 128], strides = [1, 1]} : vector<200x128xf32> to vector<7x128xf32>
    %c289 = arith.constant 289 : index
    %c0_41 = arith.constant 0 : index
    %101 = vector.load %arg6[%c289, %c0_41] : memref<344x128xf32, #tpu.memory_space<vmem>>, vector<7x128xf32>
    tpu.vector_store %arg6[%c289, %c0_41], %100 {strides = array<i32>} : memref<344x128xf32, #tpu.memory_space<vmem>>, vector<7x128xf32>,
    %102 = vector.extract_strided_slice %47 {offsets = [182, 0], sizes = [7, 128], strides = [1, 1]} : vector<200x128xf32> to vector<7x128xf32>
    %c298 = arith.constant 298 : index
    %c0_42 = arith.constant 0 : index
    %103 = vector.load %arg6[%c298, %c0_42] : memref<344x128xf32, #tpu.memory_space<vmem>>, vector<7x128xf32>
    tpu.vector_store %arg6[%c298, %c0_42], %102 {strides = array<i32>} : memref<344x128xf32, #tpu.memory_space<vmem>>, vector<7x128xf32>,
    %104 = vector.extract_strided_slice %47 {offsets = [189, 0], sizes = [7, 128], strides = [1, 1]} : vector<200x128xf32> to vector<7x128xf32>
    %c307 = arith.constant 307 : index
    %c0_43 = arith.constant 0 : index
    %105 = vector.load %arg6[%c307, %c0_43] : memref<344x128xf32, #tpu.memory_space<vmem>>, vector<7x128xf32>
    tpu.vector_store %arg6[%c307, %c0_43], %104 {strides = array<i32>} : memref<344x128xf32, #tpu.memory_space<vmem>>, vector<7x128xf32>,
    %c0_44 = arith.constant 0 : index
    %c0_45 = arith.constant 0 : index
    %106 = vector.load %arg6[%c0_44, %c0_45] : memref<344x128xf32, #tpu.memory_space<vmem>>, vector<344x128xf32>
    %107 = arith.truncf %106 : vector<344x128xf32> to vector<344x128xbf16>
    %108 = vector.extract_strided_slice %107 {offsets = [0, 0], sizes = [324, 128], strides = [1, 1]} : vector<344x128xbf16> to vector<324x128xbf16>
    %109 = vector.extract_strided_slice %107 {offsets = [1, 0], sizes = [324, 128], strides = [1, 1]} : vector<344x128xbf16> to vector<324x128xbf16>
    %110 = vector.extract_strided_slice %107 {offsets = [2, 0], sizes = [324, 128], strides = [1, 1]} : vector<344x128xbf16> to vector<324x128xbf16>
    %111 = vector.extract_strided_slice %107 {offsets = [9, 0], sizes = [324, 128], strides = [1, 1]} : vector<344x128xbf16> to vector<324x128xbf16>
    %112 = vector.extract_strided_slice %107 {offsets = [10, 0], sizes = [324, 128], strides = [1, 1]} : vector<344x128xbf16> to vector<324x128xbf16>
    %113 = vector.extract_strided_slice %107 {offsets = [11, 0], sizes = [324, 128], strides = [1, 1]} : vector<344x128xbf16> to vector<324x128xbf16>
    %114 = vector.extract_strided_slice %107 {offsets = [18, 0], sizes = [324, 128], strides = [1, 1]} : vector<344x128xbf16> to vector<324x128xbf16>
    %115 = vector.extract_strided_slice %107 {offsets = [19, 0], sizes = [324, 128], strides = [1, 1]} : vector<344x128xbf16> to vector<324x128xbf16>
    %116 = vector.extract_strided_slice %107 {offsets = [20, 0], sizes = [324, 128], strides = [1, 1]} : vector<344x128xbf16> to vector<324x128xbf16>
    %117 = tpu.concatenate %108, %109, %110, %111, %112, %113, %114, %115, %116 in 1 : vector<324x128xbf16>, vector<324x128xbf16>, vector<324x128xbf16>, vector<324x128xbf16>, vector<324x128xbf16>, vector<324x128xbf16>, vector<324x128xbf16>, vector<324x128xbf16>, vector<324x128xbf16> -> vector<324x1152xbf16>
    %c0_46 = arith.constant 0 : index
    %c0_47 = arith.constant 0 : index
    %118 = vector.load %arg2[%c0_46, %c0_47] : memref<1152x128xbf16, #tpu.memory_space<vmem>>, vector<1152x128xbf16>
    %cst_48 = arith.constant dense<0.000000e+00> : vector<324x128xf32>
    %119 = tpu.matmul %117, %118, %cst_48 {dimension_numbers = #tpu.dot_dimension_numbers<[1], [0], [0], [1], [0, 0, 1, 1], [], []>} : vector<324x1152xbf16>, vector<1152x128xbf16>, vector<324x128xf32> -> vector<324x128xf32>
    %120 = vector.extract_strided_slice %119 {offsets = [0, 0], sizes = [314, 128], strides = [1, 1]} : vector<324x128xf32> to vector<314x128xf32>
    %121 = vector.extract_strided_slice %119 {offsets = [1, 0], sizes = [314, 128], strides = [1, 1]} : vector<324x128xf32> to vector<314x128xf32>
    %122 = arith.maximumf %120, %121 : vector<314x128xf32>
    %123 = vector.extract_strided_slice %119 {offsets = [9, 0], sizes = [314, 128], strides = [1, 1]} : vector<324x128xf32> to vector<314x128xf32>
    %124 = vector.extract_strided_slice %119 {offsets = [10, 0], sizes = [314, 128], strides = [1, 1]} : vector<324x128xf32> to vector<314x128xf32>
    %125 = arith.maximumf %123, %124 : vector<314x128xf32>
    %126 = arith.maximumf %122, %125 : vector<314x128xf32>
    %c3 = arith.constant 3 : index
    %c0_49 = arith.constant 0 : index
    %127 = vector.load %arg4[%c3, %c0_49] : memref<9x128xf32, #tpu.memory_space<vmem>>, vector<1x128xf32>
    %128 = vector.broadcast %127 : vector<1x128xf32> to vector<314x128xf32>
    %129 = arith.addf %126, %128 : vector<314x128xf32>
    %cst_50 = arith.constant 0.000000e+00 : f32
    %130 = vector.broadcast %cst_50 : f32 to vector<314x128xf32>
    %131 = arith.maximumf %129, %130 : vector<314x128xf32>
    %132 = vector.extract_strided_slice %131 {offsets = [0, 0], sizes = [1, 128], strides = [1, 1]} : vector<314x128xf32> to vector<1x128xf32>
    %133 = vector.extract_strided_slice %131 {offsets = [2, 0], sizes = [1, 128], strides = [1, 1]} : vector<314x128xf32> to vector<1x128xf32>
    %134 = vector.extract_strided_slice %131 {offsets = [4, 0], sizes = [1, 128], strides = [1, 1]} : vector<314x128xf32> to vector<1x128xf32>
    %135 = vector.extract_strided_slice %131 {offsets = [18, 0], sizes = [1, 128], strides = [1, 1]} : vector<314x128xf32> to vector<1x128xf32>
    %136 = vector.extract_strided_slice %131 {offsets = [20, 0], sizes = [1, 128], strides = [1, 1]} : vector<314x128xf32> to vector<1x128xf32>
    %137 = vector.extract_strided_slice %131 {offsets = [22, 0], sizes = [1, 128], strides = [1, 1]} : vector<314x128xf32> to vector<1x128xf32>
    %138 = vector.extract_strided_slice %131 {offsets = [36, 0], sizes = [1, 128], strides = [1, 1]} : vector<314x128xf32> to vector<1x128xf32>
    %139 = vector.extract_strided_slice %131 {offsets = [38, 0], sizes = [1, 128], strides = [1, 1]} : vector<314x128xf32> to vector<1x128xf32>
    %140 = vector.extract_strided_slice %131 {offsets = [40, 0], sizes = [1, 128], strides = [1, 1]} : vector<314x128xf32> to vector<1x128xf32>
    %141 = vector.extract_strided_slice %131 {offsets = [81, 0], sizes = [1, 128], strides = [1, 1]} : vector<314x128xf32> to vector<1x128xf32>
    %142 = vector.extract_strided_slice %131 {offsets = [83, 0], sizes = [1, 128], strides = [1, 1]} : vector<314x128xf32> to vector<1x128xf32>
    %143 = vector.extract_strided_slice %131 {offsets = [85, 0], sizes = [1, 128], strides = [1, 1]} : vector<314x128xf32> to vector<1x128xf32>
    %144 = vector.extract_strided_slice %131 {offsets = [99, 0], sizes = [1, 128], strides = [1, 1]} : vector<314x128xf32> to vector<1x128xf32>
    %145 = vector.extract_strided_slice %131 {offsets = [101, 0], sizes = [1, 128], strides = [1, 1]} : vector<314x128xf32> to vector<1x128xf32>
    %146 = vector.extract_strided_slice %131 {offsets = [103, 0], sizes = [1, 128], strides = [1, 1]} : vector<314x128xf32> to vector<1x128xf32>
    %147 = vector.extract_strided_slice %131 {offsets = [117, 0], sizes = [1, 128], strides = [1, 1]} : vector<314x128xf32> to vector<1x128xf32>
    %148 = vector.extract_strided_slice %131 {offsets = [119, 0], sizes = [1, 128], strides = [1, 1]} : vector<314x128xf32> to vector<1x128xf32>
    %149 = vector.extract_strided_slice %131 {offsets = [121, 0], sizes = [1, 128], strides = [1, 1]} : vector<314x128xf32> to vector<1x128xf32>
    %150 = vector.extract_strided_slice %131 {offsets = [162, 0], sizes = [1, 128], strides = [1, 1]} : vector<314x128xf32> to vector<1x128xf32>
    %151 = vector.extract_strided_slice %131 {offsets = [164, 0], sizes = [1, 128], strides = [1, 1]} : vector<314x128xf32> to vector<1x128xf32>
    %152 = vector.extract_strided_slice %131 {offsets = [166, 0], sizes = [1, 128], strides = [1, 1]} : vector<314x128xf32> to vector<1x128xf32>
    %153 = vector.extract_strided_slice %131 {offsets = [180, 0], sizes = [1, 128], strides = [1, 1]} : vector<314x128xf32> to vector<1x128xf32>
    %154 = vector.extract_strided_slice %131 {offsets = [182, 0], sizes = [1, 128], strides = [1, 1]} : vector<314x128xf32> to vector<1x128xf32>
    %155 = vector.extract_strided_slice %131 {offsets = [184, 0], sizes = [1, 128], strides = [1, 1]} : vector<314x128xf32> to vector<1x128xf32>
    %156 = vector.extract_strided_slice %131 {offsets = [198, 0], sizes = [1, 128], strides = [1, 1]} : vector<314x128xf32> to vector<1x128xf32>
    %157 = vector.extract_strided_slice %131 {offsets = [200, 0], sizes = [1, 128], strides = [1, 1]} : vector<314x128xf32> to vector<1x128xf32>
    %158 = vector.extract_strided_slice %131 {offsets = [202, 0], sizes = [1, 128], strides = [1, 1]} : vector<314x128xf32> to vector<1x128xf32>
    %159 = vector.extract_strided_slice %131 {offsets = [243, 0], sizes = [1, 128], strides = [1, 1]} : vector<314x128xf32> to vector<1x128xf32>
    %160 = vector.extract_strided_slice %131 {offsets = [245, 0], sizes = [1, 128], strides = [1, 1]} : vector<314x128xf32> to vector<1x128xf32>
    %161 = vector.extract_strided_slice %131 {offsets = [247, 0], sizes = [1, 128], strides = [1, 1]} : vector<314x128xf32> to vector<1x128xf32>
    %162 = vector.extract_strided_slice %131 {offsets = [261, 0], sizes = [1, 128], strides = [1, 1]} : vector<314x128xf32> to vector<1x128xf32>
    %163 = vector.extract_strided_slice %131 {offsets = [263, 0], sizes = [1, 128], strides = [1, 1]} : vector<314x128xf32> to vector<1x128xf32>
    %164 = vector.extract_strided_slice %131 {offsets = [265, 0], sizes = [1, 128], strides = [1, 1]} : vector<314x128xf32> to vector<1x128xf32>
    %165 = vector.extract_strided_slice %131 {offsets = [279, 0], sizes = [1, 128], strides = [1, 1]} : vector<314x128xf32> to vector<1x128xf32>
    %166 = vector.extract_strided_slice %131 {offsets = [281, 0], sizes = [1, 128], strides = [1, 1]} : vector<314x128xf32> to vector<1x128xf32>
    %167 = vector.extract_strided_slice %131 {offsets = [283, 0], sizes = [1, 128], strides = [1, 1]} : vector<314x128xf32> to vector<1x128xf32>
    %168 = tpu.concatenate %132, %133, %134, %135, %136, %137, %138, %139, %140, %141, %142, %143, %144, %145, %146, %147 in 0 : vector<1x128xf32>, vector<1x128xf32>, vector<1x128xf32>, vector<1x128xf32>, vector<1x128xf32>, vector<1x128xf32>, vector<1x128xf32>, vector<1x128xf32>, vector<1x128xf32>, vector<1x128xf32>, vector<1x128xf32>, vector<1x128xf32>, vector<1x128xf32>, vector<1x128xf32>, vector<1x128xf32>, vector<1x128xf32> -> vector<16x128xf32>
    %169 = tpu.concatenate %148, %149, %150, %151, %152, %153, %154, %155, %156, %157, %158, %159, %160, %161, %162, %163 in 0 : vector<1x128xf32>, vector<1x128xf32>, vector<1x128xf32>, vector<1x128xf32>, vector<1x128xf32>, vector<1x128xf32>, vector<1x128xf32>, vector<1x128xf32>, vector<1x128xf32>, vector<1x128xf32>, vector<1x128xf32>, vector<1x128xf32>, vector<1x128xf32>, vector<1x128xf32>, vector<1x128xf32>, vector<1x128xf32> -> vector<16x128xf32>
    %170 = tpu.concatenate %164, %165, %166, %167 in 0 : vector<1x128xf32>, vector<1x128xf32>, vector<1x128xf32>, vector<1x128xf32> -> vector<4x128xf32>
    %171 = tpu.concatenate %168, %169, %170 in 0 : vector<16x128xf32>, vector<16x128xf32>, vector<4x128xf32> -> vector<36x128xf32>
    %cst_51 = arith.constant dense<0.000000e+00> : vector<128xf32>
    %172 = vector.multi_reduction <add>, %171, %cst_51 [0] : vector<36x128xf32> to vector<128xf32>
    %173 = vector.shape_cast %172 : vector<128xf32> to vector<1x128xf32>
    %cst_52 = arith.constant 0.027777778 : f32
    %174 = vector.broadcast %cst_52 : f32 to vector<1x128xf32>
    %175 = arith.mulf %173, %174 : vector<1x128xf32>
    %176 = vector.broadcast %175 : vector<1x128xf32> to vector<36x128xf32>
    %177 = arith.subf %171, %176 : vector<36x128xf32>
    %178 = arith.mulf %177, %177 : vector<36x128xf32>
    %cst_53 = arith.constant dense<0.000000e+00> : vector<128xf32>
    %179 = vector.multi_reduction <add>, %178, %cst_53 [0] : vector<36x128xf32> to vector<128xf32>
    %180 = vector.shape_cast %179 : vector<128xf32> to vector<1x128xf32>
    %cst_54 = arith.constant 0.027777778 : f32
    %181 = vector.broadcast %cst_54 : f32 to vector<1x128xf32>
    %182 = arith.mulf %180, %181 : vector<1x128xf32>
    %183 = vector.broadcast %175 : vector<1x128xf32> to vector<36x128xf32>
    %184 = arith.subf %171, %183 : vector<36x128xf32>
    %cst_55 = arith.constant 9.99999974E-6 : f32
    %185 = vector.broadcast %cst_55 : f32 to vector<1x128xf32>
    %186 = arith.addf %182, %185 : vector<1x128xf32>
    %187 = math.rsqrt %186 : vector<1x128xf32>
    %188 = vector.broadcast %187 : vector<1x128xf32> to vector<36x128xf32>
    %189 = arith.mulf %184, %188 : vector<36x128xf32>
    %c4 = arith.constant 4 : index
    %c0_56 = arith.constant 0 : index
    %190 = vector.load %arg4[%c4, %c0_56] : memref<9x128xf32, #tpu.memory_space<vmem>>, vector<1x128xf32>
    %191 = vector.broadcast %190 : vector<1x128xf32> to vector<36x128xf32>
    %192 = arith.mulf %189, %191 : vector<36x128xf32>
    %c5 = arith.constant 5 : index
    %c0_57 = arith.constant 0 : index
    %193 = vector.load %arg4[%c5, %c0_57] : memref<9x128xf32, #tpu.memory_space<vmem>>, vector<1x128xf32>
    %194 = vector.broadcast %193 : vector<1x128xf32> to vector<36x128xf32>
    %195 = arith.addf %192, %194 : vector<36x128xf32>
    %cst_58 = arith.constant 0.000000e+00 : f32
    %196 = vector.broadcast %cst_58 : f32 to vector<112x128xf32>
    %c0_59 = arith.constant 0 : index
    %c0_60 = arith.constant 0 : index
    %197 = vector.load %arg7[%c0_59, %c0_60] : memref<112x128xf32, #tpu.memory_space<vmem>>, vector<112x128xf32>
    tpu.vector_store %arg7[%c0_59, %c0_60], %196 {strides = array<i32>} : memref<112x128xf32, #tpu.memory_space<vmem>>, vector<112x128xf32>,
    %198 = vector.extract_strided_slice %195 {offsets = [0, 0], sizes = [3, 128], strides = [1, 1]} : vector<36x128xf32> to vector<3x128xf32>
    %c6 = arith.constant 6 : index
    %c0_61 = arith.constant 0 : index
    %199 = vector.load %arg7[%c6, %c0_61] : memref<112x128xf32, #tpu.memory_space<vmem>>, vector<3x128xf32>
    tpu.vector_store %arg7[%c6, %c0_61], %198 {strides = array<i32>} : memref<112x128xf32, #tpu.memory_space<vmem>>, vector<3x128xf32>,
    %200 = vector.extract_strided_slice %195 {offsets = [3, 0], sizes = [3, 128], strides = [1, 1]} : vector<36x128xf32> to vector<3x128xf32>
    %c11 = arith.constant 11 : index
    %c0_62 = arith.constant 0 : index
    %201 = vector.load %arg7[%c11, %c0_62] : memref<112x128xf32, #tpu.memory_space<vmem>>, vector<3x128xf32>
    tpu.vector_store %arg7[%c11, %c0_62], %200 {strides = array<i32>} : memref<112x128xf32, #tpu.memory_space<vmem>>, vector<3x128xf32>,
    %202 = vector.extract_strided_slice %195 {offsets = [6, 0], sizes = [3, 128], strides = [1, 1]} : vector<36x128xf32> to vector<3x128xf32>
    %c16 = arith.constant 16 : index
    %c0_63 = arith.constant 0 : index
    %203 = vector.load %arg7[%c16, %c0_63] : memref<112x128xf32, #tpu.memory_space<vmem>>, vector<3x128xf32>
    tpu.vector_store %arg7[%c16, %c0_63], %202 {strides = array<i32>} : memref<112x128xf32, #tpu.memory_space<vmem>>, vector<3x128xf32>,
    %204 = vector.extract_strided_slice %195 {offsets = [9, 0], sizes = [3, 128], strides = [1, 1]} : vector<36x128xf32> to vector<3x128xf32>
    %c31 = arith.constant 31 : index
    %c0_64 = arith.constant 0 : index
    %205 = vector.load %arg7[%c31, %c0_64] : memref<112x128xf32, #tpu.memory_space<vmem>>, vector<3x128xf32>
    tpu.vector_store %arg7[%c31, %c0_64], %204 {strides = array<i32>} : memref<112x128xf32, #tpu.memory_space<vmem>>, vector<3x128xf32>,
    %206 = vector.extract_strided_slice %195 {offsets = [12, 0], sizes = [3, 128], strides = [1, 1]} : vector<36x128xf32> to vector<3x128xf32>
    %c36 = arith.constant 36 : index
    %c0_65 = arith.constant 0 : index
    %207 = vector.load %arg7[%c36, %c0_65] : memref<112x128xf32, #tpu.memory_space<vmem>>, vector<3x128xf32>
    tpu.vector_store %arg7[%c36, %c0_65], %206 {strides = array<i32>} : memref<112x128xf32, #tpu.memory_space<vmem>>, vector<3x128xf32>,
    %208 = vector.extract_strided_slice %195 {offsets = [15, 0], sizes = [3, 128], strides = [1, 1]} : vector<36x128xf32> to vector<3x128xf32>
    %c41 = arith.constant 41 : index
    %c0_66 = arith.constant 0 : index
    %209 = vector.load %arg7[%c41, %c0_66] : memref<112x128xf32, #tpu.memory_space<vmem>>, vector<3x128xf32>
    tpu.vector_store %arg7[%c41, %c0_66], %208 {strides = array<i32>} : memref<112x128xf32, #tpu.memory_space<vmem>>, vector<3x128xf32>,
    %210 = vector.extract_strided_slice %195 {offsets = [18, 0], sizes = [3, 128], strides = [1, 1]} : vector<36x128xf32> to vector<3x128xf32>
    %c56 = arith.constant 56 : index
    %c0_67 = arith.constant 0 : index
    %211 = vector.load %arg7[%c56, %c0_67] : memref<112x128xf32, #tpu.memory_space<vmem>>, vector<3x128xf32>
    tpu.vector_store %arg7[%c56, %c0_67], %210 {strides = array<i32>} : memref<112x128xf32, #tpu.memory_space<vmem>>, vector<3x128xf32>,
    %212 = vector.extract_strided_slice %195 {offsets = [21, 0], sizes = [3, 128], strides = [1, 1]} : vector<36x128xf32> to vector<3x128xf32>
    %c61 = arith.constant 61 : index
    %c0_68 = arith.constant 0 : index
    %213 = vector.load %arg7[%c61, %c0_68] : memref<112x128xf32, #tpu.memory_space<vmem>>, vector<3x128xf32>
    tpu.vector_store %arg7[%c61, %c0_68], %212 {strides = array<i32>} : memref<112x128xf32, #tpu.memory_space<vmem>>, vector<3x128xf32>,
    %214 = vector.extract_strided_slice %195 {offsets = [24, 0], sizes = [3, 128], strides = [1, 1]} : vector<36x128xf32> to vector<3x128xf32>
    %c66 = arith.constant 66 : index
    %c0_69 = arith.constant 0 : index
    %215 = vector.load %arg7[%c66, %c0_69] : memref<112x128xf32, #tpu.memory_space<vmem>>, vector<3x128xf32>
    tpu.vector_store %arg7[%c66, %c0_69], %214 {strides = array<i32>} : memref<112x128xf32, #tpu.memory_space<vmem>>, vector<3x128xf32>,
    %216 = vector.extract_strided_slice %195 {offsets = [27, 0], sizes = [3, 128], strides = [1, 1]} : vector<36x128xf32> to vector<3x128xf32>
    %c81 = arith.constant 81 : index
    %c0_70 = arith.constant 0 : index
    %217 = vector.load %arg7[%c81, %c0_70] : memref<112x128xf32, #tpu.memory_space<vmem>>, vector<3x128xf32>
    tpu.vector_store %arg7[%c81, %c0_70], %216 {strides = array<i32>} : memref<112x128xf32, #tpu.memory_space<vmem>>, vector<3x128xf32>,
    %218 = vector.extract_strided_slice %195 {offsets = [30, 0], sizes = [3, 128], strides = [1, 1]} : vector<36x128xf32> to vector<3x128xf32>
    %c86 = arith.constant 86 : index
    %c0_71 = arith.constant 0 : index
    %219 = vector.load %arg7[%c86, %c0_71] : memref<112x128xf32, #tpu.memory_space<vmem>>, vector<3x128xf32>
    tpu.vector_store %arg7[%c86, %c0_71], %218 {strides = array<i32>} : memref<112x128xf32, #tpu.memory_space<vmem>>, vector<3x128xf32>,
    %220 = vector.extract_strided_slice %195 {offsets = [33, 0], sizes = [3, 128], strides = [1, 1]} : vector<36x128xf32> to vector<3x128xf32>
    %c91_72 = arith.constant 91 : index
    %c0_73 = arith.constant 0 : index
    %221 = vector.load %arg7[%c91_72, %c0_73] : memref<112x128xf32, #tpu.memory_space<vmem>>, vector<3x128xf32>
    tpu.vector_store %arg7[%c91_72, %c0_73], %220 {strides = array<i32>} : memref<112x128xf32, #tpu.memory_space<vmem>>, vector<3x128xf32>,
    %c0_74 = arith.constant 0 : index
    %c0_75 = arith.constant 0 : index
    %222 = vector.load %arg7[%c0_74, %c0_75] : memref<112x128xf32, #tpu.memory_space<vmem>>, vector<112x128xf32>
    %223 = arith.truncf %222 : vector<112x128xf32> to vector<112x128xbf16>
    %224 = vector.extract_strided_slice %223 {offsets = [0, 0], sizes = [100, 128], strides = [1, 1]} : vector<112x128xbf16> to vector<100x128xbf16>
    %225 = vector.extract_strided_slice %223 {offsets = [1, 0], sizes = [100, 128], strides = [1, 1]} : vector<112x128xbf16> to vector<100x128xbf16>
    %226 = vector.extract_strided_slice %223 {offsets = [2, 0], sizes = [100, 128], strides = [1, 1]} : vector<112x128xbf16> to vector<100x128xbf16>
    %227 = vector.extract_strided_slice %223 {offsets = [5, 0], sizes = [100, 128], strides = [1, 1]} : vector<112x128xbf16> to vector<100x128xbf16>
    %228 = vector.extract_strided_slice %223 {offsets = [6, 0], sizes = [100, 128], strides = [1, 1]} : vector<112x128xbf16> to vector<100x128xbf16>
    %229 = vector.extract_strided_slice %223 {offsets = [7, 0], sizes = [100, 128], strides = [1, 1]} : vector<112x128xbf16> to vector<100x128xbf16>
    %230 = vector.extract_strided_slice %223 {offsets = [10, 0], sizes = [100, 128], strides = [1, 1]} : vector<112x128xbf16> to vector<100x128xbf16>
    %231 = vector.extract_strided_slice %223 {offsets = [11, 0], sizes = [100, 128], strides = [1, 1]} : vector<112x128xbf16> to vector<100x128xbf16>
    %232 = vector.extract_strided_slice %223 {offsets = [12, 0], sizes = [100, 128], strides = [1, 1]} : vector<112x128xbf16> to vector<100x128xbf16>
    %233 = tpu.concatenate %224, %225, %226, %227, %228, %229, %230, %231, %232 in 1 : vector<100x128xbf16>, vector<100x128xbf16>, vector<100x128xbf16>, vector<100x128xbf16>, vector<100x128xbf16>, vector<100x128xbf16>, vector<100x128xbf16>, vector<100x128xbf16>, vector<100x128xbf16> -> vector<100x1152xbf16>
    %c0_76 = arith.constant 0 : index
    %c0_77 = arith.constant 0 : index
    %234 = vector.load %arg3[%c0_76, %c0_77] : memref<1152x128xbf16, #tpu.memory_space<vmem>>, vector<1152x128xbf16>
    %cst_78 = arith.constant dense<0.000000e+00> : vector<100x128xf32>
    %235 = tpu.matmul %233, %234, %cst_78 {dimension_numbers = #tpu.dot_dimension_numbers<[1], [0], [0], [1], [0, 0, 1, 1], [], []>} : vector<100x1152xbf16>, vector<1152x128xbf16>, vector<100x128xf32> -> vector<100x128xf32>
    %236 = vector.extract_strided_slice %235 {offsets = [0, 0], sizes = [94, 128], strides = [1, 1]} : vector<100x128xf32> to vector<94x128xf32>
    %237 = vector.extract_strided_slice %235 {offsets = [1, 0], sizes = [94, 128], strides = [1, 1]} : vector<100x128xf32> to vector<94x128xf32>
    %238 = arith.maximumf %236, %237 : vector<94x128xf32>
    %239 = vector.extract_strided_slice %235 {offsets = [5, 0], sizes = [94, 128], strides = [1, 1]} : vector<100x128xf32> to vector<94x128xf32>
    %240 = vector.extract_strided_slice %235 {offsets = [6, 0], sizes = [94, 128], strides = [1, 1]} : vector<100x128xf32> to vector<94x128xf32>
    %241 = arith.maximumf %239, %240 : vector<94x128xf32>
    %242 = arith.maximumf %238, %241 : vector<94x128xf32>
    %c6_79 = arith.constant 6 : index
    %c0_80 = arith.constant 0 : index
    %243 = vector.load %arg4[%c6_79, %c0_80] : memref<9x128xf32, #tpu.memory_space<vmem>>, vector<1x128xf32>
    %244 = vector.broadcast %243 : vector<1x128xf32> to vector<94x128xf32>
    %245 = arith.addf %242, %244 : vector<94x128xf32>
    %cst_81 = arith.constant 0.000000e+00 : f32
    %246 = vector.broadcast %cst_81 : f32 to vector<94x128xf32>
    %247 = arith.maximumf %245, %246 : vector<94x128xf32>
    %248 = vector.extract_strided_slice %247 {offsets = [0, 0], sizes = [1, 128], strides = [1, 1]} : vector<94x128xf32> to vector<1x128xf32>
    %249 = vector.extract_strided_slice %247 {offsets = [25, 0], sizes = [1, 128], strides = [1, 1]} : vector<94x128xf32> to vector<1x128xf32>
    %250 = vector.extract_strided_slice %247 {offsets = [50, 0], sizes = [1, 128], strides = [1, 1]} : vector<94x128xf32> to vector<1x128xf32>
    %251 = vector.extract_strided_slice %247 {offsets = [75, 0], sizes = [1, 128], strides = [1, 1]} : vector<94x128xf32> to vector<1x128xf32>
    %252 = tpu.concatenate %248, %249, %250, %251 in 0 : vector<1x128xf32>, vector<1x128xf32>, vector<1x128xf32>, vector<1x128xf32> -> vector<4x128xf32>
    %cst_82 = arith.constant dense<0.000000e+00> : vector<128xf32>
    %253 = vector.multi_reduction <add>, %252, %cst_82 [0] : vector<4x128xf32> to vector<128xf32>
    %254 = vector.shape_cast %253 : vector<128xf32> to vector<1x128xf32>
    %cst_83 = arith.constant 2.500000e-01 : f32
    %255 = vector.broadcast %cst_83 : f32 to vector<1x128xf32>
    %256 = arith.mulf %254, %255 : vector<1x128xf32>
    %257 = vector.broadcast %256 : vector<1x128xf32> to vector<4x128xf32>
    %258 = arith.subf %252, %257 : vector<4x128xf32>
    %259 = arith.mulf %258, %258 : vector<4x128xf32>
    %cst_84 = arith.constant dense<0.000000e+00> : vector<128xf32>
    %260 = vector.multi_reduction <add>, %259, %cst_84 [0] : vector<4x128xf32> to vector<128xf32>
    %261 = vector.shape_cast %260 : vector<128xf32> to vector<1x128xf32>
    %cst_85 = arith.constant 2.500000e-01 : f32
    %262 = vector.broadcast %cst_85 : f32 to vector<1x128xf32>
    %263 = arith.mulf %261, %262 : vector<1x128xf32>
    %264 = vector.broadcast %256 : vector<1x128xf32> to vector<4x128xf32>
    %265 = arith.subf %252, %264 : vector<4x128xf32>
    %cst_86 = arith.constant 9.99999974E-6 : f32
    %266 = vector.broadcast %cst_86 : f32 to vector<1x128xf32>
    %267 = arith.addf %263, %266 : vector<1x128xf32>
    %268 = math.rsqrt %267 : vector<1x128xf32>
    %269 = vector.broadcast %268 : vector<1x128xf32> to vector<4x128xf32>
    %270 = arith.mulf %265, %269 : vector<4x128xf32>
    %c7 = arith.constant 7 : index
    %c0_87 = arith.constant 0 : index
    %271 = vector.load %arg4[%c7, %c0_87] : memref<9x128xf32, #tpu.memory_space<vmem>>, vector<1x128xf32>
    %272 = vector.broadcast %271 : vector<1x128xf32> to vector<4x128xf32>
    %273 = arith.mulf %270, %272 : vector<4x128xf32>
    %c8 = arith.constant 8 : index
    %c0_88 = arith.constant 0 : index
    %274 = vector.load %arg4[%c8, %c0_88] : memref<9x128xf32, #tpu.memory_space<vmem>>, vector<1x128xf32>
    %275 = vector.broadcast %274 : vector<1x128xf32> to vector<4x128xf32>
    %276 = arith.addf %273, %275 : vector<4x128xf32>
    %277 = tpu.iota {dimensions = array<i32: 1>} : vector<4x128xi32>
    %c10_i32 = arith.constant 10 : i32
    %278 = vector.broadcast %c10_i32 : i32 to vector<4x128xi32>
    %279 = arith.cmpi slt, %277, %278 : vector<4x128xi32>
    %cst_89 = arith.constant -1.000000e+30 : f32
    %280 = vector.broadcast %cst_89 : f32 to vector<4x128xf32>
    %281 = arith.select %279, %276, %280 : vector<4x128xi1>, vector<4x128xf32>
    %cst_90 = arith.constant dense<0xFF800000> : vector<4xf32>
    %282 = vector.multi_reduction <maximumf>, %281, %cst_90 [1] : vector<4x128xf32> to vector<4xf32>
    %283 = vector.shape_cast %282 : vector<4xf32> to vector<4x1xf32>
    %284 = vector.broadcast %283 : vector<4x1xf32> to vector<4x128xf32>
    %285 = arith.subf %281, %284 : vector<4x128xf32>
    %286 = math.exp %285 : vector<4x128xf32>
    %cst_91 = arith.constant dense<0.000000e+00> : vector<4xf32>
    %287 = vector.multi_reduction <add>, %286, %cst_91 [1] : vector<4x128xf32> to vector<4xf32>
    %288 = vector.shape_cast %287 : vector<4xf32> to vector<4x1xf32>
    %289 = tpu.reciprocal %288 {approx = true} : vector<4x1xf32> -> vector<4x1xf32>
    %290 = vector.broadcast %289 : vector<4x1xf32> to vector<4x128xf32>
    %291 = arith.mulf %286, %290 : vector<4x128xf32>
    %cst_92 = arith.constant 0.000000e+00 : f32
    %292 = vector.broadcast %cst_92 : f32 to vector<4x128xf32>
    %293 = tpu.concatenate %291, %292 in 0 : vector<4x128xf32>, vector<4x128xf32> -> vector<8x128xf32>
    %c0_93 = arith.constant 0 : index
    %c0_94 = arith.constant 0 : index
    %294 = vector.load %arg5[%c0_93, %c0_94] : memref<8x128xf32, #tpu.memory_space<vmem>>, vector<8x128xf32>
    tpu.vector_store %arg5[%c0_93, %c0_94], %293 {strides = array<i32>} : memref<8x128xf32, #tpu.memory_space<vmem>>, vector<8x128xf32>,
    return
  }
}

</mosaic_0001>

<bundles_post_ra>
// kernel: mnist_net_forward.1
= control target key start
LH: loop header
LB: loop body
LE: loop exit
PB: predicated region body
PF: predicated region fallthrough
CT: control target
= control target key end

     0   :  { %vm529_vm0 = vcmask 1043456   ;;  %vm530_vm1 = vcmask 1044480   ;;  %vm378_vm2 = vcmask 72704   ;;  %v6880_v1 = vmov 65535   ;;  %s9940_s1 = inlined_call_operand.vmem [shape: bf16[9,128], index: 1, kind: input, shape index: {}]   ;;  %s9941_s0 = inlined_call_operand.vmem [shape: bf16[800,9], index: 0, kind: input, shape index: {}]   ;;  %s9942_s4 = inlined_call_operand.vmem [shape: f32[9,128], index: 4, kind: input, shape index: {}]   ;;  %s9943_s2 = inlined_call_operand.vmem [shape: bf16[1152,128], index: 2, kind: input, shape index: {}]   ;;  %s9944_s3 = inlined_call_operand.vmem [shape: bf16[1152,128], index: 3, kind: input, shape index: {}]   ;;  %s9945_s5 = inlined_call_operand.vmem [shape: f32[8,128], index: 5, kind: output, shape index: {}]  }
   0x1   :  { %v6671_v0 = vld [vmem:[%s9940_s1] sm:$0x1f]   ;;  %v531_v2 = vsel %vm529_vm0, 4294967295, %v6880_v1  ;;  %v6673_v6 = vld [vmem:[%s9941_s0 + $0x8] sm:$0xff]   ;;  %v6674_v7 = vld [vmem:[%s9941_s0 + $0x10] sm:$0xff]   ;;  %vm1816_vm5 = vcmask 1046528  }
   0x2   :  { %v6672_v3 = vld [vmem:[%s9941_s0] sm:$0xff]   ;;  %v532_v4 = vsel %vm530_vm1, %v531_v2, 0  ;;  %v6675_v8 = vld [vmem:[%s9941_s0 + $0x18] sm:$0xff]   ;;  %v6677_v10 = vld [vmem:[%s9941_s0 + $0x28] sm:$0xff]   ;;  %vm1606_vm4 = vsmask.f32 7424 }
   0x3   :  { %v534_v5 = vand.u32 %v6671_v0, %v532_v4  ;;  %6407 = vmatprep.mubr.msk.bf16.mxu0 %vm378_vm2, %v6672_v3  ;;  %v6676_v9 = vld [vmem:[%s9941_s0 + $0x20] sm:$0xff]   ;;  %v6678_v11 = vld [vmem:[%s9941_s0 + $0x30] sm:$0xff]   ;;  %v6679_v12 = vld [vmem:[%s9941_s0 + $0x38] sm:$0xff]   ;;  %vm1879_vm6 = vsmask.f32 3328  ;;  %vm1984_vm9 = vcmask 1042432  }
   0x4   :  { %v6680_v13 = vld [vmem:[%s9941_s0 + $0x40] sm:$0xff]   ;;  %v6681_v14 = vld [vmem:[%s9941_s0 + $0x48] sm:$0xff]   ;;  %v6682_v15 = vld [vmem:[%s9941_s0 + $0x50] sm:$0xff]   ;;  %vm2047_vm7 = vsmask.f32 2304  ;;  %vm6883_vm10 = vmmov 0  }
   0x5   :  { %6405 = vmatprep.subr.bf16.mxu0 %v534_v5  ;;  %v6683_v16 = vld [vmem:[%s9941_s0 + $0x58] sm:$0xff]   ;;  %v6684_v17 = vld [vmem:[%s9941_s0 + $0x60] sm:$0xff]   ;;  %v6685_v18 = vld [vmem:[%s9941_s0 + $0x68] sm:$0xff]   ;;  %vm2157_vm8 = vsmask.f32 6400  ;;  %vm2267_vm11 = vcmask 1045504  }
   0x6   :  { %6406 = vmatpush3.bf16.msra.mxu0 %v534_v5  ;;  %v6686_v19 = vld [vmem:[%s9941_s0 + $0x70] sm:$0xff]   ;;  %v6687_v20 = vld [vmem:[%s9941_s0 + $0x78] sm:$0xff]   ;;  %v6688_v21 = vld [vmem:[%s9941_s0 + $0x80] sm:$0xff]   ;;  %vm4229_vm12 = vcmask 1040384   ;;  %vm4231_vm13 = vcmask 1041408  }
   0x7   :  { %v6689_v22 = vld [vmem:[%s9941_s0 + $0x88] sm:$0xff]   ;;  %v6690_v23 = vld [vmem:[%s9941_s0 + $0x90] sm:$0xff]   ;;  %v6691_v24 = vld [vmem:[%s9941_s0 + $0x98] sm:$0xff]   ;;  %vm4500_vm14 = vsmask.f32 5376 }
   0x8   :  { %v6692_v25 = vld [vmem:[%s9941_s0 + $0xa0] sm:$0xff]   ;;  %v6693_v26 = vld [vmem:[%s9941_s0 + $0xa8] sm:$0xff]   ;;  %v6694_v27 = vld [vmem:[%s9941_s0 + $0xb0] sm:$0xff]   ;;  %vm4556_vm15 = vsmask.f32 4352 }
   0x9   :  { %6408 = vmatmul.mubr.msk.bf16.vlgmr.msra.gmra.mxu0 %vm378_vm2, %v6673_v6  ;;  %v6695_v28 = vld [vmem:[%s9941_s0 + $0xb8] sm:$0xff]   ;;  %v6696_v29 = vld [vmem:[%s9941_s0 + $0xc0] sm:$0xff]   ;;  %v6697_v30 = vld [vmem:[%s9941_s0 + $0xc8] sm:$0xff]  }
   0xa   :  { %6411 = vmatprep.mubr.msk.bf16.mxu0 %vm378_vm2, %v6674_v7  ;;  %v6698_v31 = vld [vmem:[%s9941_s0 + $0xd0] sm:$0xff]   ;;  %v6699_v32 = vld [vmem:[%s9941_s0 + $0xd8] sm:$0xff]   ;;  %v6700_v33 = vld [vmem:[%s9941_s0 + $0xe0] sm:$0xff]  }
   0xb   :  { %v6701_v34 = vld [vmem:[%s9941_s0 + $0xe8] sm:$0xff]   ;;  %v6702_v35 = vld [vmem:[%s9941_s0 + $0xf0] sm:$0xff]   ;;  %v6703_v36 = vld [vmem:[%s9941_s0 + $0xf8] sm:$0xff]  }
   0xc   :  { %v6704_v37 = vld [vmem:[%s9941_s0 + $0x100] sm:$0xff]   ;;  %v6705_v38 = vld [vmem:[%s9941_s0 + $0x108] sm:$0xff]   ;;  %v6706_v39 = vld [vmem:[%s9941_s0 + $0x110] sm:$0xff]  }
   0xd   :  { %v6707_v40 = vld [vmem:[%s9941_s0 + $0x118] sm:$0xff]   ;;  %v6708_v41 = vld [vmem:[%s9941_s0 + $0x120] sm:$0xff]   ;;  %v6709_v42 = vld [vmem:[%s9941_s0 + $0x128] sm:$0xff]  }
   0xe   :  { %v6710_v43 = vld [vmem:[%s9941_s0 + $0x130] sm:$0xff]   ;;  %v6711_v44 = vld [vmem:[%s9941_s0 + $0x138] sm:$0xff]   ;;  %v6712_v45 = vld [vmem:[%s9941_s0 + $0x140] sm:$0xff]  }
   0xf   :  { %v6713_v46 = vld [vmem:[%s9941_s0 + $0x148] sm:$0xff]   ;;  %v6714_v47 = vld [vmem:[%s9941_s0 + $0x150] sm:$0xff]   ;;  %v6715_v48 = vld [vmem:[%s9941_s0 + $0x158] sm:$0xff]  }
  0x10   :  { %v6716_v49 = vld [vmem:[%s9941_s0 + $0x160] sm:$0xff]   ;;  %v6717_v50 = vld [vmem:[%s9941_s0 + $0x168] sm:$0xff]   ;;  %v6718_v51 = vld [vmem:[%s9941_s0 + $0x170] sm:$0xff]  }
  0x11   :  { %6412 = vmatmul.mubr.msk.bf16.gmra.mxu0 %vm378_vm2, %v6675_v8  ;;  %v6719_v52 = vld [vmem:[%s9941_s0 + $0x178] sm:$0xff]   ;;  %v6720_v53 = vld [vmem:[%s9941_s0 + $0x180] sm:$0xff]   ;;  %v6721_v54 = vld [vmem:[%s9941_s0 + $0x188] sm:$0xff]  }
  0x12   :  { %6415 = vmatprep.mubr.msk.bf16.mxu0 %vm378_vm2, %v6676_v9 }
  0x19   :  { %6416 = vmatmul.mubr.msk.bf16.gmra.mxu0 %vm378_vm2, %v6677_v10 }
  0x1a   :  { %6419 = vmatprep.mubr.msk.bf16.mxu0 %vm378_vm2, %v6678_v11 }
  0x21   :  { %6420 = vmatmul.mubr.msk.bf16.gmra.mxu0 %vm378_vm2, %v6679_v12 }
  0x22   :  { %6423 = vmatprep.mubr.msk.bf16.mxu0 %vm378_vm2, %v6680_v13 }
  0x29   :  { %6424 = vmatmul.mubr.msk.bf16.gmra.mxu0 %vm378_vm2, %v6681_v14 }
  0x2a   :  { %6427 = vmatprep.mubr.msk.bf16.mxu0 %vm378_vm2, %v6682_v15 }
  0x31   :  { %6428 = vmatmul.mubr.msk.bf16.gmra.mxu0 %vm378_vm2, %v6683_v16 }
  0x32   :  { %6431 = vmatprep.mubr.msk.bf16.mxu0 %vm378_vm2, %v6684_v17 }
  0x39   :  { %6432 = vmatmul.mubr.msk.bf16.gmra.mxu0 %vm378_vm2, %v6685_v18 }
  0x3a   :  { %6435 = vmatprep.mubr.msk.bf16.mxu0 %vm378_vm2, %v6686_v19 }
  0x41   :  { %6436 = vmatmul.mubr.msk.bf16.gmra.mxu0 %vm378_vm2, %v6687_v20 }
  0x42   :  { %6439 = vmatprep.mubr.msk.bf16.mxu0 %vm378_vm2, %v6688_v21 }
  0x49   :  { %6440 = vmatmul.mubr.msk.bf16.gmra.mxu0 %vm378_vm2, %v6689_v22 }
  0x4a   :  { %6443 = vmatprep.mubr.msk.bf16.mxu0 %vm378_vm2, %v6690_v23 }
  0x51   :  { %6444 = vmatmul.mubr.msk.bf16.gmra.mxu0 %vm378_vm2, %v6691_v24 }
  0x52   :  { %6447 = vmatprep.mubr.msk.bf16.mxu0 %vm378_vm2, %v6692_v25 }
  0x59   :  { %6448 = vmatmul.mubr.msk.bf16.gmra.mxu0 %vm378_vm2, %v6693_v26 }
  0x5a   :  { %6451 = vmatprep.mubr.msk.bf16.mxu0 %vm378_vm2, %v6694_v27 }
  0x61   :  { %6452 = vmatmul.mubr.msk.bf16.gmra.mxu0 %vm378_vm2, %v6695_v28 }
  0x62   :  { %6455 = vmatprep.mubr.msk.bf16.mxu0 %vm378_vm2, %v6696_v29 }
  0x69   :  { %6456 = vmatmul.mubr.msk.bf16.gmra.mxu0 %vm378_vm2, %v6697_v30 }
  0x6a   :  { %6459 = vmatprep.mubr.msk.bf16.mxu0 %vm378_vm2, %v6698_v31 }
  0x71   :  { %6460 = vmatmul.mubr.msk.bf16.gmra.mxu0 %vm378_vm2, %v6699_v32 }
  0x72   :  { %6463 = vmatprep.mubr.msk.bf16.mxu0 %vm378_vm2, %v6700_v33 }
  0x79   :  { %6464 = vmatmul.mubr.msk.bf16.gmra.mxu0 %vm378_vm2, %v6701_v34  ;;  %v9946_v34 = vmov 0.0  }
  0x7a   :  { %6467 = vmatprep.mubr.msk.bf16.mxu0 %vm378_vm2, %v6702_v35  ;;  %1449 = vst [vmem:[#allocation2] sm:$0xff] %v9946_v34  ;;  %1450 = vst [vmem:[#allocation2 + $0x8] sm:$0xff] %v9946_v34 }
  0x7b   :  { %1451 = vst [vmem:[#allocation2 + $0x10] sm:$0xff] %v9946_v34  ;;  %1452 = vst [vmem:[#allocation2 + $0x18] sm:$0xff] %v9946_v34 }
  0x7c   :  { %1453 = vst [vmem:[#allocation2 + $0x20] sm:$0xff] %v9946_v34  ;;  %1454 = vst [vmem:[#allocation2 + $0x28] sm:$0xff] %v9946_v34 }
  0x7d   :  { %1455 = vst [vmem:[#allocation2 + $0x30] sm:$0xff] %v9946_v34  ;;  %1456 = vst [vmem:[#allocation2 + $0x38] sm:$0xff] %v9946_v34 }
  0x7e   :  { %1457 = vst [vmem:[#allocation2 + $0x40] sm:$0xff] %v9946_v34  ;;  %1460 = vst [vmem:[#allocation2 + $0x58] sm:$0xff] %v9946_v34 }
  0x7f   :  { %1461 = vst [vmem:[#allocation2 + $0x60] sm:$0xff] %v9946_v34  ;;  %1462 = vst [vmem:[#allocation2 + $0x68] sm:$0xff] %v9946_v34 }
  0x80   :  { %1463 = vst [vmem:[#allocation2 + $0x70] sm:$0xff] %v9946_v34  ;;  %1464 = vst [vmem:[#allocation2 + $0x78] sm:$0xff] %v9946_v34 }
  0x81   :  { %6468 = vmatmul.mubr.msk.bf16.gmra.mxu0 %vm378_vm2, %v6703_v36  ;;  %1465 = vst [vmem:[#allocation2 + $0x80] sm:$0xff] %v9946_v34  ;;  %1466 = vst [vmem:[#allocation2 + $0x88] sm:$0xff] %v9946_v34 }
  0x82   :  { %6471 = vmatprep.mubr.msk.bf16.mxu0 %vm378_vm2, %v6704_v37  ;;  %1467 = vst [vmem:[#allocation2 + $0x90] sm:$0xff] %v9946_v34  ;;  %1470 = vst [vmem:[#allocation2 + $0xa8] sm:$0xff] %v9946_v34 }
  0x83   :  { %1471 = vst [vmem:[#allocation2 + $0xb0] sm:$0xff] %v9946_v34  ;;  %1472 = vst [vmem:[#allocation2 + $0xb8] sm:$0xff] %v9946_v34 }
  0x84   :  { %1473 = vst [vmem:[#allocation2 + $0xc0] sm:$0xff] %v9946_v34  ;;  %1474 = vst [vmem:[#allocation2 + $0xc8] sm:$0xff] %v9946_v34 }
  0x85   :  { %1475 = vst [vmem:[#allocation2 + $0xd0] sm:$0xff] %v9946_v34  ;;  %1476 = vst [vmem:[#allocation2 + $0xd8] sm:$0xff] %v9946_v34 }
  0x86   :  { %1477 = vst [vmem:[#allocation2 + $0xe0] sm:$0xff] %v9946_v34  ;;  %1478 = vst [vmem:[#allocation2 + $0xe8] sm:$0xff] %v9946_v34 }
  0x87   :  { %1480 = vst [vmem:[#allocation2 + $0xf8] sm:$0xff] %v9946_v34  ;;  %1481 = vst [vmem:[#allocation2 + $0x100] sm:$0xff] %v9946_v34 }
  0x88   :  { %1482 = vst [vmem:[#allocation2 + $0x108] sm:$0xff] %v9946_v34  ;;  %1483 = vst [vmem:[#allocation2 + $0x110] sm:$0xff] %v9946_v34 }
  0x89   :  { %6472 = vmatmul.mubr.msk.bf16.gmra.mxu0 %vm378_vm2, %v6705_v38  ;;  %1484 = vst [vmem:[#allocation2 + $0x118] sm:$0xff] %v9946_v34  ;;  %1485 = vst [vmem:[#allocation2 + $0x120] sm:$0xff] %v9946_v34 }
  0x8a   :  { %6475 = vmatprep.mubr.msk.bf16.mxu0 %vm378_vm2, %v6706_v39  ;;  %1486 = vst [vmem:[#allocation2 + $0x128] sm:$0xff] %v9946_v34  ;;  %1487 = vst [vmem:[#allocation2 + $0x130] sm:$0xff] %v9946_v34 }
  0x8b   :  { %1488 = vst [vmem:[#allocation2 + $0x138] sm:$0xff] %v9946_v34  ;;  %4361 = vst [vmem:[#allocation3] sm:$0xff] %v9946_v34 }
  0x8c   :  { %4362 = vst [vmem:[#allocation3 + $0x8] sm:$0xff] %v9946_v34  ;;  %4363 = vst [vmem:[#allocation3 + $0x10] sm:$0xff] %v9946_v34 }
  0x8d   :  { %4364 = vst [vmem:[#allocation3 + $0x18] sm:$0xff] %v9946_v34  ;;  %4365 = vst [vmem:[#allocation3 + $0x20] sm:$0xff] %v9946_v34 }
  0x8e   :  { %4366 = vst [vmem:[#allocation3 + $0x28] sm:$0xff] %v9946_v34  ;;  %4368 = vst [vmem:[#allocation3 + $0x38] sm:$0xff] %v9946_v34 }
  0x8f   :  { %4369 = vst [vmem:[#allocation3 + $0x40] sm:$0xff] %v9946_v34  ;;  %4371 = vst [vmem:[#allocation3 + $0x50] sm:$0xff] %v9946_v34 }
  0x90   :  { %4372 = vst [vmem:[#allocation3 + $0x58] sm:$0xff] %v9946_v34 }
  0x91   :  { %6476 = vmatmul.mubr.msk.bf16.gmra.mxu0 %vm378_vm2, %v6707_v40 }
  0x92   :  { %6479 = vmatprep.mubr.msk.bf16.mxu0 %vm378_vm2, %v6708_v41 }
  0x99   :  { %6480 = vmatmul.mubr.msk.bf16.gmra.mxu0 %vm378_vm2, %v6709_v42 }
  0x9a   :  { %6483 = vmatprep.mubr.msk.bf16.mxu0 %vm378_vm2, %v6710_v43 }
  0xa1   :  { %6484 = vmatmul.mubr.msk.bf16.gmra.mxu0 %vm378_vm2, %v6711_v44 }
  0xa2   :  { %6487 = vmatprep.mubr.msk.bf16.mxu0 %vm378_vm2, %v6712_v45 }
  0xa9   :  { %6488 = vmatmul.mubr.msk.bf16.gmra.mxu0 %vm378_vm2, %v6713_v46 }
  0xaa   :  { %6491 = vmatprep.mubr.msk.bf16.mxu0 %vm378_vm2, %v6714_v47 }
  0xb1   :  { %6492 = vmatmul.mubr.msk.bf16.gmra.mxu0 %vm378_vm2, %v6715_v48 }
  0xb2   :  { %6495 = vmatprep.mubr.msk.bf16.mxu0 %vm378_vm2, %v6716_v49 }
  0xb9   :  { %6496 = vmatmul.mubr.msk.bf16.gmra.mxu0 %vm378_vm2, %v6717_v50 }
  0xba   :  { %6499 = vmatprep.mubr.msk.bf16.mxu0 %vm378_vm2, %v6718_v51 }
  0xc1   :  { %6500 = vmatmul.mubr.msk.bf16.gmra.mxu0 %vm378_vm2, %v6719_v52 }
  0xc2   :  { %6503 = vmatprep.mubr.msk.bf16.mxu0 %vm378_vm2, %v6720_v53 }
  0xc9   :  { %v7118_v55 = vpop.f32.mrf.mxu0  ;;  %6504 = vmatmul.mubr.msk.bf16.gmra.mxu0 %vm378_vm2, %v6721_v54 }
  0xcb   :  { %v7121_v56 = vpop.f32.mrf.mxu0 }
  0xcd   :  { %v7123_v57 = vpop.f32.mrf.mxu0 }
  0xcf   :  { %v7125_v58 = vpop.f32.mrf.mxu0 }
  0xd1   :  { %v7127_v59 = vpop.f32.mrf.mxu0 }
  0xd3   :  { %v7129_v60 = vpop.f32.mrf.mxu0 }
  0xd5   :  { %v7131_v61 = vpop.f32.mrf.mxu0 }
  0xd7   :  { %v7133_v62 = vpop.f32.mrf.mxu0 }
  0xd9   :  { %v7135_v63 = vpop.f32.mrf.mxu0 }
  0xdb   :  { %v7137_v0 = vpop.f32.mrf.mxu0 }
  0xdd   :  { %v7139_v1 = vpop.f32.mrf.mxu0 }
  0xdf   :  { %v7141_v2 = vpop.f32.mrf.mxu0 }
  0xe1   :  { %v7143_v3 = vpop.f32.mrf.mxu0 }
  0xe3   :  { %v7145_v4 = vpop.f32.mrf.mxu0 }
  0xe5   :  { %v7147_v5 = vpop.f32.mrf.mxu0 }
  0xe7   :  { %v7149_v6 = vpop.f32.mrf.mxu0 }
  0xe9   :  { %v7151_v7 = vpop.f32.mrf.mxu0 }
  0xea   :  { %9987 = vst [vmem:[#allocation4_spill] sm:$0xff] %v7151_v7 }
  0xeb   :  { %v7153_v8 = vpop.f32.mrf.mxu0 }
  0xed   :  { %v7155_v9 = vpop.f32.mrf.mxu0 }
  0xee   :  { %9988 = vst [vmem:[#allocation5_spill] sm:$0xff] %v7155_v9 }
  0xef   :  { %v7157_v10 = vpop.f32.mrf.mxu0 }
  0xf1   :  { %v7159_v11 = vpop.f32.mrf.mxu0 }
  0xf2   :  { %9989 = vst [vmem:[#allocation6_spill] sm:$0xff] %v7159_v11 }
  0xf3   :  { %v7161_v12 = vpop.f32.mrf.mxu0 }
  0xf4   :  { %9990 = vst [vmem:[#allocation7_spill] sm:$0xff] %v7161_v12 }
  0xf5   :  { %v7163_v13 = vpop.f32.mrf.mxu0 }
  0xf6   :  { %9991 = vst [vmem:[#allocation8_spill] sm:$0xff] %v7163_v13 }
  0xf7   :  { %v7165_v14 = vpop.f32.mrf.mxu0 }
  0xf8   :  { %9992 = vst [vmem:[#allocation9_spill] sm:$0xff] %v7165_v14 }
  0xf9   :  { %v7167_v15 = vpop.f32.mrf.mxu0 }
  0xfb   :  { %v7169_v16 = vpop.f32.mrf.mxu0 }
  0xfc   :  { %9993 = vst [vmem:[#allocation10_spill] sm:$0xff] %v7169_v16 }
  0xfd   :  { %v7171_v17 = vpop.f32.mrf.mxu0 }
  0xff   :  { %v7175_v19 = vpop.f32.mrf.mxu0 }
 0x101   :  { %v7177_v20 = vpop.f32.mrf.mxu0 }
 0x103   :  { %v7179_v21 = vpop.f32.mrf.mxu0 }
 0x105   :  { %v7183_v23 = vpop.f32.mrf.mxu0 }
 0x107   :  { %v7187_v25 = vpop.f32.mrf.mxu0 }
 0x109   :  { %v7189_v26 = vpop.f32.mrf.mxu0 }
 0x10b   :  { %v7191_v27 = vpop.f32.mrf.mxu0 }
 0x10d   :  { %v7195_v29 = vpop.f32.mrf.mxu0 }
 0x10f   :  { %v7199_v31 = vpop.f32.mrf.mxu0 }
 0x111   :  { %v7201_v32 = vpop.f32.mrf.mxu0 }
 0x113   :  { %v7203_v33 = vpop.f32.mrf.mxu0 }
 0x115   :  { %v7252_v36 = vpop.f32.mrf.mxu0 }
 0x117   :  { %v7256_v38 = vpop.f32.mrf.mxu0 }
 0x119   :  { %v7258_v39 = vpop.f32.mrf.mxu0 }
 0x11b   :  { %v7260_v40 = vpop.f32.mrf.mxu0 }
 0x11d   :  { %v7264_v42 = vpop.f32.mrf.mxu0 }
 0x11e   :  { %9994 = vst [vmem:[#allocation11_spill] sm:$0xff] %v7264_v42 }
 0x11f   :  { %v7268_v44 = vpop.f32.mrf.mxu0 }
 0x121   :  { %v7270_v45 = vpop.f32.mrf.mxu0 }
 0x122   :  { %9995 = vst [vmem:[#allocation12_spill] sm:$0xff] %v7270_v45 }
 0x123   :  { %v7272_v46 = vpop.f32.mrf.mxu0 }
 0x124   :  { %9996 = vst [vmem:[#allocation13_spill] sm:$0xff] %v7272_v46  ;;  %v969_v46 = vmax.f32 %v7121_v56, %v7175_v19  ;;  %v10009_v56 = vmax.f32 %v7123_v57, %v7179_v21 }
 0x125   :  { %v7276_v48 = vpop.f32.mrf.mxu0 }
 0x126   :  { %9997 = vst [vmem:[#allocation14_spill] sm:$0xff] %v7276_v48 }
 0x127   :  { %v7280_v50 = vpop.f32.mrf.mxu0 }
 0x128   :  { %9998 = vst [vmem:[#allocation15_spill] sm:$0xff] %v7280_v50 }
 0x129   :  { %v6457_v51 = vpop.f32.mrf.mxu0 }
 0x12a   :  { %v994_v12 = vmax.f32 %v969_v46, %v6457_v51 }
 0x12b   :  { %v7282_v52 = vpop.f32.mrf.mxu0 }
 0x12c   :  { %9999 = vst [vmem:[#allocation16_spill] sm:$0xff] %v7282_v52 }
 0x12d   :  { %v6458_v54 = vpop.f32.mrf.mxu0 }
 0x12f   :  { %v7286_v34 = vpop.f32.mrf.mxu0 }
 0x130   :  { %10000 = vst [vmem:[#allocation17_spill] sm:$0xff] %v7286_v34 }
 0x131   :  { %v6461_v43 = vpop.f32.mrf.mxu0 }
 0x133   :  { %v778_v37 = vpop.f32.mrf.mxu0 }
 0x135   :  { %v6462_v41 = vpop.f32.mrf.mxu0 }
 0x137   :  { %v781_v47 = vpop.f32.mrf.mxu0 }
 0x138   :  { %v997_v19 = vmax.f32 %v10009_v56, %v781_v47 }
 0x139   :  { %v7288_v30 = vpop.f32.mrf.mxu0 }
 0x13b   :  { %v7290_v35 = vpop.f32.mrf.mxu0 }
 0x13d   :  { %v7292_v49 = vpop.f32.mrf.mxu0 }
 0x13f   :  { %v797_v24 = vpop.f32.mrf.mxu0 }
 0x141   :  { %v7294_v28 = vpop.f32.mrf.mxu0 }
 0x143   :  { %v7296_v18 = vpop.f32.mrf.mxu0 }
 0x145   :  { %v7298_v22 = vpop.f32.mrf.mxu0 }
 0x147   :  { %v7300_v53 = vpop.f32.mrf.mxu0 }
 0x149   :  { %v7302_v48 = vpop.f32.mrf.mxu0 }
 0x14b   :  { %v7304_v11 = vpop.f32.mrf.mxu0 }
 0x14d   :  { %v7306_v52 = vpop.f32.mrf.mxu0 }
 0x14e   :  { %10001 = vst [vmem:[#allocation18_spill] sm:$0xff] %v7306_v52 }
 0x14f   :  { %v7308_v13 = vpop.f32.mrf.mxu0 }
 0x151   :  { %v7310_v16 = vpop.f32.mrf.mxu0 }
 0x152   :  { %10002 = vst [vmem:[#allocation19_spill] sm:$0xff] %v7310_v16  ;;  %v970_v16 = vmax.f32 %v7125_v58, %v7167_v15  ;;  %v10010_v15 = vmax.f32 %v7118_v55, %v7171_v17  ;;  %v6722_v55 = vld [vmem:[%s9943_s2 + $0x38] sm:$0xff]  }
 0x153   :  { %v7312_v34 = vpop.f32.mrf.mxu0 }
 0x154   :  { %10003 = vst [vmem:[#allocation20_spill] sm:$0xff] %v7312_v34  ;;  %v996_v51 = vmax.f32 %v10010_v15, %v778_v37  ;;  %v6723_v37 = vld [vmem:[%s9943_s2 + $0xb8] sm:$0xff]  }
 0x155   :  { %v7314_v14 = vpop.f32.mrf.mxu0 }
 0x156   :  { %10004 = vst [vmem:[#allocation21_spill] sm:$0xff] %v7314_v14  ;;  %v7331_v14 = vld [vmem:[%s9942_s4] ss:$0 sm:$0xff] }
 0x157   :  { %v7316_v45 = vpop.f32.mrf.mxu0 }
 0x158   :  { %10005 = vst [vmem:[#allocation22_spill] sm:$0xff] %v7316_v45 }
 0x159   :  { %v7318_v42 = vpop.f32.mrf.mxu0 }
 0x15a   :  { %10006 = vst [vmem:[#allocation23_spill] sm:$0xff] %v7318_v42  ;;  %v995_v42 = vmax.f32 %v970_v16, %v6458_v54 }
 0x15b   :  { %v7320_v7 = vpop.f32.mrf.mxu0 }
 0x15c   :  { %10007 = vst [vmem:[#allocation24_spill] sm:$0xff] %v7320_v7  ;;  %v973_v7 = vmax.f32 %v7129_v60, %v7187_v25  ;;  %v974_v60 = vmax.f32 %v7133_v62, %v7177_v20 }
 0x15d   :  { %v6482_v9 = vpop.f32.mrf.mxu0 }
 0x15e   :  { %v1019_v52 = vmax.f32 %v994_v12, %v6482_v9  ;;  %v998_v12 = vmax.f32 %v973_v7, %v6461_v43 }
 0x15f   :  { %v7324_v50 = vpop.f32.mrf.mxu0 }
 0x160   :  { %10008 = vst [vmem:[#allocation25_spill] sm:$0xff] %v7324_v50  ;;  %v7339_v46 = vadd.f32 %v7331_v14, %v1019_v52 }
 0x161   :  { %v6485_v34 = vpop.f32.mrf.mxu0 }
 0x162   :  { %v1022_v50 = vmax.f32 %v997_v19, %v6485_v34  ;;  %v1074_v57 = vmax.f32 %v7339_v46, 0.0  ;;  %v9970_v34 = vmov 0  }
 0x163   :  { %v874_v45 = vpop.f32.mrf.mxu0  ;;  %2906 = vmatprep.subr.bf16.mxu1 %v9970_v34  ;;  %3101 = vmatprep.subr.bf16.mxu0 %v9970_v34 }
 0x164   :  { %v1020_v58 = vmax.f32 %v995_v42, %v874_v45  ;;  %v999_v45 = vmax.f32 %v974_v60, %v6462_v41  ;;  %v7355_v17 = vadd.f32 %v7331_v14, %v1022_v50  ;;  %v977_v41 = vmax.f32 %v7137_v0, %v7199_v31  ;;  %2907 = vmatpush1.bf16.msra.mxu1 %v6722_v55 }
 0x165   :  { %v6486_v9 = vpop.f32.mrf.mxu0  ;;  %v10011_v50 = vmax.f32 %v7131_v61, %v7191_v27  ;;  %3102 = vmatpush1.bf16.msra.mxu0 %v6723_v37  ;;  %2908 = vmatprep.subr.bf16.mxu1 %v9970_v34  ;;  %v10012_v0 = vmax.f32 %v7127_v59, %v7183_v23  ;;  %v6724_v61 = vld [vmem:[%s9943_s2 + $0x30] sm:$0xff]   ;;  %v978_v23 = vmax.f32 %v7141_v2, %v7189_v26  ;;  %v6727_v2 = vld [vmem:[%s9943_s2 + $0xa8] sm:$0xff]  }
 0x166   :  { %v7345_v16 = vadd.f32 %v7331_v14, %v1020_v58  ;;  %v1023_v47 = vmax.f32 %v998_v12, %v6486_v9  ;;  %v1002_v58 = vmax.f32 %v977_v41, %v7288_v30  ;;  %3103 = vmatprep.subr.bf16.mxu0 %v9970_v34  ;;  %v1077_v27 = vmax.f32 %v7355_v17, 0.0 }
 0x167   :  { %v877_v25 = vpop.f32.mrf.mxu0  ;;  %v1001_v52 = vmax.f32 %v10011_v50, %v797_v24  ;;  %v1000_v31 = vmax.f32 %v10012_v0, %v7290_v35  ;;  %v6725_v24 = vld [vmem:[%s9943_s2 + $0xb0] sm:$0xff]   ;;  %v10013_v37 = vmax.f32 %v7139_v1, %v7203_v33  ;;  %v10014_v1 = vmax.f32 %v7135_v63, %v7195_v29  ;;  %v6729_v0 = vld [vmem:[%s9943_s2 + $0xa0] sm:$0xff]  }
 0x168   :  { %v1075_v21 = vmax.f32 %v7345_v16, 0.0  ;;  %v1021_v42 = vmax.f32 %v996_v51, %v877_v25  ;;  %v7375_v54 = vadd.f32 %v7331_v14, %v1023_v47  ;;  %2909 = vmatpush1.bf16.msra.mxu1 %v6724_v61  ;;  %v1003_v47 = vmax.f32 %v978_v23, %v7292_v49 }
 0x169   :  { %v6489_v7 = vpop.f32.mrf.mxu0  ;;  %3104 = vmatpush1.bf16.msra.mxu0 %v6725_v24  ;;  %2910 = vmatprep.subr.bf16.mxu1 %v9970_v34  ;;  %v1005_v41 = vmax.f32 %v10013_v37, %v7300_v53  ;;  %v1004_v33 = vmax.f32 %v10014_v1, %v7296_v18  ;;  %v6728_v53 = vld [vmem:[%s9943_s2 + $0x20] sm:$0xff]   ;;  %v982_v18 = vmax.f32 %v7149_v6, %v7201_v32  ;;  %v6731_v6 = vld [vmem:[%s9943_s2 + $0x98] sm:$0xff]  }
 0x16a   :  { %v1225_v62 = vadd.f32 %v1075_v21, %v1074_v57  ;;  %v7362_v20 = vadd.f32 %v7331_v14, %v1021_v42  ;;  %v1026_v12 = vmax.f32 %v1001_v52, %v6489_v7  ;;  %v1078_v15 = vmax.f32 %v7375_v54, 0.0  ;;  %3105 = vmatprep.subr.bf16.mxu0 %v9970_v34 }
 0x16b   :  { %v890_v43 = vpop.f32.mrf.mxu0  ;;  %v1007_v23 = vmax.f32 %v982_v18, %v7298_v22 }
 0x16c   :  { %v1076_v56 = vmax.f32 %v7362_v20, 0.0  ;;  %v1024_v19 = vmax.f32 %v999_v45, %v890_v43  ;;  %v6726_v45 = vld [vmem:[%s9943_s2 + $0x28] sm:$0xff]   ;;  %v7412_v26 = vadd.f32 %v7331_v14, %v1026_v12 }
 0x16d   :  { %v6490_v9 = vpop.f32.mrf.mxu0  ;;  %2911 = vmatpush1.bf16.msra.mxu1 %v6726_v45  ;;  %3106 = vmatpush1.bf16.msra.mxu0 %v6727_v2 }
 0x16e   :  { %v1226_v30 = vadd.f32 %v1225_v62, %v1076_v56  ;;  %v7395_v59 = vadd.f32 %v7331_v14, %v1024_v19  ;;  %v1027_v60 = vmax.f32 %v1002_v58, %v6490_v9  ;;  %v981_v62 = vmax.f32 %v7145_v4, %v7256_v38  ;;  %2912 = vmatprep.subr.bf16.mxu1 %v9970_v34 }
 0x16f   :  { %v893_v35 = vpop.f32.mrf.mxu0  ;;  %3107 = vmatprep.subr.bf16.mxu0 %v9970_v34 }
 0x170   :  { %v1227_v51 = vadd.f32 %v1226_v30, %v1077_v27  ;;  %v1025_v25 = vmax.f32 %v1000_v31, %v893_v35  ;;  %v1079_v7 = vmax.f32 %v7395_v59, 0.0  ;;  %v7429_v52 = vadd.f32 %v7331_v14, %v1027_v60 }
 0x171   :  { %v6493_v42 = vpop.f32.mrf.mxu0  ;;  %v1006_v4 = vmax.f32 %v981_v62, %v7294_v28  ;;  %v1081_v31 = vmax.f32 %v7412_v26, 0.0  ;;  %2913 = vmatpush1.bf16.msra.mxu1 %v6728_v53  ;;  %3108 = vmatpush1.bf16.msra.mxu0 %v6729_v0  ;;  %v10017_v53 = vld [vmem:[#allocation18_spill] sm:$0xff] }
 0x172   :  { %v1228_v55 = vadd.f32 %v1227_v51, %v1078_v15  ;;  %v7418_v49 = vadd.f32 %v7331_v14, %v1025_v25  ;;  %v1030_v9 = vmax.f32 %v1005_v41, %v6493_v42  ;;  %v1082_v61 = vmax.f32 %v7429_v52, 0.0  ;;  %2914 = vmatprep.subr.bf16.mxu1 %v9970_v34  ;;  %v6730_v51 = vld [vmem:[%s9943_s2 + $0x18] sm:$0xff]   ;;  %3109 = vmatprep.subr.bf16.mxu0 %v9970_v34 }
 0x173   :  { %v906_v43 = vpop.f32.mrf.mxu0  ;;  %v10015_v42 = vmax.f32 %v7147_v5, %v7260_v40  ;;  %v10016_v5 = vmax.f32 %v7143_v3, %v7252_v36 }
 0x174   :  { %v1229_v50 = vadd.f32 %v1228_v55, %v1079_v7  ;;  %v1080_v19 = vmax.f32 %v7418_v49, 0.0  ;;  %v1028_v58 = vmax.f32 %v1003_v47, %v906_v43  ;;  %v7466_v32 = vadd.f32 %v7331_v14, %v1030_v9  ;;  %v6733_v43 = vld [vmem:[%s9943_s2 + $0x90] sm:$0xff]   ;;  %v6734_v9 = vld [vmem:[%s9943_s2 + $0x8] sm:$0xff]  }
 0x175   :  { %v6494_v38 = vpop.f32.mrf.mxu0  ;;  %v985_v47 = vmax.f32 %v7153_v8, %v7268_v44  ;;  %v1009_v45 = vmax.f32 %v10015_v42, %v7308_v13  ;;  %2915 = vmatpush1.bf16.msra.mxu1 %v6730_v51  ;;  %3110 = vmatpush1.bf16.msra.mxu0 %v6731_v6  ;;  %v1008_v13 = vmax.f32 %v10016_v5, %v7304_v11  ;;  %v6732_v44 = vld [vmem:[%s9943_s2 + $0x10] sm:$0xff]  }
 0x176   :  { %v1230_v28 = vadd.f32 %v1229_v50, %v1080_v19  ;;  %v7449_v63 = vadd.f32 %v7331_v14, %v1028_v58  ;;  %v1031_v30 = vmax.f32 %v1006_v4, %v6494_v38  ;;  %2916 = vmatprep.subr.bf16.mxu1 %v9970_v34  ;;  %3111 = vmatprep.subr.bf16.mxu0 %v9970_v34  ;;  %v1085_v50 = vmax.f32 %v7466_v32, 0.0  ;;  %v10021_v51 = vld [vmem:[#allocation5_spill] sm:$0xff] }
 0x177   :  { %v909_v29 = vpop.f32.mrf.mxu0  ;;  %v1010_v8 = vmax.f32 %v985_v47, %v7302_v48  ;;  %v986_v11 = vmax.f32 %v7157_v10, %v7258_v39  ;;  %v6735_v10 = vld [vmem:[%s9943_s2 + $0x88] sm:$0xff]   ;;  %v10022_v6 = vld [vmem:[#allocation13_spill] sm:$0xff] }
 0x178   :  { %v1231_v24 = vadd.f32 %v1230_v28, %v1081_v31  ;;  %v1029_v12 = vmax.f32 %v1004_v33, %v909_v29  ;;  %v1083_v60 = vmax.f32 %v7449_v63, 0.0  ;;  %v7483_v62 = vadd.f32 %v7331_v14, %v1031_v30  ;;  %v10018_v30 = vld [vmem:[#allocation15_spill] sm:$0xff] }
 0x179   :  { %v6497_v35 = vpop.f32.mrf.mxu0  ;;  %2917 = vmatpush1.bf16.msra.mxu1 %v6732_v44  ;;  %3112 = vmatpush1.bf16.msra.mxu0 %v6733_v43  ;;  %v1011_v0 = vmax.f32 %v986_v11, %v10017_v53  ;;  %v10027_v44 = vld [vmem:[#allocation11_spill] sm:$0xff]  ;;  %v9955_v11 = vlaneseq }
 0x17a   :  { %v1232_v25 = vadd.f32 %v1231_v24, %v1082_v61  ;;  %v7472_v22 = vadd.f32 %v7331_v14, %v1029_v12  ;;  %v1034_v58 = vmax.f32 %v1009_v45, %v6497_v35  ;;  %v1086_v4 = vmax.f32 %v7483_v62, 0.0  ;;  %2918 = vmatprep.subr.bf16.mxu1 %v9970_v34  ;;  %3113 = vmatprep.subr.bf16.mxu0 %v9970_v34  ;;  %v10019_v12 = vld [vmem:[#allocation7_spill] sm:$0xff]  ;;  %v10020_v35 = vld [vmem:[#allocation22_spill] sm:$0xff] }
 0x17b   :  { %v922_v2 = vpop.f32.mrf.mxu0 }
 0x17c   :  { %v1233_v55 = vadd.f32 %v1232_v25, %v1083_v60  ;;  %v1084_v37 = vmax.f32 %v7472_v22, 0.0  ;;  %v1032_v41 = vmax.f32 %v1007_v23, %v922_v2  ;;  %v7520_v39 = vadd.f32 %v7331_v14, %v1034_v58 }
 0x17d   :  { %v6498_v40 = vpop.f32.mrf.mxu0  ;;  %v989_v23 = vmax.f32 %v10019_v12, %v10018_v30  ;;  %v10023_v25 = vmax.f32 %v10021_v51, %v10022_v6  ;;  %2919 = vmatpush1.bf16.msra.mxu1 %v6734_v9  ;;  %3114 = vmatpush1.bf16.msra.mxu0 %v6735_v10  ;;  %v10029_v9 = vld [vmem:[#allocation12_spill] sm:$0xff]  ;;  %v10030_v10 = vld [vmem:[#allocation9_spill] sm:$0xff] }
 0x17e   :  { %v1234_v48 = vadd.f32 %v1233_v55, %v1084_v37  ;;  %v7503_v3 = vadd.f32 %v7331_v14, %v1032_v41  ;;  %v1035_v33 = vmax.f32 %v1010_v8, %v6498_v40  ;;  %2920 = vmatprep.subr.bf16.mxu1 %v9970_v34  ;;  %v10024_v8 = vld [vmem:[#allocation19_spill] sm:$0xff]  ;;  %v10026_v40 = vld [vmem:[#allocation4_spill] sm:$0xff]  ;;  %3115 = vmatprep.subr.bf16.mxu0 %v9970_v34  ;;  %v10031_v6 = vld [vmem:[#allocation17_spill] sm:$0xff] }
 0x17f   :  { %v925_v36 = vpop.f32.mrf.mxu0  ;;  %v1013_v47 = vmax.f32 %v10023_v25, %v10020_v35  ;;  %v1014_v5 = vmax.f32 %v989_v23, %v10024_v8  ;;  %v10028_v43 = vmax.f32 %v10026_v40, %v10027_v44  ;;  %v6738_v8 = vld [vmem:[%s9943_s2 + $0x78] sm:$0xff]  }
 0x180   :  { %v1235_v1 = vadd.f32 %v1234_v48, %v1085_v50  ;;  %v1033_v38 = vmax.f32 %v1008_v13, %v925_v36  ;;  %v1087_v18 = vmax.f32 %v7503_v3, 0.0  ;;  %v7537_v2 = vadd.f32 %v7331_v14, %v1035_v33  ;;  %v10025_v13 = vld [vmem:[#allocation20_spill] sm:$0xff]  ;;  %v6736_v36 = vld [vmem:[%s9943_s2] sm:$0xff]  }
 0x181   :  { %v6501_v28 = vpop.f32.mrf.mxu0  ;;  %v1012_v48 = vmax.f32 %v10028_v43, %v10025_v13  ;;  %v1089_v33 = vmax.f32 %v7520_v39, 0.0  ;;  %2921 = vmatpush1.bf16.msra.mxu1 %v6736_v36  ;;  %v10035_v36 = vld [vmem:[#allocation25_spill] sm:$0xff] }
 0x182   :  { %v1236_v29 = vadd.f32 %v1235_v1, %v1086_v4  ;;  %v7526_v24 = vadd.f32 %v7331_v14, %v1033_v38  ;;  %v6737_v1 = vld [vmem:[%s9943_s2 + $0x80] sm:$0xff]   ;;  %v1038_v53 = vmax.f32 %v1013_v47, %v6501_v28  ;;  %v1090_v12 = vmax.f32 %v7537_v2, 0.0  ;;  %2922 = vmatprep.subr.bf16.mxu1 %v9970_v34  ;;  %v10032_v28 = vld [vmem:[#allocation10_spill] sm:$0xff]  ;;  %v10033_v47 = vld [vmem:[#allocation21_spill] sm:$0xff] }
 0x183   :  { %v938_v42 = vpop.f32.mrf.mxu0  ;;  %3116 = vmatpush1.bf16.msra.mxu0 %v6737_v1  ;;  %v993_v25 = vmax.f32 %v10032_v28, %v10031_v6  ;;  %v10036_v1 = vld [vmem:[#allocation8_spill] sm:$0xff]  ;;  %v10040_v28 = vld [vmem:[#allocation6_spill] sm:$0xff] }
 0x184   :  { %v1237_v45 = vadd.f32 %v1236_v29, %v1087_v18  ;;  %v1088_v55 = vmax.f32 %v7526_v24, 0.0  ;;  %v1036_v41 = vmax.f32 %v1011_v0, %v938_v42  ;;  %v990_v29 = vmax.f32 %v10030_v10, %v10029_v9  ;;  %3117 = vmatprep.subr.bf16.mxu0 %v9970_v34 }
 0x185   :  { %v6502_v58 = vpop.f32.mrf.mxu0  ;;  %v7577_v13 = vadd.f32 %v7331_v14, %v1038_v53  ;;  %2923 = vmatpush2.bf16.msra.mxu1 %v6738_v8 }
 0x186   :  { %v1238_v38 = vadd.f32 %v1237_v45, %v1088_v55  ;;  %v7557_v0 = vadd.f32 %v7331_v14, %v1036_v41  ;;  %v1039_v35 = vmax.f32 %v1014_v5, %v6502_v58  ;;  %v1015_v42 = vmax.f32 %v990_v29, %v10033_v47  ;;  %v6739_v5 = vld [vmem:[%s9943_s2 + $0xf8] sm:$0xff]   ;;  %2924 = vmatprep.subr.bf16.mxu1 %v9970_v34 }
 0x187   :  { %v941_v30 = vpop.f32.mrf.mxu0  ;;  %v1100_v41 = vshrl.u32 %v9955_v11, 7  ;;  %3118 = vmatpush2.bf16.msra.mxu0 %v6739_v5 }
 0x188   :  { %v1239_v23 = vadd.f32 %v1238_v38, %v1089_v33  ;;  %v1037_v51 = vmax.f32 %v1012_v48, %v941_v30  ;;  %v1091_v40 = vmax.f32 %v7557_v0, 0.0  ;;  %v10034_v48 = vld [vmem:[#allocation23_spill] sm:$0xff]  ;;  %v10037_v38 = vld [vmem:[#allocation16_spill] sm:$0xff]  ;;  %v7593_v30 = vadd.f32 %v7331_v14, %v1039_v35  ;;  %3119 = vmatprep.subr.bf16.mxu0 %v9970_v34  ;;  %v6741_v35 = vld [vmem:[%s9943_s2 + $0xf0] sm:$0xff]  }
 0x189   :  { %v6505_v45 = vpop.f32.mrf.mxu0  ;;  %v1018_v58 = vmax.f32 %v993_v25, %v10034_v48  ;;  %v10038_v9 = vmax.f32 %v10036_v1, %v10037_v38  ;;  %v10041_v25 = vld [vmem:[#allocation14_spill] sm:$0xff]  ;;  %v1124_v8 = vadd.s32 192, %v1100_v41 }
 0x18a   :  { %v1240_v44 = vadd.f32 %v1239_v23, %v1090_v12  ;;  %v7583_v43 = vadd.f32 %v7331_v14, %v1037_v51  ;;  %v10039_v51 = vld [vmem:[#allocation24_spill] sm:$0xff]  ;;  %v10042_v47 = vmax.f32 %v10040_v28, %v10041_v25 }
 0x18b   :  { %v1017_v10 = vmax.f32 %v10038_v9, %v10035_v36  ;;  %v954_v29 = vpop.f32.mrf.mxu0  ;;  %v1094_v9 = vmax.f32 %v7593_v30, 0.0  ;;  %3120 = vmatpush2.bf16.msra.mxu0 %v6741_v35  ;;  %vm1149_vm3 = vcmp.lt.s32.totalorder %v1124_v8, 196  ;;  %v10043_v35 = vmov 0.0   ;;  %v6745_v8 = vld [vmem:[%s9943_s2 + $0xe0] sm:$0xff]  }
 0x18c   :  { %v1241_v53 = vadd.f32 %v1240_v44, %v1091_v40  ;;  %v1092_v23 = vmax.f32 %v7583_v43, 0.0  ;;  %v1040_v6 = vmax.f32 %v1015_v42, %v954_v29  ;;  %v1016_v48 = vmax.f32 %v10042_v47, %v10039_v51  ;;  %v6740_v44 = vld [vmem:[%s9943_s2 + $0x70] sm:$0xff]   ;;  %3121 = vmatprep.subr.bf16.mxu0 %v9970_v34 }
 0x18d   :  { %v1042_v36 = vmax.f32 %v1017_v10, %v6505_v45  ;;  %v6506_v1 = vpop.f32.mrf.mxu0  ;;  %v1093_v42 = vmax.f32 %v7577_v13, 0.0  ;;  %2925 = vmatpush2.bf16.msra.mxu1 %v6740_v44 }
 0x18e   :  { %v1242_v5 = vadd.f32 %v1241_v53, %v1092_v23  ;;  %v7612_v38 = vadd.f32 %v7331_v14, %v1040_v6  ;;  %v1043_v45 = vmax.f32 %v1018_v58, %v6506_v1  ;;  %2926 = vmatprep.subr.bf16.mxu1 %v9970_v34  ;;  %v6742_v58 = vld [vmem:[%s9943_s2 + $0x68] sm:$0xff]  }
 0x18f   :  { %v957_v41 = vpop.f32.mrf.mxu0  ;;  %v7622_v53 = vadd.f32 %v7331_v14, %v1042_v36  ;;  %v6743_v6 = vld [vmem:[%s9943_s2 + $0xe8] sm:$0xff]  }
 0x190   :  { %v1243_v10 = vadd.f32 %v1242_v5, %v1093_v42  ;;  %v7618_v29 = vadd.f32 %v7331_v14, %v1043_v45  ;;  %v1041_v51 = vmax.f32 %v1016_v48, %v957_v41  ;;  %v1095_v28 = vmax.f32 %v7612_v38, 0.0  ;;  %3122 = vmatpush2.bf16.msra.mxu0 %v6743_v6 }
 0x191   :  { %2927 = vmatpush2.bf16.msra.mxu1 %v6742_v58  ;;  %v1097_v44 = vmax.f32 %v7622_v53, 0.0  ;;  %v7644_v5 = vsel %vm1149_vm3, 1.0, %v10043_v35  ;;  %3123 = vmatprep.subr.bf16.mxu0 %v9970_v34  ;;  %v6747_v58 = vld [vmem:[%s9943_s2 + $0xd8] sm:$0xff]   ;;  %v6749_v35 = vld [vmem:[%s9943_s2 + $0xd0] sm:$0xff]  }
 0x192   :  { %v1244_v25 = vadd.f32 %v1243_v10, %v1094_v9  ;;  %v7635_v47 = vadd.f32 %v7331_v14, %v1041_v51  ;;  %v1098_v36 = vmax.f32 %v7618_v29, 0.0  ;;  %2928 = vmatprep.subr.bf16.mxu1 %v9970_v34  ;;  %v6744_v14 = vld [vmem:[%s9943_s2 + $0x60] sm:$0xff]   ;;  %v6746_v51 = vld [vmem:[%s9943_s2 + $0x58] sm:$0xff]  }
 0x194   :  { %v1245_v48 = vadd.f32 %v1244_v25, %v1095_v28  ;;  %v1096_v1 = vmax.f32 %v7635_v47, 0.0  ;;  %v1224_v41 = vmul.f32 %v7644_v5, %v1098_v36  ;;  %3124 = vmatpush2.bf16.msra.mxu0 %v6745_v8  ;;  %v6748_v25 = vld [vmem:[%s9943_s2 + $0x50] sm:$0xff]  }
 0x195   :  { %2929 = vmatpush2.bf16.msra.mxu1 %v6744_v14  ;;  %3125 = vmatprep.subr.bf16.mxu0 %v9970_v34  ;;  %v6750_v14 = vld [vmem:[%s9943_s2 + $0x48] sm:$0xff]  }
 0x196   :  { %v1246_v45 = vadd.f32 %v1245_v48, %v1096_v1  ;;  %2930 = vmatprep.subr.bf16.mxu1 %v9970_v34 }
 0x198   :  { %v1247_v10 = vadd.f32 %v1246_v45, %v1097_v44  ;;  %3126 = vmatpush2.bf16.msra.mxu0 %v6747_v58 }
 0x199   :  { %2931 = vmatpush2.bf16.msra.mxu1 %v6746_v51  ;;  %3127 = vmatprep.subr.bf16.mxu0 %v9970_v34 }
 0x19a   :  { %v1248_v6 = vadd.f32 %v1247_v10, %v1224_v41  ;;  %2932 = vmatprep.subr.bf16.mxu1 %v9970_v34  ;;  %v6751_v41 = vld [vmem:[%s9943_s2 + $0xc8] sm:$0xff]   ;;  %v6752_v10 = vld [vmem:[%s9943_s2 + $0x40] sm:$0xff]  }
 0x19c   :  { %v1249_v48 = vrot.slane %v1248_v6, 4  ;;  %3128 = vmatpush2.bf16.msra.mxu0 %v6749_v35 }
 0x19d   :  { %2933 = vmatpush2.bf16.msra.mxu1 %v6748_v25  ;;  %3129 = vmatprep.subr.bf16.mxu0 %v9970_v34 }
 0x19e   :  { %v1250_v8 = vadd.f32 %v1249_v48, %v1248_v6  ;;  %2934 = vmatprep.subr.bf16.mxu1 %v9970_v34  ;;  %v6753_v6 = vld [vmem:[%s9943_s2 + $0xc0] sm:$0xff]  }
 0x1a0   :  { %v1251_v45 = vrot.slane %v1250_v8, 2  ;;  %3130 = vmatpush2.bf16.msra.mxu0 %v6751_v41 }
 0x1a1   :  { %2935 = vmatpush2.bf16.msra.mxu1 %v6750_v14  ;;  %3131 = vmatprep.subr.bf16.mxu0 %v9970_v34 }
 0x1a2   :  { %v1252_v51 = vadd.f32 %v1251_v45, %v1250_v8  ;;  %2936 = vmatprep.subr.bf16.mxu1 %v9970_v34 }
 0x1a4   :  { %v1253_v58 = vrot.slane %v1252_v51, 1  ;;  %3132 = vmatpush2.bf16.msra.mxu0 %v6753_v6 }
 0x1a5   :  { %2937 = vmatpush2.bf16.msra.mxu1 %v6752_v10  ;;  %3491 = vmatprep.subr.bf16.mxu0 %v9970_v34 }
 0x1a6   :  { %v1254_v25 = vadd.f32 %v1253_v58, %v1252_v51  ;;  %3296 = vmatprep.subr.bf16.mxu1 %v9970_v34 }
 0x1a8   :  { %v1255_v48 = vmul.f32 0.0051020407, %v1254_v25 }
 0x1aa   :  { %v7696_v35 = vsub.f32 %v1074_v57, %v1255_v48  ;;  %v7700_v14 = vsub.f32 %v1075_v21, %v1255_v48  ;;  %v7704_v8 = vsub.f32 %v1076_v56, %v1255_v48  ;;  %v7708_v45 = vsub.f32 %v1077_v27, %v1255_v48 }
 0x1ab   :  { %v7712_v41 = vsub.f32 %v1078_v15, %v1255_v48  ;;  %v7716_v46 = vsub.f32 %v1079_v7, %v1255_v48  ;;  %v7720_v16 = vsub.f32 %v1080_v19, %v1255_v48  ;;  %v7724_v57 = vsub.f32 %v1081_v31, %v1255_v48 }
 0x1ac   :  { %v7728_v21 = vsub.f32 %v1082_v61, %v1255_v48  ;;  %v7732_v17 = vsub.f32 %v1083_v60, %v1255_v48  ;;  %v7736_v20 = vsub.f32 %v1084_v37, %v1255_v48  ;;  %v7740_v54 = vsub.f32 %v1085_v50, %v1255_v48 }
 0x1ad   :  { %v7744_v56 = vsub.f32 %v1086_v4, %v1255_v48  ;;  %v7748_v27 = vsub.f32 %v1087_v18, %v1255_v48  ;;  %v7752_v59 = vsub.f32 %v1088_v55, %v1255_v48  ;;  %v7756_v15 = vsub.f32 %v1089_v33, %v1255_v48 }
 0x1ae   :  { %v7760_v26 = vsub.f32 %v1090_v12, %v1255_v48  ;;  %v7764_v7 = vsub.f32 %v1091_v40, %v1255_v48  ;;  %v7768_v49 = vsub.f32 %v1092_v23, %v1255_v48  ;;  %v7772_v52 = vsub.f32 %v1093_v42, %v1255_v48 }
 0x1af   :  { %v7776_v19 = vsub.f32 %v1094_v9, %v1255_v48  ;;  %v7780_v31 = vsub.f32 %v1095_v28, %v1255_v48  ;;  %v7784_v63 = vsub.f32 %v1096_v1, %v1255_v48  ;;  %v7788_v61 = vsub.f32 %v1097_v44, %v1255_v48 }
 0x1b0   :  { %v7792_v32 = vsub.f32 %v1098_v36, %v1255_v48  ;;  %v1306_v22 = vmul.f32 %v7696_v35, %v7696_v35  ;;  %v1307_v62 = vmul.f32 %v7700_v14, %v7700_v14  ;;  %v1308_v37 = vmul.f32 %v7704_v8, %v7704_v8 }
 0x1b1   :  { %v1309_v3 = vmul.f32 %v7708_v45, %v7708_v45  ;;  %v1310_v39 = vmul.f32 %v7712_v41, %v7712_v41  ;;  %v1311_v24 = vmul.f32 %v7716_v46, %v7716_v46  ;;  %v1312_v55 = vmul.f32 %v7720_v16, %v7720_v16 }
 0x1b2   :  { %v1305_v60 = vmul.f32 %v7644_v5, %v7792_v32  ;;  %v1331_v50 = vadd.f32 %v1307_v62, %v1306_v22  ;;  %v1313_v0 = vmul.f32 %v7724_v57, %v7724_v57  ;;  %v1314_v13 = vmul.f32 %v7728_v21, %v7728_v21 }
 0x1b3   :  { %v1315_v43 = vmul.f32 %v7732_v17, %v7732_v17  ;;  %v1316_v23 = vmul.f32 %v7736_v20, %v7736_v20  ;;  %v1317_v38 = vmul.f32 %v7740_v54, %v7740_v54  ;;  %v1318_v29 = vmul.f32 %v7744_v56, %v7744_v56 }
 0x1b4   :  { %v1332_v4 = vadd.f32 %v1331_v50, %v1308_v37  ;;  %v1319_v28 = vmul.f32 %v7748_v27, %v7748_v27  ;;  %v1320_v36 = vmul.f32 %v7752_v59, %v7752_v59  ;;  %v1321_v44 = vmul.f32 %v7756_v15, %v7756_v15 }
 0x1b5   :  { %v1322_v10 = vmul.f32 %v7760_v26, %v7760_v26  ;;  %v1323_v58 = vmul.f32 %v7764_v7, %v7764_v7  ;;  %v1324_v25 = vmul.f32 %v7768_v49, %v7768_v49  ;;  %v1325_v22 = vmul.f32 %v7772_v52, %v7772_v52 }
 0x1b6   :  { %v1333_v18 = vadd.f32 %v1332_v4, %v1309_v3  ;;  %v1326_v37 = vmul.f32 %v7776_v19, %v7776_v19  ;;  %v1327_v3 = vmul.f32 %v7780_v31, %v7780_v31 }
 0x1b8   :  { %v1334_v2 = vadd.f32 %v1333_v18, %v1310_v39  ;;  %v1328_v39 = vmul.f32 %v7784_v63, %v7784_v63 }
 0x1ba   :  { %v1335_v33 = vadd.f32 %v1334_v2, %v1311_v24  ;;  %v1329_v24 = vmul.f32 %v7788_v61, %v7788_v61 }
 0x1bc   :  { %v1336_v12 = vadd.f32 %v1335_v33, %v1312_v55  ;;  %v1330_v55 = vmul.f32 %v1305_v60, %v1305_v60 }
 0x1be   :  { %v1337_v40 = vadd.f32 %v1336_v12, %v1313_v0 }
 0x1c0   :  { %v1338_v30 = vadd.f32 %v1337_v40, %v1314_v13 }
 0x1c2   :  { %v1339_v42 = vadd.f32 %v1338_v30, %v1315_v43 }
 0x1c4   :  { %v1340_v9 = vadd.f32 %v1339_v42, %v1316_v23 }
 0x1c6   :  { %v1341_v53 = vadd.f32 %v1340_v9, %v1317_v38 }
 0x1c8   :  { %v1342_v47 = vadd.f32 %v1341_v53, %v1318_v29 }
 0x1ca   :  { %v1343_v1 = vadd.f32 %v1342_v47, %v1319_v28 }
 0x1cc   :  { %v1344_v5 = vadd.f32 %v1343_v1, %v1320_v36 }
 0x1ce   :  { %v1345_v51 = vadd.f32 %v1344_v5, %v1321_v44 }
 0x1d0   :  { %v1346_v6 = vadd.f32 %v1345_v51, %v1322_v10 }
 0x1d2   :  { %v1347_v48 = vadd.f32 %v1346_v6, %v1323_v58 }
 0x1d4   :  { %v1348_v62 = vadd.f32 %v1347_v48, %v1324_v25 }
 0x1d6   :  { %v1349_v50 = vadd.f32 %v1348_v62, %v1325_v22 }
 0x1d8   :  { %v1350_v4 = vadd.f32 %v1349_v50, %v1326_v37 }
 0x1da   :  { %v1351_v18 = vadd.f32 %v1350_v4, %v1327_v3 }
 0x1dc   :  { %v1352_v2 = vadd.f32 %v1351_v18, %v1328_v39 }
 0x1de   :  { %v1353_v33 = vadd.f32 %v1352_v2, %v1329_v24 }
 0x1e0   :  { %v1354_v0 = vadd.f32 %v1353_v33, %v1330_v55 }
 0x1e2   :  { %v1355_v12 = vrot.slane %v1354_v0, 4 }
 0x1e4   :  { %v1356_v13 = vadd.f32 %v1355_v12, %v1354_v0 }
 0x1e6   :  { %v1357_v40 = vrot.slane %v1356_v13, 2 }
 0x1e8   :  { %v1358_v43 = vadd.f32 %v1357_v40, %v1356_v13 }
 0x1ea   :  { %v1359_v30 = vrot.slane %v1358_v43, 1 }
 0x1ec   :  { %v1360_v23 = vadd.f32 %v1359_v30, %v1358_v43 }
 0x1ee   :  { %v1361_v42 = vmul.f32 0.0051020407, %v1360_v23 }
 0x1f0   :  { %v1362_v38 = vadd.f32 1e-05, %v1361_v42 }
 0x1f2   :  { %6866 = vrsqrt.f32 %v1362_v38 }
 0x1ff   :  { %v6867_v9 = vpop.eup %6866 }
 0x200   :  { %v1364_v29 = vmul.f32 %v6867_v9, %v7696_v35  ;;  %v1365_v53 = vmul.f32 %v6867_v9, %v7700_v14  ;;  %v1366_v28 = vmul.f32 %v6867_v9, %v7704_v8  ;;  %v1367_v60 = vmul.f32 %v6867_v9, %v7708_v45 }
 0x201   :  { %v1368_v47 = vmul.f32 %v6867_v9, %v7712_v41  ;;  %v1369_v36 = vmul.f32 %v6867_v9, %v7716_v46  ;;  %v1370_v1 = vmul.f32 %v6867_v9, %v7720_v16  ;;  %v1371_v44 = vmul.f32 %v6867_v9, %v7724_v57  ;;  %v5926_v16 = vld [vmem:[%s9942_s4 + $0x1] ss:$0 sm:$0xff] }
 0x202   :  { %v1372_v5 = vmul.f32 %v6867_v9, %v7728_v21  ;;  %v1373_v10 = vmul.f32 %v6867_v9, %v7732_v17  ;;  %v1374_v35 = vmul.f32 %v6867_v9, %v7736_v20  ;;  %v1375_v14 = vmul.f32 %v6867_v9, %v7740_v54 }
 0x203   :  { %v1376_v8 = vmul.f32 %v6867_v9, %v7744_v56  ;;  %v1377_v45 = vmul.f32 %v6867_v9, %v7748_v27  ;;  %v1378_v41 = vmul.f32 %v6867_v9, %v7752_v59  ;;  %v1379_v46 = vmul.f32 %v6867_v9, %v7756_v15 }
 0x204   :  { %v1380_v57 = vmul.f32 %v6867_v9, %v7760_v26  ;;  %v1381_v21 = vmul.f32 %v6867_v9, %v7764_v7  ;;  %v1382_v17 = vmul.f32 %v6867_v9, %v7768_v49  ;;  %v1383_v20 = vmul.f32 %v6867_v9, %v7772_v52 }
 0x205   :  { %v1384_v54 = vmul.f32 %v6867_v9, %v7776_v19  ;;  %v1385_v56 = vmul.f32 %v6867_v9, %v7780_v31  ;;  %v1386_v27 = vmul.f32 %v6867_v9, %v7784_v63  ;;  %v1387_v59 = vmul.f32 %v6867_v9, %v7788_v61  ;;  %v7877_v61 = vld [vmem:[%s9942_s4 + $0x2] ss:$0 sm:$0xff] }
 0x206   :  { %v1388_v15 = vmul.f32 %v6867_v9, %v7792_v32  ;;  %v7872_v51 = vmul.f32 %v5926_v16, %v1364_v29  ;;  %v1395_v58 = vmul.f32 %v5926_v16, %v1365_v53  ;;  %v1396_v26 = vmul.f32 %v5926_v16, %v1366_v28 }
 0x207   :  { %v1397_v6 = vmul.f32 %v5926_v16, %v1367_v60  ;;  %v1398_v7 = vmul.f32 %v5926_v16, %v1368_v47  ;;  %v1399_v25 = vmul.f32 %v5926_v16, %v1369_v36  ;;  %v1400_v49 = vmul.f32 %v5926_v16, %v1370_v1 }
 0x208   :  { %v1401_v48 = vmul.f32 %v5926_v16, %v1371_v44  ;;  %v1402_v52 = vmul.f32 %v5926_v16, %v1372_v5  ;;  %v1403_v22 = vmul.f32 %v5926_v16, %v1373_v10  ;;  %v1404_v19 = vmul.f32 %v5926_v16, %v1374_v35 }
 0x209   :  { %v1405_v62 = vmul.f32 %v5926_v16, %v1375_v14  ;;  %v1406_v31 = vmul.f32 %v5926_v16, %v1376_v8  ;;  %v1407_v37 = vmul.f32 %v5926_v16, %v1377_v45  ;;  %v1408_v63 = vmul.f32 %v5926_v16, %v1378_v41 }
 0x20a   :  { %v1409_v32 = vmul.f32 %v5926_v16, %v1379_v46  ;;  %v1410_v50 = vmul.f32 %v5926_v16, %v1380_v57  ;;  %v1411_v3 = vmul.f32 %v5926_v16, %v1381_v21  ;;  %v1412_v4 = vmul.f32 %v5926_v16, %v1382_v17 }
 0x20b   :  { %v1413_v39 = vmul.f32 %v5926_v16, %v1383_v20  ;;  %v1414_v18 = vmul.f32 %v5926_v16, %v1384_v54  ;;  %v1415_v24 = vmul.f32 %v5926_v16, %v1385_v56  ;;  %v1416_v2 = vmul.f32 %v5926_v16, %v1386_v27 }
 0x20c   :  { %v1417_v55 = vmul.f32 %v5926_v16, %v1387_v59  ;;  %v1418_v33 = vmul.f32 %v5926_v16, %v1388_v15  ;;  %v1425_v0 = vadd.f32 %v7877_v61, %v1395_v58  ;;  %v1426_v12 = vadd.f32 %v7877_v61, %v1396_v26  ;;  %v7913_v15 = vld [vmem:[#allocation2] sm:$0xff] }
 0x20d   :  { %v1427_v13 = vadd.f32 %v7877_v61, %v1397_v6  ;;  %v1428_v40 = vadd.f32 %v7877_v61, %v1398_v7  ;;  %v1429_v43 = vadd.f32 %v7877_v61, %v1399_v25  ;;  %v1430_v30 = vadd.f32 %v7877_v61, %v1400_v49 }
 0x20e   :  { %v1431_v23 = vadd.f32 %v7877_v61, %v1401_v48  ;;  %v1432_v42 = vadd.f32 %v7877_v61, %v1402_v52  ;;  %v1433_v38 = vadd.f32 %v7877_v61, %v1403_v22  ;;  %v1434_v9 = vadd.f32 %v7877_v61, %v1404_v19  ;;  %1497 = vst [vmem:[#allocation2 + $0x20] sm:$0xe0] %v1426_v12 }
 0x20f   :  { %1494 = vst [vmem:[#allocation2 + $0x14] sm:$0x3f] %v1425_v0  ;;  %1495 = vst [vmem:[#allocation2 + $0x16] sm:$0xc0] %v1425_v0  ;;  %v1435_v29 = vadd.f32 %v7877_v61, %v1405_v62  ;;  %v1436_v53 = vadd.f32 %v7877_v61, %v1406_v31  ;;  %v1437_v28 = vadd.f32 %v7877_v61, %v1407_v37 }
 0x210   :  { %1496 = vst [vmem:[#allocation2 + $0x1e] sm:$0x1f] %v1426_v12  ;;  %v1438_v60 = vadd.f32 %v7877_v61, %v1408_v63  ;;  %1498 = vst [vmem:[#allocation2 + $0x28] ss:$6 sps:$4 sm:$0xff] %v1427_v13   ;;  %v1439_v47 = vadd.f32 %v7877_v61, %v1409_v32  ;;  %v1440_v36 = vadd.f32 %v7877_v61, %v1410_v50 }
 0x211   :  { %1500 = vst [vmem:[#allocation2 + $0x32] sm:$0x7] %v1428_v40  ;;  %1501 = vst [vmem:[#allocation2 + $0x34] sm:$0xf8] %v1428_v40  ;;  %v1441_v1 = vadd.f32 %v7877_v61, %v1411_v3  ;;  %v1442_v44 = vadd.f32 %v7877_v61, %v1412_v4  ;;  %v1443_v5 = vadd.f32 %v7877_v61, %v1413_v39  ;;  %v6765_v40 = vld [vmem:[%s9943_s2 + $0x1b8] sm:$0xff]  }
 0x212   :  { %1502 = vst [vmem:[#allocation2 + $0x3c] sm:$0x3] %v1429_v43  ;;  %1503 = vst [vmem:[#allocation2 + $0x3e] sm:$0xfc] %v1429_v43  ;;  %v1444_v10 = vadd.f32 %v7877_v61, %v1414_v18  ;;  %v1445_v35 = vadd.f32 %v7877_v61, %v1415_v24  ;;  %v1446_v14 = vadd.f32 %v7877_v61, %v1416_v2  ;;  %v6754_v18 = vld [vmem:[%s9943_s2 + $0x138] sm:$0xff]  }
 0x213   :  { %1504 = vst [vmem:[#allocation2 + $0x46] sm:$0x1] %v1430_v30  ;;  %1505 = vst [vmem:[#allocation2 + $0x5a] sm:$0xfe] %v1430_v30  ;;  %v1447_v8 = vadd.f32 %v7877_v61, %v1417_v55  ;;  %v1448_v45 = vadd.f32 %v7877_v61, %v1418_v33  ;;  %v1424_v41 = vadd.f32 %v7877_v61, %v7872_v51 }
 0x214   :  { %1506 = vst [vmem:[#allocation2 + $0x64] sm:$0x7f] %v1431_v23  ;;  %1507 = vst [vmem:[#allocation2 + $0x66] sm:$0x80] %v1431_v23 }
 0x215   :  { %1508 = vst [vmem:[#allocation2 + $0x6e] sm:$0x3f] %v1432_v42  ;;  %1509 = vst [vmem:[#allocation2 + $0x70] sm:$0xc0] %v1432_v42 }
 0x216   :  { %1510 = vst [vmem:[#allocation2 + $0x78] sm:$0x1f] %v1433_v38  ;;  %1511 = vst [vmem:[#allocation2 + $0x7a] sm:$0xe0] %v1433_v38 }
 0x217   :  { %1512 = vst [vmem:[#allocation2 + $0x82] ss:$6 sps:$4 sm:$0xff] %v1434_v9   ;;  %1514 = vst [vmem:[#allocation2 + $0x8c] sm:$0x7] %v1435_v29  ;;  %v1545_v46 = vld [vmem:[#allocation2 + $0x20] sm:$0xff]  ;;  %v1546_v16 = vld [vmem:[#allocation2 + $0x28] sm:$0xff] }
 0x218   :  { %1515 = vst [vmem:[#allocation2 + $0x8e] sm:$0xf8] %v1435_v29  ;;  %1516 = vst [vmem:[#allocation2 + $0x96] sm:$0x3] %v1436_v53  ;;  %v7905_v57 = vpack.c.bf16 %v1546_v16, %v1545_v46  ;;  %v1544_v21 = vld [vmem:[#allocation2 + $0x18] sm:$0xff]  ;;  %v1547_v17 = vld [vmem:[#allocation2 + $0x30] sm:$0xff] }
 0x219   :  { %1517 = vst [vmem:[#allocation2 + $0xaa] sm:$0xfc] %v1436_v53  ;;  %1518 = vst [vmem:[#allocation2 + $0xb2] sm:$0x1] %v1437_v28  ;;  %v1548_v20 = vld [vmem:[#allocation2 + $0x38] sm:$0xff]  ;;  %v6755_v29 = vld [vmem:[%s9943_s2 + $0x130] sm:$0xff]  }
 0x21a   :  { %1519 = vst [vmem:[#allocation2 + $0xb4] sm:$0xfe] %v1437_v28  ;;  %1520 = vst [vmem:[#allocation2 + $0xbe] sm:$0x7f] %v1438_v60  ;;  %v7908_v27 = vshll.u32 %v7905_v57, 16  ;;  %v7911_v59 = vshrl.u32 %v7905_v57, 16  ;;  %v7920_v26 = vpack.c.bf16 %v1548_v20, %v1547_v17 }
 0x21b   :  { %1521 = vst [vmem:[#allocation2 + $0xc0] sm:$0x80] %v1438_v60  ;;  %1522 = vst [vmem:[#allocation2 + $0xc8] sm:$0x3f] %v1439_v47  ;;  %v1549_v33 = vld [vmem:[#allocation2 + $0x40] sm:$0xff]  ;;  %v6766_v53 = vld [vmem:[%s9943_s2 + $0x1b0] sm:$0xff]  }
 0x21c   :  { %1523 = vst [vmem:[#allocation2 + $0xca] sm:$0xc0] %v1439_v47  ;;  %1524 = vst [vmem:[#allocation2 + $0xd2] sm:$0x1f] %v1440_v36  ;;  %v1887_v48 = vrot.slane %v7911_v59, 4  ;;  %v1888_v52 = vrot.slane %v7908_v27, 5  ;;  %v7964_v30 = vpack.c.bf16 %v7913_v15, %v1549_v33 }
 0x21d   :  { %1525 = vst [vmem:[#allocation2 + $0xd4] sm:$0xe0] %v1440_v36  ;;  %1526 = vst [vmem:[#allocation2 + $0xdc] ss:$6 sps:$4 sm:$0xff] %v1441_v1   ;;  %v7943_v61 = vshll.u32 %v7920_v26, 16  ;;  %v7953_v55 = vshrl.u32 %v7920_v26, 16 }
 0x21e   :  { %1528 = vst [vmem:[#allocation2 + $0xe6] sm:$0x7] %v1442_v44  ;;  %1529 = vst [vmem:[#allocation2 + $0xfa] sm:$0xf8] %v1442_v44  ;;  %v1889_v2 = vor.u32 %v1888_v52, %v1887_v48  ;;  %v1625_v13 = vrot.slane %v7908_v27, 1  ;;  %v1820_v28 = vrot.slane %v7905_v57, 1 }
 0x21f   :  { %1530 = vst [vmem:[#allocation2 + $0x102] sm:$0x3] %v1443_v5  ;;  %1531 = vst [vmem:[#allocation2 + $0x104] sm:$0xfc] %v1443_v5  ;;  %v1891_v38 = vrot.slane %v7953_v55, 4  ;;  %v1892_v9 = vrot.slane %v7943_v61, 5 }
 0x220   :  { %1532 = vst [vmem:[#allocation2 + $0x10c] sm:$0x1] %v1444_v10  ;;  %1533 = vst [vmem:[#allocation2 + $0x10e] sm:$0xfe] %v1444_v10  ;;  %v1629_v60 = vor.u32 %v7911_v59, %v1625_v13  ;;  %v7981_v36 = vshll.u32 %v7964_v30, 16  ;;  %v7984_v1 = vshrl.u32 %v7964_v30, 16 }
 0x221   :  { %1534 = vst [vmem:[#allocation2 + $0x118] sm:$0x7f] %v1445_v35  ;;  %1535 = vst [vmem:[#allocation2 + $0x11a] sm:$0x80] %v1445_v35  ;;  %v1893_v47 = vor.u32 %v1892_v9, %v1891_v38  ;;  %v1633_v44 = vrot.slane %v7943_v61, 1  ;;  %v6756_v5 = vld [vmem:[%s9943_s2 + $0x128] sm:$0xff]  }
 0x222   :  { %1536 = vst [vmem:[#allocation2 + $0x122] sm:$0x3f] %v1446_v14  ;;  %1537 = vst [vmem:[#allocation2 + $0x124] sm:$0xc0] %v1446_v14  ;;  %v1552_v10 = vld [vmem:[#allocation2 + $0x58] sm:$0xff]  ;;  %v1896_v46 = vrot.slane %v7981_v36, 5 }
 0x223   :  { %1538 = vst [vmem:[#allocation2 + $0x12c] sm:$0x1f] %v1447_v8  ;;  %1539 = vst [vmem:[#allocation2 + $0x12e] sm:$0xe0] %v1447_v8  ;;  %v1634_v14 = vsel %vm1606_vm4, %v1629_v60, %v1633_v44  ;;  %v6767_v8 = vld [vmem:[%s9943_s2 + $0x1a8] sm:$0xff]   ;;  %v8004_v16 = vpack.c.bf16 %v1552_v10, %v7913_v15  ;;  %v1822_v17 = vrot.slane %v7920_v26, 1  ;;  %v1637_v20 = vor.u32 %v7953_v55, %v1633_v44 }
 0x224   :  { %1540 = vst [vmem:[#allocation2 + $0x136] sm:$0xf] %v1448_v45  ;;  %1492 = vst [vmem:[#allocation2 + $0xa] sm:$0x7f] %v1424_v41  ;;  %v1894_v45 = vsel %vm1879_vm6, %v1889_v2, %v1893_v47  ;;  %v1824_v33 = vrot.slane %v7964_v30, 1  ;;  %v6760_v9 = vld [vmem:[%s9943_s2 + $0x108] sm:$0xff]  }
 0x225   :  { %1493 = vst [vmem:[#allocation2 + $0xc] sm:$0x80] %v1424_v41  ;;  %10044 = vst [vmem:[#allocation18_spill] sm:$0xff] %v7905_v57  ;;  %v1895_v41 = vrot.slane %v7984_v1, 4  ;;  %v8017_v48 = vshll.u32 %v8004_v16, 16  ;;  %v8020_v52 = vshrl.u32 %v8004_v16, 16 }
 0x226   :  { %10047 = vst [vmem:[#allocation22_spill] sm:$0xff] %v7920_v26  ;;  %10048 = vst [vmem:[#allocation5_spill] sm:$0xff] %v7964_v30 }
 0x227   :  { %10050 = vst [vmem:[#allocation19_spill] sm:$0xff] %v8004_v16  ;;  %v1649_v38 = vrot.slane %v8017_v48, 1 }
 0x22b   :  { %v1542_v54 = vld [vmem:[#allocation2 + $0x8] sm:$0xff] }
 0x22c   :  { %v1543_v56 = vld [vmem:[#allocation2 + $0x10] sm:$0xff]  ;;  %v7916_v51 = vpack.c.bf16 %v1542_v54, %v7913_v15  ;;  %v6769_v54 = vld [vmem:[%s9943_s2 + $0x1a0] sm:$0xff]  }
 0x22d   :  { %v7918_v58 = vpack.c.bf16 %v1544_v21, %v1543_v56  ;;  %v6757_v21 = vld [vmem:[%s9943_s2 + $0x120] sm:$0xff]   ;;  %v1897_v56 = vor.u32 %v1896_v46, %v1895_v41  ;;  %v1562_v46 = vld [vmem:[#allocation2 + $0xa8] sm:$0xff] }
 0x22e   :  { %10045 = vst [vmem:[#allocation15_spill] sm:$0xff] %v7916_v51  ;;  %v7923_v6 = vshrl.u32 %v7916_v51, 16  ;;  %v7926_v7 = vshll.u32 %v7916_v51, 16  ;;  %v1817_v3 = vrot.slane %v7916_v51, 1 }
 0x22f   :  { %10046 = vst [vmem:[#allocation7_spill] sm:$0xff] %v7918_v58  ;;  %v7929_v25 = vshll.u32 %v7918_v58, 16  ;;  %v7932_v49 = vshrl.u32 %v7918_v58, 16  ;;  %v1818_v4 = vrot.slane %v7918_v58, 1 }
 0x230   :  { %v1612_v22 = vrot.slane %v7926_v7, 1  ;;  %v1880_v62 = vrot.slane %v7923_v6, 4  ;;  %v1881_v31 = vrot.slane %v7926_v7, 5 }
 0x231   :  { %v1617_v19 = vrot.slane %v7929_v25, 1  ;;  %v1883_v37 = vrot.slane %v7932_v49, 4  ;;  %v1884_v63 = vrot.slane %v7929_v25, 5  ;;  %v1819_v43 = vsel %vm1816_vm5, %v1817_v3, %v1818_v4 }
 0x232   :  { %v1613_v32 = vor.u32 %v1612_v22, %v7923_v6  ;;  %v1882_v50 = vor.u32 %v1881_v31, %v1880_v62  ;;  %v7993_v35 = vsel %vm1816_vm5, %v1818_v4, %v1820_v28  ;;  %v1641_v22 = vrot.slane %v7981_v36, 1  ;;  %v1554_v62 = vld [vmem:[#allocation2 + $0x68] sm:$0xff]  ;;  %v6758_v31 = vld [vmem:[%s9943_s2 + $0x118] sm:$0xff]  }
 0x233   :  { %v1885_v39 = vor.u32 %v1884_v63, %v1883_v37  ;;  %v1621_v24 = vor.u32 %v7932_v49, %v1617_v19  ;;  %10049 = vst [vmem:[#allocation13_spill] sm:$0xff] %v7993_v35  ;;  %v8030_v37 = vsel %vm1816_vm5, %v1820_v28, %v1822_v17  ;;  %v1900_v3 = vrot.slane %v8017_v48, 5  ;;  %v6771_v28 = vld [vmem:[%s9943_s2 + $0x190] sm:$0xff]  }
 0x234   :  { %v1618_v0 = vsel %vm1606_vm4, %v1613_v32, %v1617_v19  ;;  %v1553_v19 = vld [vmem:[#allocation2 + $0x60] sm:$0xff]  ;;  %10051 = vst [vmem:[#allocation20_spill] sm:$0xff] %v8030_v37  ;;  %v1642_v63 = vsel %vm1606_vm4, %v1637_v20, %v1641_v22  ;;  %v1898_v32 = vsel %vm1879_vm6, %v1893_v47, %v1897_v56 }
 0x235   :  { %2938 = vmatprep.mubr.bf16.mxu1 %v1618_v0  ;;  %v1886_v12 = vsel %vm1879_vm6, %v1882_v50, %v1885_v39  ;;  %v1626_v23 = vsel %vm1606_vm4, %v1621_v24, %v1625_v13  ;;  %v1890_v42 = vsel %vm1879_vm6, %v1885_v39, %v1889_v2  ;;  %v1899_v50 = vrot.slane %v8020_v52, 4  ;;  %v1555_v39 = vld [vmem:[#allocation2 + $0x70] sm:$0xff]  ;;  %v6770_v24 = vld [vmem:[%s9943_s2 + $0x198] sm:$0xff]  }
 0x236   :  { %3133 = vmatprep.mubr.bf16.mxu0 %v1886_v12  ;;  %2939 = vmatmul.mubr.bf16.vlgmr.msra.gmra.mxu1 %v7916_v51  ;;  %v8037_v4 = vpack.c.bf16 %v1554_v62, %v1553_v19  ;;  %v6759_v2 = vld [vmem:[%s9943_s2 + $0x110] sm:$0xff]   ;;  %v1645_v0 = vor.u32 %v7984_v1, %v1641_v22 }
 0x237   :  { %3134 = vmatmul.mubr.bf16.vlgmr.msra.gmra.mxu0 %v1819_v43  ;;  %3297 = vmatpush1.bf16.msra.mxu1 %v6754_v18  ;;  %v1556_v18 = vld [vmem:[#allocation2 + $0x78] sm:$0xff]  ;;  %v8051_v13 = vor.u32 %v1900_v3, %v1899_v50 }
 0x238   :  { %2946 = vmatprep.mubr.bf16.mxu1 %v1626_v23  ;;  %3141 = vmatprep.mubr.bf16.mxu0 %v1890_v42  ;;  %10052 = vst [vmem:[#allocation4_spill] sm:$0xff] %v8037_v4  ;;  %v8048_v12 = vpack.c.bf16 %v1556_v18, %v1555_v39  ;;  %v8057_v43 = vshrl.u32 %v8037_v4, 16  ;;  %v1557_v23 = vld [vmem:[#allocation2 + $0x80] sm:$0xff]  ;;  %v1558_v42 = vld [vmem:[#allocation2 + $0x88] sm:$0xff]  ;;  %v1650_v60 = vsel %vm1606_vm4, %v1645_v0, %v1649_v38  ;;  %v6762_v39 = vld [vmem:[%s9943_s2 + $0x178] sm:$0xff]  }
 0x239   :  { %3298 = vmatprep.subr.bf16.mxu1 %v9970_v34  ;;  %3492 = vmatpush1.bf16.msra.mxu0 %v6765_v40  ;;  %v8054_v40 = vshll.u32 %v8037_v4, 16  ;;  %v1902_v10 = vsel %vm1879_vm6, %v1897_v56, %v8051_v13  ;;  %v1563_v0 = vld [vmem:[#allocation2 + $0xb0] sm:$0xff] }
 0x23a   :  { %3493 = vmatprep.subr.bf16.mxu0 %v9970_v34  ;;  %v8074_v47 = vshll.u32 %v8048_v12, 16  ;;  %v8077_v44 = vshrl.u32 %v8048_v12, 16 }
 0x23b   :  { %3299 = vmatpush1.bf16.msra.mxu1 %v6755_v29  ;;  %v8065_v29 = vsel %vm1816_vm5, %v1822_v17, %v1824_v33  ;;  %v1653_v17 = vor.u32 %v8020_v52, %v1649_v38  ;;  %v1657_v20 = vrot.slane %v8054_v40, 1 }
 0x23c   :  { %3300 = vmatprep.subr.bf16.mxu1 %v9970_v34  ;;  %10053 = vst [vmem:[#allocation11_spill] sm:$0xff] %v8065_v29  ;;  %v1907_v56 = vrot.slane %v8077_v44, 4  ;;  %v1908_v22 = vrot.slane %v8074_v47, 5 }
 0x23d   :  { %3494 = vmatpush1.bf16.msra.mxu0 %v6766_v53  ;;  %v1559_v53 = vld [vmem:[#allocation2 + $0x90] sm:$0xff]  ;;  %v1658_v18 = vsel %vm1606_vm4, %v1653_v17, %v1657_v20  ;;  %v1661_v38 = vor.u32 %v8057_v43, %v1657_v20 }
 0x23e   :  { %2947 = vmatmul.mubr.bf16.gmra.mxu1 %v7918_v58  ;;  %3495 = vmatprep.subr.bf16.mxu0 %v9970_v34  ;;  %v8088_v41 = vpack.c.bf16 %v7913_v15, %v1559_v53  ;;  %v2048_v58 = vrot.slane %v7923_v6, 5 }
 0x23f   :  { %3142 = vmatmul.mubr.bf16.gmra.mxu0 %v7993_v35  ;;  %2954 = vmatprep.mubr.bf16.mxu1 %v1634_v14  ;;  %v1903_v14 = vrot.slane %v8057_v43, 4  ;;  %v1568_v35 = vld [vmem:[#allocation2 + $0xd8] sm:$0xff] }
 0x240   :  { %3149 = vmatprep.mubr.bf16.mxu0 %v1894_v45  ;;  %3301 = vmatpush1.bf16.msra.mxu1 %v6756_v5  ;;  %v8079_v5 = vpack.c.bf16 %v1558_v42, %v1557_v23  ;;  %v1826_v45 = vrot.slane %v8004_v16, 1  ;;  %v8115_v50 = vshll.u32 %v8088_v41, 16  ;;  %v8118_v3 = vshrl.u32 %v8088_v41, 16  ;;  %v1564_v23 = vld [vmem:[#allocation2 + $0xb8] sm:$0xff]  ;;  %v6774_v42 = vld [vmem:[%s9943_s2 + $0x180] sm:$0xff]  }
 0x241   :  { %3302 = vmatprep.subr.bf16.mxu1 %v9970_v34  ;;  %3496 = vmatpush1.bf16.msra.mxu0 %v6767_v8  ;;  %v1904_v8 = vrot.slane %v8054_v40, 5  ;;  %v8148_v17 = vpack.c.bf16 %v1564_v23, %v1563_v0 }
 0x242   :  { %3497 = vmatprep.subr.bf16.mxu0 %v9970_v34  ;;  %10054 = vst [vmem:[#allocation12_spill] sm:$0xff] %v8079_v5  ;;  %v8102_v19 = vshll.u32 %v8079_v5, 16  ;;  %v8105_v62 = vshrl.u32 %v8079_v5, 16 }
 0x243   :  { %10057 = vst [vmem:[#allocation10_spill] sm:$0xff] %v8148_v17 }
 0x244   :  { %3303 = vmatpush1.bf16.msra.mxu1 %v6757_v21  ;;  %v6761_v21 = vld [vmem:[%s9943_s2 + $0x100] sm:$0xff]   ;;  %v1911_v53 = vrot.slane %v8105_v62, 4 }
 0x245   :  { %3304 = vmatprep.subr.bf16.mxu1 %v9970_v34  ;;  %3498 = vmatpush1.bf16.msra.mxu0 %v6769_v54  ;;  %v6773_v54 = vld [vmem:[%s9943_s2 + $0x188] sm:$0xff]  }
 0x246   :  { %2955 = vmatmul.mubr.bf16.gmra.mxu1 %v7905_v57  ;;  %3499 = vmatprep.subr.bf16.mxu0 %v9970_v34  ;;  %v1567_v57 = vld [vmem:[#allocation2 + $0xd0] sm:$0xff] }
 0x247   :  { %3150 = vmatmul.mubr.bf16.gmra.mxu0 %v8030_v37  ;;  %2962 = vmatprep.mubr.bf16.mxu1 %v1642_v63  ;;  %v8109_v63 = vpack.c.bf16 %v1562_v46, %v7913_v15  ;;  %v1915_v46 = vrot.slane %v8118_v3, 4 }
 0x248   :  { %3157 = vmatprep.mubr.bf16.mxu0 %v1898_v32  ;;  %3305 = vmatpush1.bf16.msra.mxu1 %v6758_v31  ;;  %v1905_v31 = vor.u32 %v1904_v8, %v1903_v14  ;;  %v8112_v32 = vsel %vm1816_vm5, %v1824_v33, %v1826_v45  ;;  %v1830_v33 = vrot.slane %v8048_v12, 1 }
 0x249   :  { %3306 = vmatprep.subr.bf16.mxu1 %v9970_v34  ;;  %3500 = vmatpush1.bf16.msra.mxu0 %v6770_v24  ;;  %10055 = vst [vmem:[#allocation9_spill] sm:$0xff] %v8109_v63  ;;  %10056 = vst [vmem:[#allocation17_spill] sm:$0xff] %v8112_v32  ;;  %v1828_v24 = vrot.slane %v8037_v4, 1  ;;  %v8141_v14 = vshll.u32 %v8109_v63, 16  ;;  %v8144_v8 = vshrl.u32 %v8109_v63, 16 }
 0x24a   :  { %3501 = vmatprep.subr.bf16.mxu0 %v9970_v34 }
 0x24b   :  { %v8154_v20 = vsel %vm1816_vm5, %v1826_v45, %v1828_v24  ;;  %v8165_v0 = vsel %vm1816_vm5, %v1828_v24, %v1830_v33  ;;  %v8175_v24 = vshll.u32 %v8148_v17, 16 }
 0x24c   :  { %3307 = vmatpush1.bf16.msra.mxu1 %v6759_v2  ;;  %v1665_v2 = vrot.slane %v8074_v47, 1  ;;  %10058 = vst [vmem:[#allocation21_spill] sm:$0xff] %v8154_v20  ;;  %10059 = vst [vmem:[#allocation23_spill] sm:$0xff] %v8165_v0 }
 0x24d   :  { %3308 = vmatprep.subr.bf16.mxu1 %v9970_v34  ;;  %3502 = vmatpush1.bf16.msra.mxu0 %v6771_v28  ;;  %v1912_v28 = vrot.slane %v8102_v19, 5 }
 0x24e   :  { %2963 = vmatmul.mubr.bf16.gmra.mxu1 %v7920_v26  ;;  %3503 = vmatprep.subr.bf16.mxu0 %v9970_v34  ;;  %v1669_v45 = vor.u32 %v8077_v44, %v1665_v2 }
 0x24f   :  { %3158 = vmatmul.mubr.bf16.gmra.mxu0 %v8065_v29  ;;  %2970 = vmatprep.mubr.bf16.mxu1 %v1650_v60  ;;  %v1906_v60 = vsel %vm1879_vm6, %v8051_v13, %v1905_v31  ;;  %v6763_v13 = vld [vmem:[%s9943_s2 + $0x170] sm:$0xff]   ;;  %v1913_v23 = vor.u32 %v1912_v28, %v1911_v53  ;;  %v1566_v29 = vld [vmem:[#allocation2 + $0xc8] sm:$0xff] }
 0x250   :  { %3165 = vmatprep.mubr.bf16.mxu0 %v1902_v10  ;;  %3309 = vmatpush1.bf16.msra.mxu1 %v6760_v9  ;;  %v1909_v9 = vor.u32 %v1908_v22, %v1907_v56  ;;  %v1673_v10 = vrot.slane %v8102_v19, 1  ;;  %v1681_v56 = vrot.slane %v8115_v50, 1  ;;  %v1834_v22 = vrot.slane %v8088_v41, 1 }
 0x251   :  { %3310 = vmatprep.subr.bf16.mxu1 %v9970_v34  ;;  %3504 = vmatpush1.bf16.msra.mxu0 %v6773_v54  ;;  %v1832_v54 = vrot.slane %v8079_v5, 1 }
 0x252   :  { %3505 = vmatprep.subr.bf16.mxu0 %v9970_v34  ;;  %v1677_v11 = vor.u32 %v8105_v62, %v1673_v10  ;;  %v1674_v37 = vsel %vm1606_vm4, %v1669_v45, %v1673_v10  ;;  %v1838_v10 = vrot.slane %v8148_v17, 1  ;;  %v1570_v45 = vld [vmem:[#allocation2 + $0xe8] sm:$0xff] }
 0x253   :  { %v8184_v53 = vsel %vm1816_vm5, %v1830_v33, %v1832_v54  ;;  %v8187_v28 = vsel %vm1816_vm5, %v1832_v54, %v1834_v22  ;;  %v8198_v33 = vsel %vm1879_vm6, %v1909_v9, %v1913_v23 }
 0x254   :  { %3311 = vmatpush1.bf16.msra.mxu1 %v6761_v21  ;;  %v1916_v21 = vrot.slane %v8115_v50, 5  ;;  %10060 = vst [vmem:[#allocation25_spill] sm:$0xff] %v8187_v28 }
 0x255   :  { %3312 = vmatprep.subr.bf16.mxu1 %v9970_v34  ;;  %3506 = vmatpush1.bf16.msra.mxu0 %v6774_v42  ;;  %v1919_v42 = vrot.slane %v8144_v8, 4 }
 0x256   :  { %2971 = vmatmul.mubr.bf16.gmra.mxu1 %v7964_v30  ;;  %3507 = vmatprep.subr.bf16.mxu0 %v9970_v34  ;;  %v1565_v30 = vld [vmem:[#allocation2 + $0xc0] sm:$0xff]  ;;  %v1917_v26 = vor.u32 %v1916_v21, %v1915_v46  ;;  %v1685_v46 = vor.u32 %v8118_v3, %v1681_v56  ;;  %v1836_v21 = vrot.slane %v8109_v63, 1  ;;  %v2055_v63 = vrot.slane %v7911_v59, 5 }
 0x257   :  { %3166 = vmatmul.mubr.bf16.gmra.mxu0 %v8112_v32  ;;  %2977 = vmatprep.mubr.bf16.mxu1 %v1658_v18  ;;  %v1666_v18 = vsel %vm1606_vm4, %v1661_v38, %v1665_v2  ;;  %v1920_v32 = vrot.slane %v8141_v14, 5  ;;  %v1689_v38 = vrot.slane %v8141_v14, 1  ;;  %v8178_v2 = vshrl.u32 %v8148_v17, 16 }
 0x258   :  { %3172 = vmatprep.mubr.bf16.mxu0 %v1906_v60  ;;  %3313 = vmatpush2.bf16.msra.mxu1 %v6762_v39  ;;  %v6776_v39 = vld [vmem:[%s9943_s2 + $0x1f8] sm:$0xff]   ;;  %v1910_v60 = vsel %vm1879_vm6, %v1905_v31, %v1909_v9  ;;  %v6764_v31 = vld [vmem:[%s9943_s2 + $0x168] sm:$0xff]   ;;  %v8200_v54 = vpack.c.bf16 %v1566_v29, %v1565_v30  ;;  %v1569_v9 = vld [vmem:[#allocation2 + $0xe0] sm:$0xff]  ;;  %v2049_v30 = vrot.slane %v7926_v7, 6  ;;  %v8211_v29 = vsel %vm1879_vm6, %v1913_v23, %v1917_v26 }
 0x259   :  { %3314 = vmatprep.subr.bf16.mxu1 %v9970_v34  ;;  %3508 = vmatpush2.bf16.msra.mxu0 %v6776_v39  ;;  %v8206_v39 = vsel %vm1606_vm4, %v1677_v11, %v1681_v56  ;;  %v1693_v6 = vor.u32 %v8144_v8, %v1689_v38  ;;  %v6768_v11 = vld [vmem:[%s9943_s2 + $0x160] sm:$0xff]   ;;  %v8223_v7 = vsel %vm1816_vm5, %v1834_v22, %v1836_v21  ;;  %v10062_v23 = vmov 0  }
 0x25a   :  { %3509 = vmatprep.subr.bf16.mxu0 %v9970_v34  ;;  %10061 = vst [vmem:[#allocation8_spill] sm:$0xff] %v8223_v7  ;;  %v8225_v56 = vpack.c.bf16 %v1568_v35, %v1567_v57  ;;  %v8239_v22 = vpack.c.bf16 %v1570_v45, %v1569_v9  ;;  %v8246_v35 = vsel %vm1816_vm5, %v1836_v21, %v1838_v10  ;;  %v6772_v9 = vld [vmem:[%s9943_s2 + $0x158] sm:$0xff]   ;;  %v2161_v45 = vrot.slane %v7911_v59, 1 }
 0x25b   :  { %10063 = vst [vmem:[#allocation16_spill] sm:$0xff] %v8246_v35 }
 0x25c   :  { %3315 = vmatpush2.bf16.msra.mxu1 %v6763_v13  ;;  %v6777_v13 = vld [vmem:[%s9943_s2 + $0x1f0] sm:$0xff]  }
 0x25d   :  { %3316 = vmatprep.subr.bf16.mxu1 %v9970_v34  ;;  %v1923_v34 = vrot.slane %v8178_v2, 4  ;;  %3510 = vmatpush2.bf16.msra.mxu0 %v6777_v13  ;;  %v2052_v13 = vrot.slane %v7929_v25, 6 }
 0x25e   :  { %2978 = vmatmul.mubr.bf16.gmra.mxu1 %v8004_v16  ;;  %v1921_v16 = vor.u32 %v1920_v32, %v1919_v42  ;;  %v8220_v32 = vsel %vm1606_vm4, %v1685_v46, %v1689_v38  ;;  %v2051_v42 = vrot.slane %v7932_v49, 5  ;;  %v8237_v38 = vshrl.u32 %v8200_v54, 16  ;;  %3511 = vmatprep.subr.bf16.mxu0 %v10062_v23 }
 0x25f   :  { %3173 = vmatmul.mubr.bf16.gmra.mxu0 %v8154_v20  ;;  %2985 = vmatprep.mubr.bf16.mxu1 %v1666_v18  ;;  %v1924_v18 = vrot.slane %v8175_v24, 5  ;;  %v8234_v20 = vshll.u32 %v8200_v54, 16  ;;  %v2050_v46 = vor.u32 %v2049_v30, %v2048_v58  ;;  %v6780_v58 = vld [vmem:[%s9943_s2 + $0x1e0] sm:$0xff]   ;;  %v2162_v30 = vrot.slane %v7908_v27, 2 }
 0x260   :  { %3180 = vmatprep.mubr.bf16.mxu0 %v1910_v60  ;;  %3317 = vmatpush2.bf16.msra.mxu1 %v6764_v31  ;;  %v6778_v60 = vld [vmem:[%s9943_s2 + $0x1e8] sm:$0xff]   ;;  %v1697_v31 = vrot.slane %v8175_v24, 1  ;;  %v8243_v57 = vsel %vm1879_vm6, %v1917_v26, %v1921_v16  ;;  %v2158_v26 = vrot.slane %v7932_v49, 1  ;;  %v2053_v21 = vor.u32 %v2052_v13, %v2051_v42 }
 0x261   :  { %3318 = vmatprep.subr.bf16.mxu1 %v10062_v23  ;;  %v8252_v17 = vor.u32 %v1924_v18, %v1923_v34  ;;  %3512 = vmatpush2.bf16.msra.mxu0 %v6778_v60  ;;  %v2159_v34 = vrot.slane %v7929_v25, 2  ;;  %v1705_v49 = vrot.slane %v8234_v20, 1  ;;  %v1927_v18 = vrot.slane %v8237_v38, 4 }
 0x262   :  { %v8250_v51 = vsel %vm1606_vm4, %v1693_v6, %v1697_v31  ;;  %v1701_v6 = vor.u32 %v8178_v2, %v1697_v31  ;;  %3513 = vmatprep.subr.bf16.mxu0 %v10062_v23  ;;  %v1928_v25 = vrot.slane %v8234_v20, 5  ;;  %v8277_v60 = vsel %vm2047_vm7, %v2050_v46, %v2053_v21  ;;  %v6775_v31 = vld [vmem:[%s9943_s2 + $0x150] sm:$0xff]  }
 0x263   :  { %v2160_v42 = vor.u32 %v2159_v34, %v2158_v26  ;;  %v2163_v13 = vor.u32 %v2162_v30, %v2161_v45  ;;  %v8289_v46 = vsel %vm1879_vm6, %v1921_v16, %v8252_v17  ;;  %v10064_v26 = vrot.slane %v8200_v54, 1 }
 0x264   :  { %3319 = vmatpush2.bf16.msra.mxu1 %v6768_v11  ;;  %v8271_v11 = vshll.u32 %v8225_v56, 16  ;;  %v2060_v45 = vrot.slane %v7943_v61, 6  ;;  %v2173_v30 = vrot.slane %v8020_v52, 1 }
 0x265   :  { %3320 = vmatprep.subr.bf16.mxu1 %v10062_v23  ;;  %3514 = vmatpush2.bf16.msra.mxu0 %v6780_v58  ;;  %v8301_v59 = vsel %vm2157_vm8, %v2160_v42, %v2163_v13  ;;  %v8309_v58 = vshrl.u32 %v8225_v56, 16  ;;  %v2063_v42 = vrot.slane %v7984_v1, 5 }
 0x266   :  { %2986 = vmatmul.mubr.bf16.gmra.mxu1 %v8037_v4  ;;  %v2056_v4 = vrot.slane %v7908_v27, 6  ;;  %v6781_v27 = vld [vmem:[%s9943_s2 + $0x1d8] sm:$0xff]   ;;  %3515 = vmatprep.subr.bf16.mxu0 %v10062_v23 }
 0x267   :  { %3181 = vmatmul.mubr.bf16.gmra.mxu0 %v8165_v0  ;;  %2993 = vmatprep.mubr.bf16.mxu1 %v1674_v37  ;;  %v2165_v37 = vrot.slane %v7953_v55, 1  ;;  %v2166_v0 = vrot.slane %v7943_v61, 2 }
 0x268   :  { %3188 = vmatprep.mubr.bf16.mxu0 %v8198_v33  ;;  %3321 = vmatpush2.bf16.msra.mxu1 %v6772_v9  ;;  %v8294_v33 = vsel %vm1816_vm5, %v1838_v10, %v10064_v26  ;;  %v2059_v9 = vrot.slane %v7953_v55, 5  ;;  %v2057_v16 = vor.u32 %v2056_v4, %v2055_v63  ;;  %v2169_v10 = vrot.slane %v7984_v1, 1  ;;  %v6779_v55 = vld [vmem:[%s9943_s2 + $0x148] sm:$0xff]   ;;  %v6782_v1 = vld [vmem:[%s9943_s2 + $0x1d0] sm:$0xff]  }
 0x269   :  { %10065 = vst [vmem:[#allocation24_spill] sm:$0xff] %v8294_v33  ;;  %3322 = vmatprep.subr.bf16.mxu1 %v10062_v23  ;;  %v2167_v34 = vor.u32 %v2166_v0, %v2165_v37  ;;  %v2170_v26 = vrot.slane %v7981_v36, 2  ;;  %v2064_v0 = vrot.slane %v7981_v36, 6  ;;  %3516 = vmatpush2.bf16.msra.mxu0 %v6781_v27  ;;  %v8347_v37 = vor.u32 %v1928_v25, %v1927_v18 }
 0x26a   :  { %v8317_v4 = vsel %vm2047_vm7, %v2053_v21, %v2057_v16  ;;  %v2061_v63 = vor.u32 %v2060_v45, %v2059_v9  ;;  %v2174_v21 = vrot.slane %v8017_v48, 2  ;;  %3517 = vmatprep.subr.bf16.mxu0 %v10062_v23  ;;  %v2067_v9 = vrot.slane %v8020_v52, 5  ;;  %v6783_v52 = vld [vmem:[%s9943_s2 + $0x140] sm:$0xff]  }
 0x26b   :  { %v8320_v61 = vsel %vm2157_vm8, %v2163_v13, %v2167_v34  ;;  %v8332_v13 = vsel %vm1606_vm4, %v1701_v6, %v1705_v49  ;;  %v2065_v27 = vor.u32 %v2064_v0, %v2063_v42  ;;  %v2177_v6 = vrot.slane %v8057_v43, 1 }
 0x26c   :  { %3323 = vmatpush2.bf16.msra.mxu1 %v6775_v31  ;;  %v2171_v31 = vor.u32 %v2170_v26, %v2169_v10  ;;  %v8336_v36 = vsel %vm2047_vm7, %v2057_v16, %v2061_v63  ;;  %v2175_v10 = vor.u32 %v2174_v21, %v2173_v30  ;;  %v2068_v26 = vrot.slane %v8017_v48, 6  ;;  %v6784_v48 = vld [vmem:[%s9943_s2 + $0x1c8] sm:$0xff]  }
 0x26d   :  { %3324 = vmatprep.subr.bf16.mxu1 %v10062_v23  ;;  %v1709_v16 = vor.u32 %v8237_v38, %v1705_v49  ;;  %3518 = vmatpush2.bf16.msra.mxu0 %v6782_v1  ;;  %v2071_v18 = vrot.slane %v8057_v43, 5  ;;  %v2072_v25 = vrot.slane %v8054_v40, 6  ;;  %v1931_v30 = vrot.slane %v8309_v58, 4 }
 0x26e   :  { %2994 = vmatmul.mubr.bf16.gmra.mxu1 %v8048_v12  ;;  %v8342_v45 = vsel %vm2157_vm8, %v2167_v34, %v2171_v31  ;;  %v2178_v34 = vrot.slane %v8054_v40, 2  ;;  %v2069_v49 = vor.u32 %v2068_v26, %v2067_v9  ;;  %3519 = vmatprep.subr.bf16.mxu0 %v10062_v23  ;;  %v8371_v0 = vshll.u32 %v8239_v22, 16 }
 0x26f   :  { %3189 = vmatmul.mubr.bf16.gmra.mxu0 %v8184_v53  ;;  %3001 = vmatprep.mubr.bf16.mxu1 %v8206_v39  ;;  %v8354_v39 = vsel %vm2047_vm7, %v2061_v63, %v2065_v27  ;;  %v2182_v63 = vrot.slane %v8074_v47, 2  ;;  %v2075_v43 = vrot.slane %v8077_v44, 5  ;;  %v2076_v9 = vrot.slane %v8074_v47, 6 }
 0x270   :  { %3196 = vmatprep.mubr.bf16.mxu0 %v8211_v29  ;;  %3325 = vmatpush2.bf16.msra.mxu1 %v6779_v55  ;;  %v8362_v29 = vsel %vm2157_vm8, %v2171_v31, %v2175_v10  ;;  %v2179_v42 = vor.u32 %v2178_v34, %v2177_v6  ;;  %v2181_v55 = vrot.slane %v8077_v44, 1  ;;  %v8374_v1 = vsel %vm2047_vm7, %v2065_v27, %v2069_v49  ;;  %v6785_v44 = vld [vmem:[%s9943_s2 + $0x1c0] sm:$0xff]  }
 0x271   :  { %3326 = vmatprep.subr.bf16.mxu1 %v10062_v23  ;;  %v2073_v31 = vor.u32 %v2072_v25, %v2071_v18  ;;  %v2185_v26 = vrot.slane %v8105_v62, 1  ;;  %v8385_v6 = vsel %vm1879_vm6, %v8252_v17, %v8347_v37  ;;  %v8388_v27 = vshrl.u32 %v8239_v22, 16  ;;  %3520 = vmatpush2.bf16.msra.mxu0 %v6784_v48  ;;  %v1572_v25 = vld [vmem:[#allocation2 + $0xf8] sm:$0xff] }
 0x272   :  { %v8378_v40 = vsel %vm2157_vm8, %v2175_v10, %v2179_v42  ;;  %v2183_v21 = vor.u32 %v2182_v63, %v2181_v55  ;;  %v2186_v47 = vrot.slane %v8102_v19, 2  ;;  %3521 = vmatprep.subr.bf16.mxu0 %v10062_v23  ;;  %v2079_v34 = vrot.slane %v8105_v62, 5 }
 0x273   :  { %v8395_v10 = vsel %vm2047_vm7, %v2069_v49, %v2073_v31  ;;  %v2080_v48 = vrot.slane %v8102_v19, 6  ;;  %v10066_v49 = vrot.slane %v8271_v11, 1  ;;  %v2189_v23 = vrot.slane %v8118_v3, 1 }
 0x274   :  { %3327 = vmatpush2.bf16.msra.mxu1 %v6783_v52  ;;  %v8401_v17 = vsel %vm2157_vm8, %v2179_v42, %v2183_v21  ;;  %v2077_v52 = vor.u32 %v2076_v9, %v2075_v43  ;;  %v2187_v55 = vor.u32 %v2186_v47, %v2185_v26  ;;  %v2190_v42 = vrot.slane %v8115_v50, 2  ;;  %v1574_v9 = vld [vmem:[#allocation2 + $0x108] sm:$0xff] }
 0x275   :  { %6507 = vmatprep.subr.bf16.mxu1 %v7913_v15  ;;  %v8410_v18 = vsel %vm1606_vm4, %v1709_v16, %v10066_v49  ;;  %v10067_v62 = vrot.slane %v8271_v11, 5  ;;  %v2083_v43 = vrot.slane %v8118_v3, 5  ;;  %v1573_v16 = vld [vmem:[#allocation2 + $0x100] sm:$0xff]  ;;  %3522 = vmatpush2.bf16.msra.mxu0 %v6785_v44  ;;  %v2084_v49 = vrot.slane %v8115_v50, 6 }
 0x276   :  { %3002 = vmatmul.mubr.bf16.gmra.mxu1 %v8079_v5  ;;  %v8420_v63 = vsel %vm2047_vm7, %v2073_v31, %v2077_v52  ;;  %v8424_v26 = vsel %vm2157_vm8, %v2183_v21, %v2187_v55  ;;  %v2191_v47 = vor.u32 %v2190_v42, %v2189_v23  ;;  %v1575_v31 = vld [vmem:[#allocation2 + $0x110] sm:$0xff]  ;;  %v2194_v44 = vrot.slane %v8141_v14, 2 }
 0x277   :  { %3197 = vmatmul.mubr.bf16.gmra.mxu0 %v8187_v28  ;;  %3009 = vmatprep.mubr.bf16.mxu1 %v8220_v32  ;;  %v8417_v19 = vor.u32 %v10067_v62, %v1931_v30  ;;  %v2081_v32 = vor.u32 %v2080_v48, %v2079_v34  ;;  %v8430_v62 = vpack.c.bf16 %v1572_v25, %v7913_v15  ;;  %v1576_v34 = vld [vmem:[#allocation2 + $0x118] sm:$0xff]  ;;  %v2087_v50 = vrot.slane %v8144_v8, 5 }
 0x278   :  { %3204 = vmatprep.mubr.bf16.mxu0 %v8243_v57  ;;  %v2193_v57 = vrot.slane %v8144_v8, 1  ;;  %v8437_v21 = vsel %vm2157_vm8, %v2187_v55, %v2191_v47  ;;  %v2085_v48 = vor.u32 %v2084_v49, %v2083_v43  ;;  %v2088_v23 = vrot.slane %v8141_v14, 6 }
 0x279   :  { %v8433_v3 = vsel %vm2047_vm7, %v2077_v52, %v2081_v32  ;;  %v8441_v42 = vpack.c.bf16 %v1574_v9, %v1573_v16  ;;  %v2197_v15 = vrot.slane %v8178_v2, 1  ;;  %v2198_v25 = vrot.slane %v8175_v24, 2 }
 0x27a   :  { %v2195_v30 = vor.u32 %v2194_v44, %v2193_v57  ;;  %v8445_v28 = vpack.c.bf16 %v1576_v34, %v1575_v31  ;;  %v8448_v52 = vsel %vm2047_vm7, %v2081_v32, %v2085_v48  ;;  %v2089_v5 = vor.u32 %v2088_v23, %v2087_v50  ;;  %v1577_v34 = vld [vmem:[#allocation2 + $0x120] sm:$0xff]  ;;  %v1578_v44 = vld [vmem:[#allocation2 + $0x128] sm:$0xff] }
 0x27b   :  { %v2091_v55 = vrot.slane %v8178_v2, 5  ;;  %v2199_v14 = vor.u32 %v2198_v25, %v2197_v15  ;;  %v2092_v43 = vrot.slane %v8175_v24, 6  ;;  %v2201_v16 = vrot.slane %v8237_v38, 1 }
 0x27c   :  { %v8453_v8 = vsel %vm2157_vm8, %v2191_v47, %v2195_v30  ;;  %v8460_v32 = vshll.u32 %v8430_v62, 16  ;;  %v8463_v9 = vshrl.u32 %v8430_v62, 16  ;;  %v8466_v2 = vsel %vm2047_vm7, %v2085_v48, %v2089_v5 }
 0x27d   :  { %10068 = vst [vmem:[#allocation6_spill] sm:$0xff] %v8466_v2  ;;  %v2202_v47 = vrot.slane %v8234_v20, 2  ;;  %v8471_v24 = vsel %vm2157_vm8, %v2195_v30, %v2199_v14  ;;  %v2093_v49 = vor.u32 %v2092_v43, %v2091_v55  ;;  %v2095_v57 = vrot.slane %v8237_v38, 5  ;;  %v1580_v2 = vld [vmem:[#allocation2 + $0x138] sm:$0xff] }
 0x27e   :  { %3010 = vmatmul.mubr.bf16.gmra.mxu1 %v8088_v41  ;;  %10069 = vst [vmem:[#allocation14_spill] sm:$0xff] %v8471_v24  ;;  %v8476_v31 = vshll.u32 %v8441_v42, 16  ;;  %v2205_v48 = vrot.slane %v8309_v58, 1  ;;  %v2206_v23 = vrot.slane %v8271_v11, 2  ;;  %v2099_v38 = vrot.slane %v8309_v58, 5  ;;  %v1579_v24 = vld [vmem:[#allocation2 + $0x130] sm:$0xff] }
 0x27f   :  { %3205 = vmatmul.mubr.bf16.gmra.mxu0 %v8223_v7  ;;  %3016 = vmatprep.mubr.bf16.mxu1 %v8250_v51  ;;  %v2096_v51 = vrot.slane %v8234_v20, 6  ;;  %v2203_v50 = vor.u32 %v2202_v47, %v2201_v16  ;;  %v8484_v30 = vsel %vm2047_vm7, %v2089_v5, %v2093_v49  ;;  %v2100_v55 = vrot.slane %v8271_v11, 6 }
 0x280   :  { %3211 = vmatprep.mubr.bf16.mxu0 %v8289_v46  ;;  %v8481_v46 = vshrl.u32 %v8441_v42, 16  ;;  %10070 = vst [vmem:[#allocation26_spill] sm:$0xff] %v8484_v30  ;;  %v2207_v25 = vor.u32 %v2206_v23, %v2205_v48  ;;  %v2209_v43 = vrot.slane %v8388_v27, 1  ;;  %v8493_v16 = vshll.u32 %v8445_v28, 16 }
 0x281   :  { %v2097_v15 = vor.u32 %v2096_v51, %v2095_v57  ;;  %v8488_v20 = vsel %vm2157_vm8, %v2199_v14, %v2203_v50  ;;  %v8495_v47 = vpack.c.bf16 %v1578_v44, %v1577_v34  ;;  %v2210_v57 = vrot.slane %v8371_v0, 2 }
 0x282   :  { %10071 = vst [vmem:[#allocation27_spill] sm:$0xff] %v8488_v20  ;;  %v8502_v14 = vsel %vm2157_vm8, %v2203_v50, %v2207_v25  ;;  %v2101_v51 = vor.u32 %v2100_v55, %v2099_v38  ;;  %v2103_v48 = vrot.slane %v8388_v27, 5  ;;  %v2104_v23 = vrot.slane %v8371_v0, 6  ;;  %v10074_v20 = vld [vmem:[#allocation9_spill] sm:$0xff] }
 0x283   :  { %v8498_v5 = vsel %vm2047_vm7, %v2093_v49, %v2097_v15  ;;  %10073 = vst [vmem:[#allocation29_spill] sm:$0xff] %v8502_v14  ;;  %v8508_v34 = vshrl.u32 %v8445_v28, 16  ;;  %v2211_v44 = vor.u32 %v2210_v57, %v2209_v43  ;;  %v2213_v30 = vrot.slane %v8463_v9, 1 }
 0x284   :  { %10072 = vst [vmem:[#allocation28_spill] sm:$0xff] %v8498_v5  ;;  %v2214_v49 = vrot.slane %v8460_v32, 2  ;;  %v8514_v50 = vpack.c.bf16 %v1580_v2, %v1579_v24  ;;  %v8517_v38 = vsel %vm2047_vm7, %v2097_v15, %v2101_v51  ;;  %v2105_v55 = vor.u32 %v2104_v23, %v2103_v48 }
 0x285   :  { %10075 = vst [vmem:[#allocation30_spill] sm:$0xff] %v8517_v38  ;;  %v2107_v14 = vrot.slane %v8463_v9, 5  ;;  %v8522_v43 = vsel %vm2157_vm8, %v2207_v25, %v2211_v44  ;;  %v2108_v5 = vrot.slane %v8460_v32, 6  ;;  %v8530_v2 = vshrl.u32 %v8495_v47, 16 }
 0x286   :  { %3017 = vmatmul.mubr.bf16.gmra.mxu1 %v10074_v20  ;;  %10076 = vst [vmem:[#allocation31_spill] sm:$0xff] %v8522_v43  ;;  %v2215_v57 = vor.u32 %v2214_v49, %v2213_v30  ;;  %v8533_v24 = vsel %vm2047_vm7, %v2101_v51, %v2105_v55  ;;  %v2218_v15 = vrot.slane %v8476_v31, 2  ;;  %v2111_v30 = vrot.slane %v8481_v46, 5 }
 0x287   :  { %3212 = vmatmul.mubr.bf16.gmra.mxu0 %v8246_v35  ;;  %3024 = vmatprep.mubr.bf16.mxu1 %v8332_v13  ;;  %v2217_v35 = vrot.slane %v8481_v46, 1  ;;  %v8527_v13 = vshll.u32 %v8495_v47, 16  ;;  %10077 = vst [vmem:[#allocation32_spill] sm:$0xff] %v8533_v24  ;;  %v2109_v25 = vor.u32 %v2108_v5, %v2107_v14  ;;  %v2112_v48 = vrot.slane %v8476_v31, 6 }
 0x288   :  { %3219 = vmatprep.mubr.bf16.mxu0 %v8385_v6  ;;  %v8537_v6 = vsel %vm2157_vm8, %v2211_v44, %v2215_v57  ;;  %v8542_v23 = vshll.u32 %v8514_v50, 16  ;;  %v2221_v43 = vrot.slane %v8508_v34, 1  ;;  %v2222_v38 = vrot.slane %v8493_v16, 2 }
 0x289   :  { %10078 = vst [vmem:[#allocation33_spill] sm:$0xff] %v8537_v6  ;;  %v2219_v49 = vor.u32 %v2218_v15, %v2217_v35  ;;  %v8547_v51 = vshrl.u32 %v8514_v50, 16  ;;  %v8550_v24 = vsel %vm2047_vm7, %v2105_v55, %v2109_v25  ;;  %v2113_v44 = vor.u32 %v2112_v48, %v2111_v30  ;;  %v10081_v15 = vld [vmem:[#allocation10_spill] sm:$0xff] }
 0x28a   :  { %10079 = vst [vmem:[#allocation34_spill] sm:$0xff] %v8550_v24  ;;  %v2115_v5 = vrot.slane %v8508_v34, 5  ;;  %v2223_v6 = vor.u32 %v2222_v38, %v2221_v43  ;;  %v2116_v20 = vrot.slane %v8493_v16, 6  ;;  %v2225_v35 = vrot.slane %v8530_v2, 1 }
 0x28b   :  { %v8554_v14 = vsel %vm2157_vm8, %v2215_v57, %v2219_v49  ;;  %v1934_v7 = vsel %vm1879_vm6, %v8347_v37, %v8417_v19  ;;  %v1936_v55 = vrot.slane %v8371_v0, 5  ;;  %v8564_v30 = vsel %vm2047_vm7, %v2109_v25, %v2113_v44 }
 0x28c   :  { %10080 = vst [vmem:[#allocation35_spill] sm:$0xff] %v8554_v14  ;;  %10082 = vst [vmem:[#allocation36_spill] sm:$0xff] %v8564_v30  ;;  %v2226_v48 = vrot.slane %v8527_v13, 2  ;;  %v8570_v38 = vsel %vm2157_vm8, %v2219_v49, %v2223_v6  ;;  %v2117_v43 = vor.u32 %v2116_v20, %v2115_v5  ;;  %v2119_v57 = vrot.slane %v8530_v2, 5 }
 0x28d   :  { %10083 = vst [vmem:[#allocation37_spill] sm:$0xff] %v8570_v38  ;;  %v2120_v14 = vrot.slane %v8527_v13, 6  ;;  %v2229_v24 = vrot.slane %v8547_v51, 1  ;;  %v2230_v25 = vrot.slane %v8542_v23, 2  ;;  %v1842_v30 = vrot.slane %v8225_v56, 1 }
 0x28e   :  { %3025 = vmatmul.mubr.bf16.gmra.mxu1 %v10081_v15  ;;  %v2227_v37 = vor.u32 %v2226_v48, %v2225_v35  ;;  %v2123_v49 = vrot.slane %v8547_v51, 5  ;;  %v10084_v20 = vrot.slane %v8271_v11, 1  ;;  %v2124_v35 = vrot.slane %v8542_v23, 6 }
 0x28f   :  { %3220 = vmatmul.mubr.bf16.gmra.mxu0 %v8294_v33  ;;  %3032 = vmatprep.mubr.bf16.mxu1 %v8410_v18  ;;  %v8578_v33 = vsel %vm2047_vm7, %v2113_v44, %v2117_v43  ;;  %v2121_v18 = vor.u32 %v2120_v14, %v2119_v57  ;;  %v10085_v48 = vrot.slane %v8388_v27, 4  ;;  %v1721_v14 = vrot.slane %v8371_v0, 1 }
 0x290   :  { %3227 = vmatprep.mubr.bf16.mxu0 %v1934_v7  ;;  %v1717_v5 = vor.u32 %v8309_v58, %v10084_v20  ;;  %v8585_v38 = vsel %vm2157_vm8, %v2223_v6, %v2227_v37  ;;  %v8587_v7 = vor.u32 %v2230_v25, %v2229_v24  ;;  %v8600_v58 = vor.u32 %v2124_v35, %v2123_v49 }
 0x291   :  { %v1937_v15 = vor.u32 %v1936_v55, %v10085_v48  ;;  %v8593_v44 = vsel %vm2047_vm7, %v2117_v43, %v2121_v18  ;;  %v10086_v24 = vrot.slane %v8200_v54, 1  ;;  %v1939_v57 = vrot.slane %v8463_v9, 4 }
 0x292   :  { %v8598_v11 = vsel %vm2157_vm8, %v2227_v37, %v8587_v7  ;;  %v1722_v55 = vsel %vm1606_vm4, %v1717_v5, %v1721_v14  ;;  %v8611_v43 = vsel %vm2047_vm7, %v2121_v18, %v8600_v58  ;;  %v1940_v37 = vrot.slane %v8460_v32, 5 }
 0x293   :  { %v8606_v6 = vsel %vm1816_vm5, %v10086_v24, %v1842_v30  ;;  %v1938_v0 = vsel %vm1879_vm6, %v8417_v19, %v1937_v15  ;;  %v1844_v25 = vrot.slane %v8239_v22, 1  ;;  %v1725_v49 = vor.u32 %v8388_v27, %v1721_v14 }
 0x294   :  { %v1941_v20 = vor.u32 %v1940_v37, %v1939_v57  ;;  %v1729_v5 = vrot.slane %v8460_v32, 1  ;;  %v1943_v48 = vrot.slane %v8481_v46, 4  ;;  %v1944_v24 = vrot.slane %v8476_v31, 5 }
 0x295   :  { %v8623_v18 = vsel %vm1816_vm5, %v1842_v30, %v1844_v25  ;;  %v1846_v27 = vrot.slane %v8430_v62, 1  ;;  %v1737_v30 = vrot.slane %v8476_v31, 1  ;;  %v1947_v57 = vrot.slane %v8508_v34, 4 }
 0x296   :  { %3033 = vmatmul.mubr.bf16.gmra.mxu1 %v8200_v54  ;;  %v1730_v35 = vsel %vm1606_vm4, %v1725_v49, %v1729_v5  ;;  %v1942_v19 = vsel %vm1879_vm6, %v1937_v15, %v1941_v20  ;;  %v1733_v32 = vor.u32 %v8463_v9, %v1729_v5  ;;  %v1945_v14 = vor.u32 %v1944_v24, %v1943_v48 }
 0x297   :  { %3228 = vmatmul.mubr.bf16.gmra.mxu0 %v8606_v6  ;;  %3040 = vmatprep.mubr.bf16.mxu1 %v1722_v55  ;;  %v8635_v55 = vsel %vm1816_vm5, %v1844_v25, %v1846_v27  ;;  %v1948_v37 = vrot.slane %v8493_v16, 5  ;;  %v1848_v9 = vrot.slane %v8441_v42, 1  ;;  %v1741_v31 = vor.u32 %v8481_v46, %v1737_v30 }
 0x298   :  { %3235 = vmatprep.mubr.bf16.mxu0 %v1938_v0  ;;  %v1738_v0 = vsel %vm1606_vm4, %v1733_v32, %v1737_v30  ;;  %v1946_v15 = vsel %vm1879_vm6, %v1941_v20, %v1945_v14  ;;  %v1745_v25 = vrot.slane %v8493_v16, 1  ;;  %v1952_v48 = vrot.slane %v8527_v13, 5 }
 0x299   :  { %v1949_v49 = vor.u32 %v1948_v37, %v1947_v57  ;;  %v8647_v5 = vsel %vm1816_vm5, %v1846_v27, %v1848_v9  ;;  %v1850_v46 = vrot.slane %v8445_v28, 1  ;;  %v1753_v27 = vrot.slane %v8527_v13, 1 }
 0x29a   :  { %v1749_v16 = vor.u32 %v8508_v34, %v1745_v25  ;;  %v8666_v34 = vld [vmem:[#allocation2] sm:$0xff]  ;;  %v1852_v57 = vrot.slane %v8495_v47, 1 }
 0x29b   :  { %v1950_v20 = vsel %vm1879_vm6, %v1945_v14, %v1949_v49  ;;  %v8659_v32 = vsel %vm1816_vm5, %v1848_v9, %v1850_v46  ;;  %v8670_v13 = vpack.c.bf16 %v8666_v34, %v8666_v34  ;;  %v1757_v37 = vor.u32 %v8530_v2, %v1753_v27 }
 0x29c   :  { %v1754_v30 = vsel %vm1606_vm4, %v1749_v16, %v1753_v27  ;;  %v1854_v16 = vrot.slane %v8514_v50, 1 }
 0x29e   :  { %3041 = vmatmul.mubr.bf16.gmra.mxu1 %v8225_v56 }
 0x29f   :  { %3236 = vmatmul.mubr.bf16.gmra.mxu0 %v8623_v18  ;;  %3048 = vmatprep.mubr.bf16.mxu1 %v1730_v35  ;;  %v1746_v35 = vsel %vm1606_vm4, %v1741_v31, %v1745_v25  ;;  %v8675_v31 = vshll.u32 %v8670_v13, 16  ;;  %v1761_v25 = vrot.slane %v8542_v23, 1 }
 0x2a0   :  { %3243 = vmatprep.mubr.bf16.mxu0 %v1942_v19  ;;  %v1951_v19 = vrot.slane %v8530_v2, 4 }
 0x2a1   :  { %v1769_v27 = vrot.slane %v8675_v31, 1 }
 0x2a2   :  { %v1953_v24 = vor.u32 %v1952_v48, %v1951_v19  ;;  %v1960_v48 = vrot.slane %v8675_v31, 5 }
 0x2a4   :  { %v1954_v14 = vsel %vm1879_vm6, %v1949_v49, %v1953_v24  ;;  %v8678_v49 = vshrl.u32 %v8670_v13, 16 }
 0x2a6   :  { %3049 = vmatmul.mubr.bf16.gmra.mxu1 %v8239_v22  ;;  %v1959_v19 = vrot.slane %v8678_v49, 4 }
 0x2a7   :  { %3244 = vmatmul.mubr.bf16.gmra.mxu0 %v8635_v55  ;;  %3055 = vmatprep.mubr.bf16.mxu1 %v1738_v0  ;;  %v1955_v0 = vrot.slane %v8547_v51, 4 }
 0x2a8   :  { %3250 = vmatprep.mubr.bf16.mxu0 %v1946_v15  ;;  %v1956_v15 = vrot.slane %v8542_v23, 5  ;;  %v1765_v23 = vor.u32 %v8547_v51, %v1761_v25  ;;  %v1773_v51 = vor.u32 %v8678_v49, %v1769_v27 }
 0x2aa   :  { %v1957_v9 = vor.u32 %v1956_v15, %v1955_v0  ;;  %v8701_v0 = vrot.slane %v8670_v13, 1 }
 0x2ac   :  { %v1958_v2 = vsel %vm1879_vm6, %v1953_v24, %v1957_v9  ;;  %v8707_v15 = vsel %vm1816_vm5, %v1854_v16, %v8701_v0 }
 0x2ae   :  { %3056 = vmatmul.mubr.bf16.gmra.mxu1 %v8430_v62 }
 0x2af   :  { %3251 = vmatmul.mubr.bf16.gmra.mxu0 %v8647_v5  ;;  %3063 = vmatprep.mubr.bf16.mxu1 %v1746_v35  ;;  %v8683_v35 = vsel %vm1816_vm5, %v1850_v46, %v1852_v57  ;;  %v1961_v46 = vor.u32 %v1960_v48, %v1959_v19  ;;  %v10089_v19 = vld [vmem:[#allocation13_spill] sm:$0xff] }
 0x2b0   :  { %3258 = vmatprep.mubr.bf16.mxu0 %v1950_v20  ;;  %v1762_v20 = vsel %vm1606_vm4, %v1757_v37, %v1761_v25 }
 0x2b1   :  { %v1962_v24 = vsel %vm1879_vm6, %v1957_v9, %v1961_v46  ;;  %v10088_v9 = vld [vmem:[#allocation7_spill] sm:$0xff] }
 0x2b2   :  { %v1986_v25 = vrot.slane %v10088_v9, 5 }
 0x2b6   :  { %3064 = vmatmul.mubr.bf16.gmra.mxu1 %v8441_v42 }
 0x2b7   :  { %3259 = vmatmul.mubr.bf16.gmra.mxu0 %v8659_v32  ;;  %3071 = vmatprep.mubr.bf16.mxu1 %v1754_v30  ;;  %v8695_v30 = vsel %vm1816_vm5, %v1852_v57, %v1854_v16  ;;  %v10087_v57 = vld [vmem:[#allocation15_spill] sm:$0xff]  ;;  %v6788_v16 = vld [vmem:[%s9943_s2 + $0x228] sm:$0xff]  }
 0x2b8   :  { %3266 = vmatprep.mubr.bf16.mxu0 %v1954_v14  ;;  %v1770_v14 = vsel %vm1606_vm4, %v1765_v23, %v1769_v27  ;;  %v1985_v37 = vrot.slane %v10087_v57, 5  ;;  %v10091_v27 = vld [vmem:[#allocation20_spill] sm:$0xff] }
 0x2be   :  { %3072 = vmatmul.mubr.bf16.gmra.mxu1 %v8445_v28 }
 0x2bf   :  { %3267 = vmatmul.mubr.bf16.gmra.mxu0 %v8683_v35  ;;  %3079 = vmatprep.mubr.bf16.mxu1 %v1762_v20  ;;  %v6786_v20 = vld [vmem:[%s9943_s2 + $0x238] sm:$0xff]  }
 0x2c0   :  { %3274 = vmatprep.mubr.bf16.mxu0 %v1958_v2  ;;  %v1987_v2 = vsel %vm1984_vm9, %v1985_v37, %v1986_v25  ;;  %v6792_v37 = vld [vmem:[%s9943_s2 + $0x208] sm:$0xff]  }
 0x2c6   :  { %3080 = vmatmul.mubr.bf16.gmra.mxu1 %v8495_v47 }
 0x2c7   :  { %3275 = vmatmul.mubr.bf16.gmra.mxu0 %v8695_v30  ;;  %3087 = vmatprep.mubr.bf16.mxu1 %v1770_v14  ;;  %v6790_v14 = vld [vmem:[%s9943_s2 + $0x218] sm:$0xff]  }
 0x2c8   :  { %3282 = vmatprep.mubr.bf16.mxu0 %v1962_v24 }
 0x2ce   :  { %3088 = vmatmul.mubr.bf16.gmra.mxu1 %v8514_v50 }
 0x2cf   :  { %3283 = vmatmul.mubr.bf16.gmra.mxu0 %v8707_v15  ;;  %3094 = vmatprep.mubr.bf16.mxu1 %v1773_v51  ;;  %v10094_v51 = vld [vmem:[#allocation5_spill] sm:$0xff] }
 0x2d0   :  { %3289 = vmatprep.mubr.bf16.mxu0 %v1961_v46  ;;  %v1992_v57 = vrot.slane %v10094_v51, 5 }
 0x2d6   :  { %3095 = vmatmul.mubr.bf16.gmra.mxu1 %v8670_v13 }
 0x2d7   :  { %3290 = vmatmul.mubr.bf16.gmra.mxu0 %v8701_v0  ;;  %3328 = vmatprep.mubr.bf16.mxu1 %v8277_v60  ;;  %v6787_v60 = vld [vmem:[%s9943_s2 + $0x230] sm:$0xff]  }
 0x2d8   :  { %3523 = vmatprep.mubr.bf16.mxu0 %v8301_v59  ;;  %v10090_v59 = vld [vmem:[#allocation18_spill] sm:$0xff] }
 0x2d9   :  { %v1988_v48 = vrot.slane %v10090_v59, 5 }
 0x2db   :  { %v1989_v23 = vsel %vm1984_vm9, %v1986_v25, %v1988_v48 }
 0x2de   :  { %3329 = vmatmul.mubr.bf16.vlgmr.msra.gmra.mxu1 %v1987_v2 }
 0x2df   :  { %3524 = vmatmul.mubr.bf16.vlgmr.msra.gmra.mxu0 %v10089_v19  ;;  %6508 = vmatpush3.bf16.msra.mxu1 %v6786_v20  ;;  %v10095_v20 = vld [vmem:[#allocation17_spill] sm:$0xff] }
 0x2e0   :  { %3336 = vmatprep.mubr.bf16.mxu1 %v8317_v4  ;;  %3531 = vmatprep.mubr.bf16.mxu0 %v8320_v61  ;;  %v6789_v4 = vld [vmem:[%s9943_s2 + $0x220] sm:$0xff]   ;;  %v10092_v61 = vld [vmem:[#allocation22_spill] sm:$0xff] }
 0x2e1   :  { %6509 = vmatprep.subr.bf16.mxu1 %v8666_v34  ;;  %v1990_v46 = vrot.slane %v10092_v61, 5 }
 0x2e3   :  { %6510 = vmatpush3.bf16.msra.mxu1 %v6787_v60  ;;  %v1991_v24 = vsel %vm1984_vm9, %v1988_v48, %v1990_v46  ;;  %v1993_v25 = vsel %vm1984_vm9, %v1990_v46, %v1992_v57  ;;  %v6793_v60 = vld [vmem:[%s9943_s2 + $0x200] sm:$0xff]  }
 0x2e4   :  { %6511 = vmatprep.subr.bf16.mxu1 %v8666_v34 }
 0x2e6   :  { %3337 = vmatmul.mubr.bf16.gmra.mxu1 %v1989_v23 }
 0x2e7   :  { %3532 = vmatmul.mubr.bf16.gmra.mxu0 %v10091_v27  ;;  %3344 = vmatprep.mubr.bf16.mxu1 %v8336_v36  ;;  %v10093_v36 = vld [vmem:[#allocation11_spill] sm:$0xff] }
 0x2e8   :  { %3539 = vmatprep.mubr.bf16.mxu0 %v8342_v45  ;;  %6512 = vmatpush3.bf16.msra.mxu1 %v6788_v16  ;;  %v6791_v45 = vld [vmem:[%s9943_s2 + $0x210] sm:$0xff]   ;;  %v10096_v16 = vld [vmem:[#allocation19_spill] sm:$0xff] }
 0x2e9   :  { %6513 = vmatprep.subr.bf16.mxu1 %v8666_v34  ;;  %v1994_v23 = vrot.slane %v10096_v16, 5 }
 0x2ec   :  { %6514 = vmatpush3.bf16.msra.mxu1 %v6789_v4 }
 0x2ed   :  { %6515 = vmatprep.subr.bf16.mxu1 %v8666_v34 }
 0x2ee   :  { %3345 = vmatmul.mubr.bf16.gmra.mxu1 %v1991_v24 }
 0x2ef   :  { %3540 = vmatmul.mubr.bf16.gmra.mxu0 %v10093_v36  ;;  %3352 = vmatprep.mubr.bf16.mxu1 %v8354_v39 }
 0x2f0   :  { %3547 = vmatprep.mubr.bf16.mxu0 %v8362_v29  ;;  %6516 = vmatpush3.bf16.msra.mxu1 %v6790_v14 }
 0x2f1   :  { %6517 = vmatprep.subr.bf16.mxu1 %v8666_v34 }
 0x2f4   :  { %6518 = vmatpush3.bf16.msra.mxu1 %v6791_v45  ;;  %v10097_v45 = vld [vmem:[#allocation21_spill] sm:$0xff] }
 0x2f5   :  { %6519 = vmatprep.subr.bf16.mxu1 %v8666_v34 }
 0x2f6   :  { %v2940_v39 = vpop.f32.mrf.mxu1  ;;  %3353 = vmatmul.mubr.bf16.gmra.mxu1 %v1993_v25 }
 0x2f7   :  { %v3135_v29 = vpop.f32.mrf.mxu0  ;;  %3548 = vmatmul.mubr.bf16.gmra.mxu0 %v10095_v20  ;;  %3360 = vmatprep.mubr.bf16.mxu1 %v8374_v1 }
 0x2f8   :  { %v8761_v2 = vadd.f32 %v3135_v29, %v2940_v39  ;;  %3555 = vmatprep.mubr.bf16.mxu0 %v8378_v40  ;;  %v2942_v19 = vpop.f32.mrf.mxu1  ;;  %6520 = vmatpush3.bf16.msra.mxu1 %v6792_v37  ;;  %v1995_v40 = vsel %vm1984_vm9, %v1992_v57, %v1994_v23  ;;  %v10098_v29 = vld [vmem:[#allocation4_spill] sm:$0xff] }
 0x2f9   :  { %v3137_v48 = vpop.f32.mrf.mxu0  ;;  %6521 = vmatprep.subr.bf16.mxu1 %v8666_v34  ;;  %v1996_v20 = vrot.slane %v10098_v29, 5 }
 0x2fa   :  { %v2943_v27 = vpop.f32.mrf.mxu1 }
 0x2fb   :  { %v3138_v4 = vpop.f32.mrf.mxu0 }
 0x2fc   :  { %v8769_v46 = vadd.f32 %v3138_v4, %v2943_v27  ;;  %v2945_v1 = vpop.f32.mrf.mxu1  ;;  %6522 = vmatpush3.bf16.msra.mxu1 %v6793_v60  ;;  %v1997_v4 = vsel %vm1984_vm9, %v1994_v23, %v1996_v20 }
 0x2fd   :  { %v3140_v14 = vpop.f32.mrf.mxu0 }
 0x2fe   :  { %v2948_v24 = vpop.f32.mrf.mxu1  ;;  %3361 = vmatmul.mubr.bf16.gmra.mxu1 %v1995_v40 }
 0x2ff   :  { %v3143_v36 = vpop.f32.mrf.mxu0  ;;  %3556 = vmatmul.mubr.bf16.gmra.mxu0 %v10097_v45  ;;  %3367 = vmatprep.mubr.bf16.mxu1 %v8395_v10  ;;  %v10099_v10 = vld [vmem:[#allocation23_spill] sm:$0xff] }
 0x300   :  { %v8774_v37 = vadd.f32 %v3143_v36, %v2948_v24  ;;  %3562 = vmatprep.mubr.bf16.mxu0 %v8401_v17  ;;  %v2950_v25 = vpop.f32.mrf.mxu1  ;;  %v1998_v36 = vrot.slane %v8048_v12, 5 }
 0x301   :  { %v3145_v39 = vpop.f32.mrf.mxu0 }
 0x302   :  { %v2951_v19 = vpop.f32.mrf.mxu1 }
 0x303   :  { %v3146_v60 = vpop.f32.mrf.mxu0 }
 0x304   :  { %v8778_v48 = vadd.f32 %v3146_v60, %v2951_v19  ;;  %v2953_v57 = vpop.f32.mrf.mxu1  ;;  %v1999_v60 = vsel %vm1984_vm9, %v1996_v20, %v1998_v36 }
 0x305   :  { %v3148_v27 = vpop.f32.mrf.mxu0 }
 0x306   :  { %v2956_v1 = vpop.f32.mrf.mxu1  ;;  %3368 = vmatmul.mubr.bf16.gmra.mxu1 %v1997_v4 }
 0x307   :  { %v3151_v14 = vpop.f32.mrf.mxu0  ;;  %3563 = vmatmul.mubr.bf16.gmra.mxu0 %v10099_v10  ;;  %3375 = vmatprep.mubr.bf16.mxu1 %v8420_v63 }
 0x308   :  { %v8783_v17 = vadd.f32 %v3151_v14, %v2956_v1  ;;  %3570 = vmatprep.mubr.bf16.mxu0 %v8424_v26  ;;  %v2958_v40 = vpop.f32.mrf.mxu1  ;;  %v10100_v1 = vld [vmem:[#allocation12_spill] sm:$0xff] }
 0x309   :  { %v3153_v24 = vpop.f32.mrf.mxu0  ;;  %v2000_v14 = vrot.slane %v10100_v1, 5 }
 0x30a   :  { %v2959_v45 = vpop.f32.mrf.mxu1 }
 0x30b   :  { %v3154_v25 = vpop.f32.mrf.mxu0 }
 0x30c   :  { %v8787_v39 = vadd.f32 %v3154_v25, %v2959_v45  ;;  %v2961_v23 = vpop.f32.mrf.mxu1  ;;  %v2001_v25 = vsel %vm1984_vm9, %v1998_v36, %v2000_v14 }
 0x30d   :  { %v3156_v19 = vpop.f32.mrf.mxu0 }
 0x30e   :  { %v2964_v57 = vpop.f32.mrf.mxu1  ;;  %3376 = vmatmul.mubr.bf16.gmra.mxu1 %v1999_v60 }
 0x30f   :  { %v3159_v27 = vpop.f32.mrf.mxu0  ;;  %3571 = vmatmul.mubr.bf16.gmra.mxu0 %v8184_v53  ;;  %3383 = vmatprep.mubr.bf16.mxu1 %v8433_v3  ;;  %v10101_v3 = vld [vmem:[#allocation25_spill] sm:$0xff] }
 0x310   :  { %v8792_v63 = vadd.f32 %v3159_v27, %v2964_v57  ;;  %3578 = vmatprep.mubr.bf16.mxu0 %v8437_v21  ;;  %v2966_v26 = vpop.f32.mrf.mxu1  ;;  %v2002_v57 = vrot.slane %v8088_v41, 5 }
 0x311   :  { %v3161_v4 = vpop.f32.mrf.mxu0 }
 0x312   :  { %v2967_v10 = vpop.f32.mrf.mxu1  ;;  %v2003_v36 = vsel %vm1984_vm9, %v2000_v14, %v2002_v57 }
 0x313   :  { %v3162_v40 = vpop.f32.mrf.mxu0 }
 0x314   :  { %v8796_v24 = vadd.f32 %v3162_v40, %v2967_v10  ;;  %v2969_v20 = vpop.f32.mrf.mxu1 }
 0x315   :  { %v3164_v45 = vpop.f32.mrf.mxu0 }
 0x316   :  { %v2972_v23 = vpop.f32.mrf.mxu1  ;;  %3384 = vmatmul.mubr.bf16.gmra.mxu1 %v2001_v25  ;;  %v10102_v45 = vld [vmem:[#allocation8_spill] sm:$0xff] }
 0x317   :  { %v3167_v53 = vpop.f32.mrf.mxu0  ;;  %3579 = vmatmul.mubr.bf16.gmra.mxu0 %v10101_v3  ;;  %3391 = vmatprep.mubr.bf16.mxu1 %v8448_v52  ;;  %v10103_v52 = vld [vmem:[#allocation6_spill] sm:$0xff]  ;;  %v10106_v3 = vld [vmem:[#allocation9_spill] sm:$0xff] }
 0x318   :  { %v8801_v21 = vadd.f32 %v3167_v53, %v2972_v23  ;;  %3586 = vmatprep.mubr.bf16.mxu0 %v8453_v8  ;;  %v2974_v19 = vpop.f32.mrf.mxu1  ;;  %v10105_v8 = vld [vmem:[#allocation14_spill] sm:$0xff] }
 0x319   :  { %v3169_v60 = vpop.f32.mrf.mxu0  ;;  %v2004_v19 = vrot.slane %v10106_v3, 5 }
 0x31a   :  { %v2975_v27 = vpop.f32.mrf.mxu1 }
 0x31b   :  { %v3170_v26 = vpop.f32.mrf.mxu0 }
 0x31c   :  { %v2976_v4 = vpop.f32.mrf.mxu1 }
 0x31d   :  { %v3171_v10 = vpop.f32.mrf.mxu0 }
 0x31e   :  { %v2979_v40 = vpop.f32.mrf.mxu1  ;;  %3392 = vmatmul.mubr.bf16.gmra.mxu1 %v2003_v36  ;;  %v2005_v10 = vsel %vm1984_vm9, %v2002_v57, %v2004_v19 }
 0x31f   :  { %v3174_v20 = vpop.f32.mrf.mxu0  ;;  %3587 = vmatmul.mubr.bf16.gmra.mxu0 %v10102_v45  ;;  %3399 = vmatprep.mubr.bf16.mxu1 %v10103_v52  ;;  %v10108_v52 = vld [vmem:[#allocation16_spill] sm:$0xff] }
 0x320   :  { %v8808_v25 = vadd.f32 %v3174_v20, %v2979_v40  ;;  %3594 = vmatprep.mubr.bf16.mxu0 %v10105_v8  ;;  %v2981_v23 = vpop.f32.mrf.mxu1  ;;  %v10109_v40 = vld [vmem:[#allocation26_spill] sm:$0xff]  ;;  %v10111_v8 = vld [vmem:[#allocation27_spill] sm:$0xff] }
 0x321   :  { %v3176_v53 = vpop.f32.mrf.mxu0 }
 0x322   :  { %10104 = vst [vmem:[#allocation15_spill] sm:$0xff] %v8808_v25  ;;  %v2982_v60 = vpop.f32.mrf.mxu1  ;;  %v10112_v25 = vld [vmem:[#allocation10_spill] sm:$0xff] }
 0x323   :  { %v3177_v27 = vpop.f32.mrf.mxu0 }
 0x324   :  { %v8812_v26 = vadd.f32 %v3177_v27, %v2982_v60  ;;  %v2984_v14 = vpop.f32.mrf.mxu1  ;;  %v2006_v60 = vrot.slane %v10112_v25, 5 }
 0x325   :  { %v3179_v4 = vpop.f32.mrf.mxu0 }
 0x326   :  { %10107 = vst [vmem:[#allocation7_spill] sm:$0xff] %v8812_v26  ;;  %v2987_v36 = vpop.f32.mrf.mxu1  ;;  %3400 = vmatmul.mubr.bf16.gmra.mxu1 %v2005_v10  ;;  %v2007_v10 = vsel %vm1984_vm9, %v2004_v19, %v2006_v60 }
 0x327   :  { %v3182_v45 = vpop.f32.mrf.mxu0  ;;  %3595 = vmatmul.mubr.bf16.gmra.mxu0 %v10108_v52  ;;  %3406 = vmatprep.mubr.bf16.mxu1 %v10109_v40  ;;  %v10114_v40 = vld [vmem:[#allocation24_spill] sm:$0xff] }
 0x328   :  { %v8817_v20 = vadd.f32 %v3182_v45, %v2987_v36  ;;  %3601 = vmatprep.mubr.bf16.mxu0 %v10111_v8  ;;  %v2989_v23 = vpop.f32.mrf.mxu1  ;;  %v10115_v36 = vld [vmem:[#allocation28_spill] sm:$0xff]  ;;  %v10116_v8 = vld [vmem:[#allocation29_spill] sm:$0xff] }
 0x329   :  { %v3184_v53 = vpop.f32.mrf.mxu0 }
 0x32a   :  { %10110 = vst [vmem:[#allocation13_spill] sm:$0xff] %v8817_v20  ;;  %v2990_v27 = vpop.f32.mrf.mxu1 }
 0x32b   :  { %v3185_v14 = vpop.f32.mrf.mxu0 }
 0x32c   :  { %v8821_v4 = vadd.f32 %v3185_v14, %v2990_v27  ;;  %v2992_v57 = vpop.f32.mrf.mxu1  ;;  %v2008_v27 = vrot.slane %v8200_v54, 5 }
 0x32d   :  { %v3187_v26 = vpop.f32.mrf.mxu0 }
 0x32e   :  { %10113 = vst [vmem:[#allocation18_spill] sm:$0xff] %v8821_v4  ;;  %v2995_v3 = vpop.f32.mrf.mxu1  ;;  %3407 = vmatmul.mubr.bf16.gmra.mxu1 %v2007_v10  ;;  %v2009_v10 = vsel %vm1984_vm9, %v2006_v60, %v2008_v27 }
 0x32f   :  { %v3190_v52 = vpop.f32.mrf.mxu0  ;;  %3602 = vmatmul.mubr.bf16.gmra.mxu0 %v10114_v40  ;;  %3414 = vmatprep.mubr.bf16.mxu1 %v10115_v36  ;;  %v10119_v36 = vld [vmem:[#allocation31_spill] sm:$0xff] }
 0x330   :  { %v8826_v45 = vadd.f32 %v3190_v52, %v2995_v3  ;;  %3609 = vmatprep.mubr.bf16.mxu0 %v10116_v8  ;;  %v2997_v23 = vpop.f32.mrf.mxu1  ;;  %v10118_v3 = vld [vmem:[#allocation30_spill] sm:$0xff] }
 0x331   :  { %v3192_v53 = vpop.f32.mrf.mxu0 }
 0x332   :  { %v2998_v14 = vpop.f32.mrf.mxu1  ;;  %v2010_v53 = vrot.slane %v8225_v56, 5 }
 0x333   :  { %v3193_v57 = vpop.f32.mrf.mxu0 }
 0x334   :  { %v8830_v26 = vadd.f32 %v3193_v57, %v2998_v14  ;;  %v3000_v19 = vpop.f32.mrf.mxu1 }
 0x335   :  { %v3195_v4 = vpop.f32.mrf.mxu0 }
 0x336   :  { %10117 = vst [vmem:[#allocation20_spill] sm:$0xff] %v8830_v26  ;;  %v3003_v20 = vpop.f32.mrf.mxu1  ;;  %3415 = vmatmul.mubr.bf16.gmra.mxu1 %v2009_v10  ;;  %v2011_v10 = vsel %vm1984_vm9, %v2008_v27, %v2010_v53 }
 0x337   :  { %v3198_v40 = vpop.f32.mrf.mxu0  ;;  %3610 = vmatmul.mubr.bf16.gmra.mxu0 %v8606_v6  ;;  %3422 = vmatprep.mubr.bf16.mxu1 %v10118_v3  ;;  %v10122_v3 = vld [vmem:[#allocation33_spill] sm:$0xff] }
 0x338   :  { %v8835_v52 = vadd.f32 %v3198_v40, %v3003_v20  ;;  %3617 = vmatprep.mubr.bf16.mxu0 %v10119_v36  ;;  %v3005_v8 = vpop.f32.mrf.mxu1  ;;  %v10121_v20 = vld [vmem:[#allocation32_spill] sm:$0xff] }
 0x339   :  { %v3200_v23 = vpop.f32.mrf.mxu0 }
 0x33a   :  { %v3006_v14 = vpop.f32.mrf.mxu1  ;;  %v2012_v23 = vrot.slane %v8239_v22, 5 }
 0x33b   :  { %v3201_v57 = vpop.f32.mrf.mxu0 }
 0x33c   :  { %v8839_v4 = vadd.f32 %v3201_v57, %v3006_v14  ;;  %v3008_v60 = vpop.f32.mrf.mxu1  ;;  %v2013_v27 = vsel %vm1984_vm9, %v2010_v53, %v2012_v23 }
 0x33d   :  { %v3203_v19 = vpop.f32.mrf.mxu0 }
 0x33e   :  { %10120 = vst [vmem:[#allocation22_spill] sm:$0xff] %v8839_v4  ;;  %v3011_v26 = vpop.f32.mrf.mxu1  ;;  %3423 = vmatmul.mubr.bf16.gmra.mxu1 %v2011_v10 }
 0x33f   :  { %v3206_v6 = vpop.f32.mrf.mxu0  ;;  %3618 = vmatmul.mubr.bf16.gmra.mxu0 %v8623_v18  ;;  %3430 = vmatprep.mubr.bf16.mxu1 %v10121_v20  ;;  %v10123_v18 = vld [vmem:[#allocation34_spill] sm:$0xff] }
 0x340   :  { %v8844_v40 = vadd.f32 %v3206_v6, %v3011_v26  ;;  %3625 = vmatprep.mubr.bf16.mxu0 %v10122_v3  ;;  %v3013_v36 = vpop.f32.mrf.mxu1  ;;  %v10124_v6 = vld [vmem:[#allocation35_spill] sm:$0xff] }
 0x341   :  { %v3208_v8 = vpop.f32.mrf.mxu0  ;;  %v2014_v36 = vrot.slane %v8430_v62, 5 }
 0x342   :  { %v3014_v14 = vpop.f32.mrf.mxu1 }
 0x343   :  { %v3209_v57 = vpop.f32.mrf.mxu0 }
 0x344   :  { %v3015_v60 = vpop.f32.mrf.mxu1 }
 0x345   :  { %v3210_v19 = vpop.f32.mrf.mxu0 }
 0x346   :  { %v3018_v10 = vpop.f32.mrf.mxu1  ;;  %3431 = vmatmul.mubr.bf16.gmra.mxu1 %v2013_v27  ;;  %v2015_v19 = vsel %vm1984_vm9, %v2012_v23, %v2014_v36 }
 0x347   :  { %v3213_v4 = vpop.f32.mrf.mxu0  ;;  %3626 = vmatmul.mubr.bf16.gmra.mxu0 %v8635_v55  ;;  %3438 = vmatprep.mubr.bf16.mxu1 %v10123_v18  ;;  %v10127_v18 = vld [vmem:[#allocation37_spill] sm:$0xff] }
 0x348   :  { %v8851_v26 = vadd.f32 %v3213_v4, %v3018_v10  ;;  %3633 = vmatprep.mubr.bf16.mxu0 %v10124_v6  ;;  %v3020_v20 = vpop.f32.mrf.mxu1  ;;  %v10126_v4 = vld [vmem:[#allocation36_spill] sm:$0xff] }
 0x349   :  { %v3215_v3 = vpop.f32.mrf.mxu0 }
 0x34a   :  { %v3021_v8 = vpop.f32.mrf.mxu1  ;;  %v2016_v3 = vrot.slane %v8441_v42, 5 }
 0x34b   :  { %v3216_v14 = vpop.f32.mrf.mxu0 }
 0x34c   :  { %v8855_v57 = vadd.f32 %v3216_v14, %v3021_v8  ;;  %v3023_v53 = vpop.f32.mrf.mxu1 }
 0x34d   :  { %v3218_v60 = vpop.f32.mrf.mxu0 }
 0x34e   :  { %10125 = vst [vmem:[#allocation11_spill] sm:$0xff] %v8855_v57  ;;  %v3026_v27 = vpop.f32.mrf.mxu1  ;;  %3439 = vmatmul.mubr.bf16.gmra.mxu1 %v2015_v19  ;;  %v2017_v19 = vsel %vm1984_vm9, %v2014_v36, %v2016_v3 }
 0x34f   :  { %v3221_v55 = vpop.f32.mrf.mxu0  ;;  %3634 = vmatmul.mubr.bf16.gmra.mxu0 %v8647_v5  ;;  %3445 = vmatprep.mubr.bf16.mxu1 %v10126_v4 }
 0x350   :  { %v8860_v10 = vadd.f32 %v3221_v55, %v3026_v27  ;;  %3640 = vmatprep.mubr.bf16.mxu0 %v10127_v18  ;;  %v3028_v6 = vpop.f32.mrf.mxu1  ;;  %v2018_v18 = vrot.slane %v8445_v28, 5 }
 0x351   :  { %v3223_v20 = vpop.f32.mrf.mxu0 }
 0x352   :  { %v3029_v8 = vpop.f32.mrf.mxu1 }
 0x353   :  { %v3224_v14 = vpop.f32.mrf.mxu0 }
 0x354   :  { %v8864_v53 = vadd.f32 %v3224_v14, %v3029_v8  ;;  %v3031_v23 = vpop.f32.mrf.mxu1 }
 0x355   :  { %v3226_v60 = vpop.f32.mrf.mxu0  ;;  %v2019_v23 = vsel %vm1984_vm9, %v2016_v3, %v2018_v18 }
 0x356   :  { %v3034_v57 = vpop.f32.mrf.mxu1  ;;  %3446 = vmatmul.mubr.bf16.gmra.mxu1 %v2017_v19 }
 0x357   :  { %v3229_v5 = vpop.f32.mrf.mxu0  ;;  %3641 = vmatmul.mubr.bf16.gmra.mxu0 %v8659_v32  ;;  %3453 = vmatprep.mubr.bf16.mxu1 %v8578_v33  ;;  %v2233_v33 = vrot.slane %v8678_v49, 1 }
 0x358   :  { %v8869_v27 = vadd.f32 %v3229_v5, %v3034_v57  ;;  %3648 = vmatprep.mubr.bf16.mxu0 %v8585_v38  ;;  %v3036_v55 = vpop.f32.mrf.mxu1  ;;  %v2234_v38 = vrot.slane %v8675_v31, 2 }
 0x359   :  { %v3231_v4 = vpop.f32.mrf.mxu0  ;;  %v2020_v55 = vrot.slane %v8495_v47, 5 }
 0x35a   :  { %v3037_v6 = vpop.f32.mrf.mxu1 }
 0x35b   :  { %v3232_v20 = vpop.f32.mrf.mxu0 }
 0x35c   :  { %v8873_v8 = vadd.f32 %v3232_v20, %v3037_v6  ;;  %v3039_v36 = vpop.f32.mrf.mxu1  ;;  %v2235_v6 = vor.u32 %v2234_v38, %v2233_v33 }
 0x35d   :  { %v3234_v14 = vpop.f32.mrf.mxu0 }
 0x35e   :  { %v3042_v60 = vpop.f32.mrf.mxu1  ;;  %3454 = vmatmul.mubr.bf16.gmra.mxu1 %v2019_v23  ;;  %v2127_v23 = vrot.slane %v8678_v49, 5 }
 0x35f   :  { %v3237_v32 = vpop.f32.mrf.mxu0  ;;  %3649 = vmatmul.mubr.bf16.gmra.mxu0 %v8683_v35  ;;  %3461 = vmatprep.mubr.bf16.mxu1 %v8593_v44  ;;  %v2021_v44 = vsel %vm1984_vm9, %v2018_v18, %v2020_v55  ;;  %v2022_v18 = vrot.slane %v8514_v50, 5 }
 0x360   :  { %v8880_v57 = vadd.f32 %v3237_v32, %v3042_v60  ;;  %3656 = vmatprep.mubr.bf16.mxu0 %v8598_v11  ;;  %v3044_v19 = vpop.f32.mrf.mxu1  ;;  %v2128_v60 = vrot.slane %v8675_v31, 6  ;;  %v2236_v32 = vsel %vm2157_vm8, %v8587_v7, %v2235_v6 }
 0x361   :  { %v3239_v5 = vpop.f32.mrf.mxu0 }
 0x362   :  { %v3045_v3 = vpop.f32.mrf.mxu1 }
 0x363   :  { %v3240_v4 = vpop.f32.mrf.mxu0 }
 0x364   :  { %v8884_v20 = vadd.f32 %v3240_v4, %v3045_v3  ;;  %v3047_v35 = vpop.f32.mrf.mxu1  ;;  %v2129_v3 = vor.u32 %v2128_v60, %v2127_v23  ;;  %v2024_v60 = vrot.slane %v8670_v13, 5 }
 0x365   :  { %v3242_v36 = vpop.f32.mrf.mxu0  ;;  %v2023_v35 = vsel %vm1984_vm9, %v2020_v55, %v2022_v18 }
 0x366   :  { %v3050_v14 = vpop.f32.mrf.mxu1  ;;  %3462 = vmatmul.mubr.bf16.gmra.mxu1 %v2021_v44  ;;  %v2130_v7 = vsel %vm2047_vm7, %v8600_v58, %v2129_v3  ;;  %v2154_v58 = vsel %vm1816_vm5, %v8701_v0, %v8701_v0 }
 0x367   :  { %v3245_v11 = vpop.f32.mrf.mxu0  ;;  %3657 = vmatmul.mubr.bf16.gmra.mxu0 %v8695_v30  ;;  %3469 = vmatprep.mubr.bf16.mxu1 %v8611_v43  ;;  %v2245_v30 = vsel %vm2157_vm8, %v2235_v6, %v2235_v6 }
 0x368   :  { %v8893_v33 = vadd.f32 %v3245_v11, %v3050_v14  ;;  %3664 = vmatprep.mubr.bf16.mxu0 %v2236_v32  ;;  %v3052_v38 = vpop.f32.mrf.mxu1 }
 0x369   :  { %v3247_v19 = vpop.f32.mrf.mxu0 }
 0x36a   :  { %v3053_v5 = vpop.f32.mrf.mxu1 }
 0x36b   :  { %v3248_v49 = vpop.f32.mrf.mxu0 }
 0x36c   :  { %v3054_v4 = vpop.f32.mrf.mxu1 }
 0x36d   :  { %v3249_v31 = vpop.f32.mrf.mxu0 }
 0x36e   :  { %v3057_v43 = vpop.f32.mrf.mxu1  ;;  %3470 = vmatmul.mubr.bf16.gmra.mxu1 %v2023_v35 }
 0x36f   :  { %v3252_v36 = vpop.f32.mrf.mxu0  ;;  %3665 = vmatmul.mubr.bf16.gmra.mxu0 %v8707_v15  ;;  %3477 = vmatprep.mubr.bf16.mxu1 %v2130_v7  ;;  %v2025_v15 = vsel %vm1984_vm9, %v2022_v18, %v2024_v60 }
 0x370   :  { %v8901_v44 = vadd.f32 %v3252_v36, %v3057_v43  ;;  %v3059_v14 = vpop.f32.mrf.mxu1  ;;  %3672 = vmatprep.mubr.bf16.mxu0 %v2245_v30 }
 0x371   :  { %v3254_v23 = vpop.f32.mrf.mxu0 }
 0x372   :  { %v3060_v11 = vpop.f32.mrf.mxu1 }
 0x373   :  { %v3255_v55 = vpop.f32.mrf.mxu0 }
 0x374   :  { %v8904_v32 = vadd.f32 %v3255_v55, %v3060_v11  ;;  %v3062_v38 = vpop.f32.mrf.mxu1  ;;  %v2268_v55 = vrot.slane %v10088_v9, 2 }
 0x375   :  { %v3257_v19 = vpop.f32.mrf.mxu0  ;;  %v2269_v38 = vrot.slane %v10090_v59, 2  ;;  %v2271_v59 = vrot.slane %v10092_v61, 2  ;;  %v2273_v61 = vrot.slane %v10094_v51, 2 }
 0x376   :  { %v3065_v5 = vpop.f32.mrf.mxu1  ;;  %3478 = vmatmul.mubr.bf16.gmra.mxu1 %v2025_v15 }
 0x377   :  { %v3260_v49 = vpop.f32.mrf.mxu0  ;;  %3673 = vmatmul.mubr.bf16.gmra.mxu0 %v2154_v58  ;;  %3484 = vmatprep.mubr.bf16.mxu1 %v2129_v3 }
 0x378   :  { %v8910_v4 = vadd.f32 %v3260_v49, %v3065_v5  ;;  %v3067_v31 = vpop.f32.mrf.mxu1  ;;  %3679 = vmatprep.mubr.bf16.mxu0 %v2235_v6  ;;  %v2270_v49 = vsel %vm2267_vm11, %v2268_v55, %v2269_v38 }
 0x379   :  { %v3262_v35 = vpop.f32.mrf.mxu0 }
 0x37a   :  { %v3068_v30 = vpop.f32.mrf.mxu1 }
 0x37b   :  { %v3263_v43 = vpop.f32.mrf.mxu0 }
 0x37c   :  { %v8912_v7 = vadd.f32 %v3263_v43, %v3068_v30  ;;  %v3070_v36 = vpop.f32.mrf.mxu1 }
 0x37d   :  { %v3265_v14 = vpop.f32.mrf.mxu0 }
 0x37e   :  { %v3073_v23 = vpop.f32.mrf.mxu1  ;;  %3485 = vmatmul.mubr.bf16.gmra.mxu1 %v2024_v60 }
 0x37f   :  { %v3268_v11 = vpop.f32.mrf.mxu0  ;;  %6523 = vmatprep.mubr.msk.bf16.mxu1 %vm6883_vm10, %v8666_v34  ;;  %3680 = vmatmul.mubr.bf16.gmra.mxu0 %v8701_v0 }
 0x380   :  { %v8917_v18 = vadd.f32 %v3268_v11, %v3073_v23  ;;  %v3075_v3 = vpop.f32.mrf.mxu1 }
 0x381   :  { %v3270_v6 = vpop.f32.mrf.mxu0  ;;  %v2272_v3 = vsel %vm2267_vm11, %v2269_v38, %v2271_v59 }
 0x382   :  { %v3076_v58 = vpop.f32.mrf.mxu1 }
 0x383   :  { %v3271_v19 = vpop.f32.mrf.mxu0 }
 0x384   :  { %v8921_v15 = vadd.f32 %v3271_v19, %v3076_v58  ;;  %v3078_v60 = vpop.f32.mrf.mxu1 }
 0x385   :  { %v3273_v5 = vpop.f32.mrf.mxu0 }
 0x386   :  { %v3081_v31 = vpop.f32.mrf.mxu1  ;;  %6524 = vmatmul.mubr.bf16.vlgmr.msra.gmra.mxu1 %v2270_v49 }
 0x387   :  { %v3276_v0 = vpop.f32.mrf.mxu0  ;;  %6527 = vmatprep.mubr.msk.bf16.mxu1 %vm6883_vm10, %v8666_v34 }
 0x388   :  { %v8926_v35 = vadd.f32 %v3276_v0, %v3081_v31  ;;  %v3083_v9 = vpop.f32.mrf.mxu1 }
 0x389   :  { %v3278_v30 = vpop.f32.mrf.mxu0  ;;  %v2274_v9 = vsel %vm2267_vm11, %v2271_v59, %v2273_v61 }
 0x38a   :  { %v3084_v43 = vpop.f32.mrf.mxu1 }
 0x38b   :  { %v3279_v36 = vpop.f32.mrf.mxu0 }
 0x38c   :  { %v8929_v14 = vadd.f32 %v3279_v36, %v3084_v43  ;;  %v3086_v23 = vpop.f32.mrf.mxu1 }
 0x38d   :  { %v3281_v11 = vpop.f32.mrf.mxu0  ;;  %v2275_v23 = vrot.slane %v10096_v16, 2  ;;  %v2277_v16 = vrot.slane %v10098_v29, 2 }
 0x38e   :  { %v3089_v6 = vpop.f32.mrf.mxu1  ;;  %6528 = vmatmul.mubr.bf16.gmra.mxu1 %v2272_v3 }
 0x38f   :  { %v3284_v55 = vpop.f32.mrf.mxu0  ;;  %6531 = vmatprep.mubr.msk.bf16.mxu1 %vm6883_vm10, %v8666_v34 }
 0x390   :  { %v8934_v58 = vadd.f32 %v3284_v55, %v3089_v6  ;;  %v3091_v19 = vpop.f32.mrf.mxu1  ;;  %v2276_v55 = vsel %vm2267_vm11, %v2273_v61, %v2275_v23 }
 0x391   :  { %v3286_v60 = vpop.f32.mrf.mxu0 }
 0x392   :  { %v3092_v5 = vpop.f32.mrf.mxu1 }
 0x393   :  { %v3287_v49 = vpop.f32.mrf.mxu0 }
 0x394   :  { %v3093_v31 = vpop.f32.mrf.mxu1 }
 0x395   :  { %v3288_v0 = vpop.f32.mrf.mxu0 }
 0x396   :  { %v3096_v30 = vpop.f32.mrf.mxu1  ;;  %6532 = vmatmul.mubr.bf16.gmra.mxu1 %v2274_v9 }
 0x397   :  { %v3291_v38 = vpop.f32.mrf.mxu0  ;;  %6535 = vmatprep.mubr.msk.bf16.mxu1 %vm6883_vm10, %v8666_v34 }
 0x398   :  { %v3097_v43 = vpop.f32.mrf.mxu1 }
 0x399   :  { %v3292_v36 = vpop.f32.mrf.mxu0 }
 0x39a   :  { %v3098_v11 = vpop.f32.mrf.mxu1 }
 0x39b   :  { %v3293_v3 = vpop.f32.mrf.mxu0 }
 0x39c   :  { %v3099_v6 = vpop.f32.mrf.mxu1 }
 0x39d   :  { %v3294_v51 = vpop.f32.mrf.mxu0 }
 0x39e   :  { %v3330_v19 = vpop.f32.mrf.mxu1  ;;  %6536 = vmatmul.mubr.bf16.gmra.mxu1 %v2276_v55 }
 0x39f   :  { %v3331_v59 = vadd.f32 %v3330_v19, %v8761_v2  ;;  %v3525_v60 = vpop.f32.mrf.mxu0  ;;  %6539 = vmatprep.mubr.msk.bf16.mxu1 %vm6883_vm10, %v8666_v34  ;;  %v2278_v2 = vsel %vm2267_vm11, %v2275_v23, %v2277_v16 }
 0x3a0   :  { %v3332_v5 = vpop.f32.mrf.mxu1 }
 0x3a1   :  { %v8945_v49 = vadd.f32 %v3525_v60, %v3331_v59  ;;  %v3527_v31 = vpop.f32.mrf.mxu0 }
 0x3a2   :  { %v3333_v0 = vpop.f32.mrf.mxu1 }
 0x3a3   :  { %v3334_v9 = vadd.f32 %v3333_v0, %v8769_v46  ;;  %v3528_v30 = vpop.f32.mrf.mxu0  ;;  %v2279_v46 = vrot.slane %v8048_v12, 2 }
 0x3a4   :  { %v3335_v38 = vpop.f32.mrf.mxu1 }
 0x3a5   :  { %v8949_v61 = vadd.f32 %v3528_v30, %v3334_v9  ;;  %v3530_v43 = vpop.f32.mrf.mxu0 }
 0x3a6   :  { %v3338_v36 = vpop.f32.mrf.mxu1  ;;  %6540 = vmatmul.mubr.bf16.gmra.mxu1 %v2278_v2 }
 0x3a7   :  { %v3339_v11 = vadd.f32 %v3338_v36, %v8774_v37  ;;  %v3533_v3 = vpop.f32.mrf.mxu0  ;;  %6543 = vmatprep.mubr.msk.bf16.mxu1 %vm6883_vm10, %v8666_v34  ;;  %v2280_v37 = vsel %vm2267_vm11, %v2277_v16, %v2279_v46 }
 0x3a8   :  { %v3340_v6 = vpop.f32.mrf.mxu1 }
 0x3a9   :  { %v8955_v29 = vadd.f32 %v3533_v3, %v3339_v11  ;;  %v3535_v51 = vpop.f32.mrf.mxu0 }
 0x3aa   :  { %v3341_v55 = vpop.f32.mrf.mxu1 }
 0x3ab   :  { %v3342_v19 = vadd.f32 %v3341_v55, %v8778_v48  ;;  %v3536_v59 = vpop.f32.mrf.mxu0  ;;  %v2281_v48 = vrot.slane %v10100_v1, 2 }
 0x3ac   :  { %v3343_v60 = vpop.f32.mrf.mxu1 }
 0x3ad   :  { %v8959_v23 = vadd.f32 %v3536_v59, %v3342_v19  ;;  %v3538_v5 = vpop.f32.mrf.mxu0 }
 0x3ae   :  { %v3346_v31 = vpop.f32.mrf.mxu1  ;;  %6544 = vmatmul.mubr.bf16.gmra.mxu1 %v2280_v37 }
 0x3af   :  { %v3347_v0 = vadd.f32 %v3346_v31, %v8783_v17  ;;  %v3541_v9 = vpop.f32.mrf.mxu0  ;;  %6547 = vmatprep.mubr.msk.bf16.mxu1 %vm6883_vm10, %v8666_v34  ;;  %v2282_v17 = vsel %vm2267_vm11, %v2279_v46, %v2281_v48 }
 0x3b0   :  { %v3348_v30 = vpop.f32.mrf.mxu1 }
 0x3b1   :  { %v8965_v12 = vadd.f32 %v3541_v9, %v3347_v0  ;;  %v3543_v38 = vpop.f32.mrf.mxu0 }
 0x3b2   :  { %v3349_v43 = vpop.f32.mrf.mxu1 }
 0x3b3   :  { %v3350_v2 = vadd.f32 %v3349_v43, %v8787_v39  ;;  %v3544_v36 = vpop.f32.mrf.mxu0  ;;  %v2283_v39 = vrot.slane %v8088_v41, 2 }
 0x3b4   :  { %v3351_v11 = vpop.f32.mrf.mxu1 }
 0x3b5   :  { %v8969_v16 = vadd.f32 %v3544_v36, %v3350_v2  ;;  %v3546_v3 = vpop.f32.mrf.mxu0 }
 0x3b6   :  { %v3354_v6 = vpop.f32.mrf.mxu1  ;;  %6548 = vmatmul.mubr.bf16.gmra.mxu1 %v2282_v17 }
 0x3b7   :  { %v3355_v51 = vadd.f32 %v3354_v6, %v8792_v63  ;;  %v3549_v55 = vpop.f32.mrf.mxu0  ;;  %6551 = vmatprep.mubr.msk.bf16.mxu1 %vm6883_vm10, %v8666_v34  ;;  %v2284_v63 = vsel %vm2267_vm11, %v2281_v48, %v2283_v39 }
 0x3b8   :  { %v3356_v19 = vpop.f32.mrf.mxu1 }
 0x3b9   :  { %v8975_v1 = vadd.f32 %v3549_v55, %v3355_v51  ;;  %v3551_v59 = vpop.f32.mrf.mxu0  ;;  %v10129_v55 = vld [vmem:[#allocation15_spill] sm:$0xff] }
 0x3ba   :  { %v3357_v60 = vpop.f32.mrf.mxu1 }
 0x3bb   :  { %v3358_v5 = vadd.f32 %v3357_v60, %v8796_v24  ;;  %v3552_v37 = vpop.f32.mrf.mxu0  ;;  %v10128_v24 = vld [vmem:[#allocation9_spill] sm:$0xff] }
 0x3bc   :  { %v3359_v31 = vpop.f32.mrf.mxu1  ;;  %v2285_v36 = vrot.slane %v10128_v24, 2  ;;  %v10131_v24 = vld [vmem:[#allocation13_spill] sm:$0xff] }
 0x3bd   :  { %v8979_v46 = vadd.f32 %v3552_v37, %v3358_v5  ;;  %v3554_v0 = vpop.f32.mrf.mxu0  ;;  %v2287_v37 = vrot.slane %v10112_v25, 2 }
 0x3be   :  { %v3362_v9 = vpop.f32.mrf.mxu1  ;;  %6552 = vmatmul.mubr.bf16.gmra.mxu1 %v2284_v63  ;;  %v2286_v48 = vsel %vm2267_vm11, %v2283_v39, %v2285_v36  ;;  %v10130_v0 = vld [vmem:[#allocation7_spill] sm:$0xff] }
 0x3bf   :  { %v3363_v30 = vadd.f32 %v3362_v9, %v8801_v21  ;;  %v3557_v38 = vpop.f32.mrf.mxu0  ;;  %6555 = vmatprep.mubr.msk.bf16.mxu1 %vm6883_vm10, %v8666_v34 }
 0x3c0   :  { %v3364_v43 = vpop.f32.mrf.mxu1 }
 0x3c1   :  { %v8985_v41 = vadd.f32 %v3557_v38, %v3363_v30  ;;  %v3559_v2 = vpop.f32.mrf.mxu0  ;;  %v2288_v43 = vsel %vm2267_vm11, %v2285_v36, %v2287_v37 }
 0x3c2   :  { %v3365_v11 = vpop.f32.mrf.mxu1 }
 0x3c3   :  { %v3560_v3 = vpop.f32.mrf.mxu0 }
 0x3c4   :  { %v3366_v17 = vpop.f32.mrf.mxu1  ;;  %v9000_v3 = vld [vmem:[#allocation2] sm:$0xff] }
 0x3c5   :  { %v3561_v6 = vpop.f32.mrf.mxu0 }
 0x3c6   :  { %v3369_v51 = vpop.f32.mrf.mxu1  ;;  %6556 = vmatmul.mubr.bf16.gmra.mxu1 %v2286_v48  ;;  %v2289_v48 = vrot.slane %v8200_v54, 2 }
 0x3c7   :  { %v3370_v21 = vadd.f32 %v3369_v51, %v10129_v55  ;;  %v3564_v19 = vpop.f32.mrf.mxu0  ;;  %6559 = vmatprep.mubr.msk.bf16.mxu1 %vm6883_vm10, %v8666_v34  ;;  %v10132_v55 = vld [vmem:[#allocation18_spill] sm:$0xff] }
 0x3c8   :  { %v3371_v59 = vpop.f32.mrf.mxu1 }
 0x3c9   :  { %v8992_v60 = vadd.f32 %v3564_v19, %v3370_v21  ;;  %v3566_v5 = vpop.f32.mrf.mxu0 }
 0x3ca   :  { %v3372_v31 = vpop.f32.mrf.mxu1 }
 0x3cb   :  { %v3373_v63 = vadd.f32 %v3372_v31, %v10130_v0  ;;  %v3567_v9 = vpop.f32.mrf.mxu0  ;;  %v2290_v31 = vsel %vm2267_vm11, %v2287_v37, %v2289_v48 }
 0x3cc   :  { %v3374_v30 = vpop.f32.mrf.mxu1 }
 0x3cd   :  { %v8996_v39 = vadd.f32 %v3567_v9, %v3373_v63  ;;  %v3569_v38 = vpop.f32.mrf.mxu0 }
 0x3ce   :  { %v3377_v2 = vpop.f32.mrf.mxu1  ;;  %6560 = vmatmul.mubr.bf16.gmra.mxu1 %v2288_v43  ;;  %v2291_v43 = vrot.slane %v8225_v56, 2 }
 0x3cf   :  { %v3378_v34 = vadd.f32 %v3377_v2, %v10131_v24  ;;  %v3572_v11 = vpop.f32.mrf.mxu0  ;;  %6563 = vmatprep.mubr.msk.bf16.mxu1 %vm6883_vm10, %v9000_v3  ;;  %v10133_v24 = vld [vmem:[#allocation20_spill] sm:$0xff] }
 0x3d0   :  { %v3379_v25 = vpop.f32.mrf.mxu1 }
 0x3d1   :  { %v9004_v17 = vadd.f32 %v3572_v11, %v3378_v34  ;;  %v3574_v6 = vpop.f32.mrf.mxu0 }
 0x3d2   :  { %v3380_v51 = vpop.f32.mrf.mxu1 }
 0x3d3   :  { %v3381_v21 = vadd.f32 %v3380_v51, %v10132_v55  ;;  %v3575_v36 = vpop.f32.mrf.mxu0 }
 0x3d4   :  { %v3382_v19 = vpop.f32.mrf.mxu1 }
 0x3d5   :  { %v9008_v59 = vadd.f32 %v3575_v36, %v3381_v21  ;;  %v3577_v5 = vpop.f32.mrf.mxu0 }
 0x3d6   :  { %v3385_v0 = vpop.f32.mrf.mxu1  ;;  %6564 = vmatmul.mubr.bf16.gmra.mxu1 %v2290_v31  ;;  %v2293_v5 = vrot.slane %v8239_v22, 2 }
 0x3d7   :  { %v3386_v63 = vadd.f32 %v3385_v0, %v8826_v45  ;;  %v3580_v9 = vpop.f32.mrf.mxu0  ;;  %6567 = vmatprep.mubr.msk.bf16.mxu1 %vm6883_vm10, %v9000_v3  ;;  %v2292_v45 = vsel %vm2267_vm11, %v2289_v48, %v2291_v43  ;;  %v10134_v0 = vld [vmem:[#allocation22_spill] sm:$0xff] }
 0x3d8   :  { %v3387_v30 = vpop.f32.mrf.mxu1 }
 0x3d9   :  { %v9014_v54 = vadd.f32 %v3580_v9, %v3386_v63  ;;  %v3582_v38 = vpop.f32.mrf.mxu0 }
 0x3da   :  { %v3388_v2 = vpop.f32.mrf.mxu1 }
 0x3db   :  { %v3389_v34 = vadd.f32 %v3388_v2, %v10133_v24  ;;  %v3583_v11 = vpop.f32.mrf.mxu0 }
 0x3dc   :  { %v3390_v25 = vpop.f32.mrf.mxu1 }
 0x3dd   :  { %v9018_v37 = vadd.f32 %v3583_v11, %v3389_v34  ;;  %v3585_v6 = vpop.f32.mrf.mxu0 }
 0x3de   :  { %v3393_v51 = vpop.f32.mrf.mxu1  ;;  %6568 = vmatmul.mubr.bf16.gmra.mxu1 %v2292_v45  ;;  %v2295_v6 = vrot.slane %v8430_v62, 2  ;;  %v2297_v62 = vrot.slane %v8441_v42, 2 }
 0x3df   :  { %v3394_v55 = vadd.f32 %v3393_v51, %v8835_v52  ;;  %v3588_v21 = vpop.f32.mrf.mxu0  ;;  %6571 = vmatprep.mubr.msk.bf16.mxu1 %vm6883_vm10, %v9000_v3  ;;  %v2294_v52 = vsel %vm2267_vm11, %v2291_v43, %v2293_v5 }
 0x3e0   :  { %v3395_v36 = vpop.f32.mrf.mxu1  ;;  %v2296_v43 = vsel %vm2267_vm11, %v2293_v5, %v2295_v6 }
 0x3e1   :  { %v9024_v56 = vadd.f32 %v3588_v21, %v3394_v55  ;;  %v3590_v19 = vpop.f32.mrf.mxu0 }
 0x3e2   :  { %v3396_v31 = vpop.f32.mrf.mxu1 }
 0x3e3   :  { %v3397_v63 = vadd.f32 %v3396_v31, %v10134_v0  ;;  %v3591_v9 = vpop.f32.mrf.mxu0 }
 0x3e4   :  { %v3398_v30 = vpop.f32.mrf.mxu1 }
 0x3e5   :  { %v9028_v48 = vadd.f32 %v3591_v9, %v3397_v63  ;;  %v3593_v38 = vpop.f32.mrf.mxu0  ;;  %v10135_v30 = vld [vmem:[#allocation11_spill] sm:$0xff] }
 0x3e6   :  { %v3401_v2 = vpop.f32.mrf.mxu1  ;;  %6572 = vmatmul.mubr.bf16.gmra.mxu1 %v2294_v52 }
 0x3e7   :  { %v3402_v24 = vadd.f32 %v3401_v2, %v8844_v40  ;;  %v3596_v34 = vpop.f32.mrf.mxu0  ;;  %6575 = vmatprep.mubr.msk.bf16.mxu1 %vm6883_vm10, %v9000_v3 }
 0x3e8   :  { %v3403_v11 = vpop.f32.mrf.mxu1 }
 0x3e9   :  { %v9034_v22 = vadd.f32 %v3596_v34, %v3402_v24  ;;  %v3598_v25 = vpop.f32.mrf.mxu0 }
 0x3ea   :  { %v3404_v45 = vpop.f32.mrf.mxu1 }
 0x3eb   :  { %v3599_v51 = vpop.f32.mrf.mxu0 }
 0x3ec   :  { %v3405_v55 = vpop.f32.mrf.mxu1 }
 0x3ed   :  { %v3600_v21 = vpop.f32.mrf.mxu0  ;;  %v2299_v55 = vrot.slane %v8445_v28, 2 }
 0x3ee   :  { %v3408_v36 = vpop.f32.mrf.mxu1  ;;  %6576 = vmatmul.mubr.bf16.gmra.mxu1 %v2296_v43 }
 0x3ef   :  { %v3409_v40 = vadd.f32 %v3408_v36, %v8851_v26  ;;  %v3603_v19 = vpop.f32.mrf.mxu0  ;;  %6579 = vmatprep.mubr.msk.bf16.mxu1 %vm6883_vm10, %v9000_v3  ;;  %v2298_v26 = vsel %vm2267_vm11, %v2295_v6, %v2297_v62 }
 0x3f0   :  { %v3410_v31 = vpop.f32.mrf.mxu1 }
 0x3f1   :  { %v9041_v0 = vadd.f32 %v3603_v19, %v3409_v40  ;;  %v3605_v63 = vpop.f32.mrf.mxu0 }
 0x3f2   :  { %v3411_v9 = vpop.f32.mrf.mxu1 }
 0x3f3   :  { %v3412_v38 = vadd.f32 %v3411_v9, %v10135_v30  ;;  %v3606_v52 = vpop.f32.mrf.mxu0 }
 0x3f4   :  { %v3413_v2 = vpop.f32.mrf.mxu1 }
 0x3f5   :  { %v9045_v5 = vadd.f32 %v3606_v52, %v3412_v38  ;;  %v3608_v24 = vpop.f32.mrf.mxu0 }
 0x3f6   :  { %v3416_v34 = vpop.f32.mrf.mxu1  ;;  %6580 = vmatmul.mubr.bf16.gmra.mxu1 %v2298_v26 }
 0x3f7   :  { %v3417_v11 = vadd.f32 %v3416_v34, %v8860_v10  ;;  %v3611_v25 = vpop.f32.mrf.mxu0  ;;  %6583 = vmatprep.mubr.msk.bf16.mxu1 %vm6883_vm10, %v9000_v3  ;;  %v2300_v10 = vsel %vm2267_vm11, %v2297_v62, %v2299_v55 }
 0x3f8   :  { %v3418_v45 = vpop.f32.mrf.mxu1 }
 0x3f9   :  { %v9051_v42 = vadd.f32 %v3611_v25, %v3417_v11  ;;  %v3613_v51 = vpop.f32.mrf.mxu0 }
 0x3fa   :  { %v3419_v21 = vpop.f32.mrf.mxu1 }
 0x3fb   :  { %v3420_v43 = vadd.f32 %v3419_v21, %v8864_v53  ;;  %v3614_v36 = vpop.f32.mrf.mxu0  ;;  %v2301_v53 = vrot.slane %v8495_v47, 2 }
 0x3fc   :  { %v3421_v40 = vpop.f32.mrf.mxu1 }
 0x3fd   :  { %v9055_v6 = vadd.f32 %v3614_v36, %v3420_v43  ;;  %v3616_v19 = vpop.f32.mrf.mxu0 }
 0x3fe   :  { %v3424_v31 = vpop.f32.mrf.mxu1  ;;  %6584 = vmatmul.mubr.bf16.gmra.mxu1 %v2300_v10 }
 0x3ff   :  { %v3425_v63 = vadd.f32 %v3424_v31, %v8869_v27  ;;  %v3619_v9 = vpop.f32.mrf.mxu0  ;;  %6587 = vmatprep.mubr.msk.bf16.mxu1 %vm6883_vm10, %v9000_v3  ;;  %v2302_v27 = vsel %vm2267_vm11, %v2299_v55, %v2301_v53 }
 0x400   :  { %v3426_v30 = vpop.f32.mrf.mxu1 }
 0x401   :  { %v9061_v28 = vadd.f32 %v3619_v9, %v3425_v63  ;;  %v3621_v38 = vpop.f32.mrf.mxu0 }
 0x402   :  { %v3427_v52 = vpop.f32.mrf.mxu1 }
 0x403   :  { %v3428_v2 = vadd.f32 %v3427_v52, %v8873_v8  ;;  %v3622_v24 = vpop.f32.mrf.mxu0  ;;  %v2303_v8 = vrot.slane %v8514_v50, 2 }
 0x404   :  { %v3429_v26 = vpop.f32.mrf.mxu1 }
 0x405   :  { %v9065_v62 = vadd.f32 %v3622_v24, %v3428_v2  ;;  %v3624_v34 = vpop.f32.mrf.mxu0 }
 0x406   :  { %v3432_v11 = vpop.f32.mrf.mxu1  ;;  %6588 = vmatmul.mubr.bf16.gmra.mxu1 %v2302_v27 }
 0x407   :  { %v3433_v25 = vadd.f32 %v3432_v11, %v8880_v57  ;;  %v3627_v45 = vpop.f32.mrf.mxu0  ;;  %6591 = vmatprep.mubr.msk.bf16.mxu1 %vm6883_vm10, %v9000_v3  ;;  %v2304_v57 = vsel %vm2267_vm11, %v2301_v53, %v2303_v8 }
 0x408   :  { %v3434_v51 = vpop.f32.mrf.mxu1 }
 0x409   :  { %v9071_v47 = vadd.f32 %v3627_v45, %v3433_v25  ;;  %v3629_v21 = vpop.f32.mrf.mxu0 }
 0x40a   :  { %v3435_v43 = vpop.f32.mrf.mxu1 }
 0x40b   :  { %v3436_v36 = vadd.f32 %v3435_v43, %v8884_v20  ;;  %v3630_v40 = vpop.f32.mrf.mxu0  ;;  %v2305_v20 = vrot.slane %v8670_v13, 2 }
 0x40c   :  { %v3437_v19 = vpop.f32.mrf.mxu1 }
 0x40d   :  { %v9075_v55 = vadd.f32 %v3630_v40, %v3436_v36  ;;  %v3632_v10 = vpop.f32.mrf.mxu0  ;;  %v2306_v53 = vsel %vm2267_vm11, %v2303_v8, %v2305_v20  ;;  %v2308_v43 = vsel %vm2267_vm11, %v2305_v20, %v2305_v20 }
 0x40e   :  { %v3440_v31 = vpop.f32.mrf.mxu1  ;;  %6592 = vmatmul.mubr.bf16.gmra.mxu1 %v2304_v57 }
 0x40f   :  { %v3441_v63 = vadd.f32 %v3440_v31, %v8893_v33  ;;  %v3635_v9 = vpop.f32.mrf.mxu0  ;;  %6595 = vmatprep.mubr.msk.bf16.mxu1 %vm6883_vm10, %v9000_v3 }
 0x410   :  { %v3442_v30 = vpop.f32.mrf.mxu1 }
 0x411   :  { %v9081_v50 = vadd.f32 %v3635_v9, %v3441_v63  ;;  %v3637_v38 = vpop.f32.mrf.mxu0 }
 0x412   :  { %v3443_v52 = vpop.f32.mrf.mxu1 }
 0x413   :  { %v3638_v2 = vpop.f32.mrf.mxu0 }
 0x414   :  { %v3444_v24 = vpop.f32.mrf.mxu1 }
 0x415   :  { %v3639_v26 = vpop.f32.mrf.mxu0 }
 0x416   :  { %v3447_v34 = vpop.f32.mrf.mxu1  ;;  %6596 = vmatmul.mubr.bf16.gmra.mxu1 %v2306_v53 }
 0x417   :  { %v3448_v33 = vadd.f32 %v3447_v34, %v8901_v44  ;;  %v3642_v27 = vpop.f32.mrf.mxu0  ;;  %6599 = vmatprep.mubr.msk.bf16.mxu1 %vm6883_vm10, %v9000_v3 }
 0x418   :  { %v3449_v11 = vpop.f32.mrf.mxu1 }
 0x419   :  { %v9088_v25 = vadd.f32 %v3642_v27, %v3448_v33  ;;  %v3644_v45 = vpop.f32.mrf.mxu0 }
 0x41a   :  { %v3450_v51 = vpop.f32.mrf.mxu1 }
 0x41b   :  { %v3451_v13 = vadd.f32 %v3450_v51, %v8904_v32  ;;  %v3645_v21 = vpop.f32.mrf.mxu0  ;;  %v6794_v32 = vld [vmem:[%s9944_s3 + $0x78] sm:$0xff]  }
 0x41c   :  { %v3452_v36 = vpop.f32.mrf.mxu1  ;;  %6158 = vmatprep.subr.bf16.mxu0 %v6794_v32 }
 0x41d   :  { %v9092_v8 = vadd.f32 %v3645_v21, %v3451_v13  ;;  %v3647_v40 = vpop.f32.mrf.mxu0 }
 0x41e   :  { %v3455_v19 = vpop.f32.mrf.mxu1  ;;  %6600 = vmatmul.mubr.bf16.gmra.mxu1 %v2308_v43 }
 0x41f   :  { %v3456_v44 = vadd.f32 %v3455_v19, %v8910_v4  ;;  %v3650_v10 = vpop.f32.mrf.mxu0  ;;  %6603 = vmatprep.mubr.msk.bf16.mxu1 %vm6883_vm10, %v9000_v3  ;;  %v6795_v3 = vld [vmem:[%s9944_s3 + $0x38] sm:$0xff]  }
 0x420   :  { %v3457_v57 = vpop.f32.mrf.mxu1  ;;  %6159 = vmatpush3.bf16.msra.mxu0 %v6795_v3 }
 0x421   :  { %v9097_v31 = vadd.f32 %v3650_v10, %v3456_v44  ;;  %v3652_v63 = vpop.f32.mrf.mxu0 }
 0x422   :  { %v3458_v9 = vpop.f32.mrf.mxu1 }
 0x423   :  { %v3459_v30 = vadd.f32 %v3458_v9, %v8912_v7  ;;  %v3653_v38 = vpop.f32.mrf.mxu0 }
 0x424   :  { %v3460_v52 = vpop.f32.mrf.mxu1 }
 0x425   :  { %v9103_v2 = vadd.f32 %v3653_v38, %v3459_v30  ;;  %v3655_v4 = vpop.f32.mrf.mxu0 }
 0x426   :  { %v3463_v24 = vpop.f32.mrf.mxu1  ;;  %6604 = vmatmul.mubr.bf16.gmra.mxu1 %v2305_v20 }
 0x427   :  { %v3464_v26 = vadd.f32 %v3463_v24, %v8917_v18  ;;  %v3658_v53 = vpop.f32.mrf.mxu0 }
 0x428   :  { %v3465_v34 = vpop.f32.mrf.mxu1 }
 0x429   :  { %v9109_v33 = vadd.f32 %v3658_v53, %v3464_v26  ;;  %v3660_v7 = vpop.f32.mrf.mxu0 }
 0x42a   :  { %v3466_v27 = vpop.f32.mrf.mxu1 }
 0x42b   :  { %v3467_v11 = vadd.f32 %v3466_v27, %v8921_v15  ;;  %v3661_v45 = vpop.f32.mrf.mxu0 }
 0x42c   :  { %v3468_v51 = vpop.f32.mrf.mxu1 }
 0x42d   :  { %v9112_v13 = vadd.f32 %v3661_v45, %v3467_v11  ;;  %v3663_v21 = vpop.f32.mrf.mxu0 }
 0x42e   :  { %v3471_v43 = vpop.f32.mrf.mxu1  ;;  %v6797_v21 = vld [vmem:[%s9944_s3 + $0x30] sm:$0xff]  }
 0x42f   :  { %v3472_v36 = vadd.f32 %v3471_v43, %v8926_v35  ;;  %v3666_v20 = vpop.f32.mrf.mxu0 }
 0x430   :  { %v3473_v40 = vpop.f32.mrf.mxu1 }
 0x431   :  { %v9115_v18 = vadd.f32 %v3666_v20, %v3472_v36  ;;  %v3668_v19 = vpop.f32.mrf.mxu0 }
 0x432   :  { %v3474_v44 = vpop.f32.mrf.mxu1 }
 0x433   :  { %v3475_v10 = vadd.f32 %v3474_v44, %v8929_v14  ;;  %v3669_v57 = vpop.f32.mrf.mxu0 }
 0x434   :  { %v3476_v63 = vpop.f32.mrf.mxu1 }
 0x435   :  { %v9118_v32 = vadd.f32 %v3669_v57, %v3475_v10  ;;  %v3671_v15 = vpop.f32.mrf.mxu0 }
 0x436   :  { %v3479_v9 = vpop.f32.mrf.mxu1 }
 0x437   :  { %v3480_v30 = vadd.f32 %v3479_v9, %v8934_v58  ;;  %v3674_v38 = vpop.f32.mrf.mxu0  ;;  %v6796_v58 = vld [vmem:[%s9944_s3 + $0x70] sm:$0xff]   ;;  %v6798_v9 = vld [vmem:[%s9944_s3 + $0x68] sm:$0xff]  }
 0x438   :  { %v3481_v52 = vpop.f32.mrf.mxu1  ;;  %6160 = vmatprep.subr.bf16.mxu0 %v6796_v58 }
 0x439   :  { %v9121_v4 = vadd.f32 %v3674_v38, %v3480_v30  ;;  %v3676_v35 = vpop.f32.mrf.mxu0  ;;  %6161 = vmatpush3.bf16.msra.mxu0 %v6797_v21  ;;  %v6799_v30 = vld [vmem:[%s9944_s3 + $0x28] sm:$0xff]  }
 0x43a   :  { %v3482_v24 = vpop.f32.mrf.mxu1  ;;  %6162 = vmatprep.subr.bf16.mxu0 %v6798_v9 }
 0x43b   :  { %v3677_v3 = vpop.f32.mrf.mxu0 }
 0x43c   :  { %v3483_v26 = vpop.f32.mrf.mxu1 }
 0x43d   :  { %v3678_v53 = vpop.f32.mrf.mxu0  ;;  %6163 = vmatpush3.bf16.msra.mxu0 %v6799_v30 }
 0x43e   :  { %v3486_v34 = vpop.f32.mrf.mxu1 }
 0x43f   :  { %v3681_v7 = vpop.f32.mrf.mxu0 }
 0x440   :  { %v3487_v14 = vpop.f32.mrf.mxu1 }
 0x441   :  { %v3682_v27 = vpop.f32.mrf.mxu0 }
 0x442   :  { %v3488_v11 = vpop.f32.mrf.mxu1 }
 0x443   :  { %v3683_v45 = vpop.f32.mrf.mxu0 }
 0x444   :  { %v3489_v51 = vpop.f32.mrf.mxu1 }
 0x445   :  { %v3684_v43 = vpop.f32.mrf.mxu0 }
 0x446   :  { %v3720_v36 = vpop.f32.mrf.mxu1 }
 0x447   :  { %v3721_v20 = vadd.f32 %v3720_v36, %v8945_v49 }
 0x448   :  { %v6525_v40 = vpop.f32.mrf.mxu1 }
 0x449   :  { %v3910_v57 = vrot.slane %v3721_v20, 1  ;;  %v9149_v40 = vld [vmem:[%s9942_s4 + $0x3] ss:$0 sm:$0xff] }
 0x44a   :  { %v3723_v19 = vpop.f32.mrf.mxu1 }
 0x44b   :  { %v3724_v44 = vadd.f32 %v3723_v19, %v8949_v61 }
 0x44c   :  { %v6526_v10 = vpop.f32.mrf.mxu1 }
 0x44d   :  { %v3911_v63 = vrot.slane %v3724_v44, 1 }
 0x44e   :  { %v3728_v15 = vpop.f32.mrf.mxu1 }
 0x44f   :  { %v3912_v38 = vsel %vm1816_vm5, %v3910_v57, %v3911_v63  ;;  %v3729_v49 = vadd.f32 %v3728_v15, %v8955_v29  ;;  %v6800_v57 = vld [vmem:[%s9944_s3 + $0xf8] sm:$0xff]  }
 0x450   :  { %v3974_v52 = vmax.f32 %v3721_v20, %v3912_v38  ;;  %v6529_v35 = vpop.f32.mrf.mxu1  ;;  %6216 = vmatprep.subr.bf16.mxu1 %v6800_v57 }
 0x451   :  { %v3913_v61 = vrot.slane %v3729_v49, 1 }
 0x452   :  { %v3731_v24 = vpop.f32.mrf.mxu1 }
 0x453   :  { %v4000_v3 = vsel %vm1816_vm5, %v3911_v63, %v3913_v61  ;;  %v3732_v26 = vadd.f32 %v3731_v24, %v8959_v23  ;;  %v6801_v63 = vld [vmem:[%s9944_s3 + $0xb8] sm:$0xff]  }
 0x454   :  { %v4036_v53 = vmax.f32 %v3724_v44, %v4000_v3  ;;  %v6530_v34 = vpop.f32.mrf.mxu1  ;;  %6217 = vmatpush3.bf16.msra.mxu1 %v6801_v63 }
 0x455   :  { %v3914_v7 = vrot.slane %v3732_v26, 1 }
 0x456   :  { %v3736_v14 = vpop.f32.mrf.mxu1  ;;  %v4078_v58 = vrot.slane %v4036_v53, 1 }
 0x457   :  { %v3915_v27 = vsel %vm1816_vm5, %v3913_v61, %v3914_v7  ;;  %v3737_v11 = vadd.f32 %v3736_v14, %v8965_v12 }
 0x458   :  { %v3975_v45 = vmax.f32 %v3729_v49, %v3915_v27  ;;  %v6533_v29 = vpop.f32.mrf.mxu1 }
 0x459   :  { %v3916_v51 = vrot.slane %v3737_v11, 1 }
 0x45a   :  { %v4079_v21 = vrot.slane %v3975_v45, 1  ;;  %v3739_v43 = vpop.f32.mrf.mxu1 }
 0x45b   :  { %v4001_v36 = vsel %vm1816_vm5, %v3914_v7, %v3916_v51  ;;  %v3740_v20 = vadd.f32 %v3739_v43, %v8969_v16 }
 0x45c   :  { %v4080_v23 = vsel %vm1816_vm5, %v4078_v58, %v4079_v21  ;;  %v4037_v19 = vmax.f32 %v3732_v26, %v4001_v36  ;;  %v6534_v44 = vpop.f32.mrf.mxu1 }
 0x45d   :  { %v4142_v12 = vmax.f32 %v3974_v52, %v4080_v23  ;;  %v3917_v10 = vrot.slane %v3740_v20, 1 }
 0x45e   :  { %v3744_v16 = vpop.f32.mrf.mxu1  ;;  %v4081_v61 = vrot.slane %v4037_v19, 1 }
 0x45f   :  { %v4165_v15 = vadd.f32 %v9149_v40, %v4142_v12  ;;  %v3918_v9 = vsel %vm1816_vm5, %v3916_v51, %v3917_v10  ;;  %v3745_v30 = vadd.f32 %v3744_v16, %v8975_v1 }
 0x460   :  { %v3976_v38 = vmax.f32 %v3737_v11, %v3918_v9  ;;  %v6537_v49 = vpop.f32.mrf.mxu1 }
 0x461   :  { %v4183_v52 = vmax.f32 %v4165_v15, 0.0  ;;  %v3919_v35 = vrot.slane %v3745_v30, 1 }
 0x462   :  { %v4082_v24 = vrot.slane %v3976_v38, 1  ;;  %v3747_v3 = vpop.f32.mrf.mxu1 }
 0x463   :  { %v3920_v26 = vsel %vm1816_vm5, %v3917_v10, %v3919_v35  ;;  %v3748_v53 = vadd.f32 %v3747_v3, %v8979_v46  ;;  %v4202_v27 = vrot.slane %v4183_v52, 1  ;;  %v4204_v43 = vrot.slane %v4183_v52, 2  ;;  %v6803_v3 = vld [vmem:[%s9944_s3 + $0x20] sm:$0xff]  }
 0x464   :  { %v4083_v34 = vsel %vm1816_vm5, %v4081_v61, %v4082_v24  ;;  %v9163_v7 = vmax.f32 %v3740_v20, %v3920_v26  ;;  %v6538_v14 = vpop.f32.mrf.mxu1  ;;  %v6802_v24 = vld [vmem:[%s9944_s3 + $0x60] sm:$0xff]  }
 0x465   :  { %v4143_v1 = vmax.f32 %v3975_v45, %v4083_v34  ;;  %v4002_v29 = vrot.slane %v3748_v53, 1  ;;  %v4230_v46 = vsel %vm4229_vm12, %v4183_v52, %v4202_v27  ;;  %6164 = vmatprep.subr.bf16.mxu0 %v6802_v24 }
 0x466   :  { %v3752_v11 = vpop.f32.mrf.mxu1  ;;  %v4084_v44 = vrot.slane %v9163_v7, 1  ;;  %v4232_v63 = vsel %vm4231_vm13, %v4230_v46, %v4204_v43  ;;  %6165 = vmatpush3.bf16.msra.mxu0 %v6803_v3 }
 0x467   :  { %v4166_v51 = vadd.f32 %v9149_v40, %v4143_v1  ;;  %v4003_v58 = vsel %vm1816_vm5, %v3919_v35, %v4002_v29  ;;  %v3753_v21 = vadd.f32 %v3752_v11, %v8985_v41 }
 0x468   :  { %v4038_v36 = vmax.f32 %v3745_v30, %v4003_v58  ;;  %v6541_v23 = vpop.f32.mrf.mxu1 }
 0x469   :  { %v4184_v20 = vmax.f32 %v4166_v51, 0.0  ;;  %v4004_v19 = vrot.slane %v3753_v21, 1 }
 0x46a   :  { %v4085_v45 = vrot.slane %v4038_v36, 1  ;;  %v3755_v12 = vpop.f32.mrf.mxu1 }
 0x46b   :  { %v4207_v10 = vrot.slane %v4184_v20, 7  ;;  %v4005_v57 = vsel %vm1816_vm5, %v4002_v29, %v4004_v19  ;;  %v4209_v9 = vrot.slane %v4184_v20, 1 }
 0x46c   :  { %v4086_v16 = vsel %vm1816_vm5, %v4084_v44, %v4085_v45  ;;  %v4039_v41 = vmax.f32 %v3748_v53, %v4005_v57  ;;  %v6542_v15 = vpop.f32.mrf.mxu1 }
 0x46d   :  { %v4234_v30 = vsel %vm1984_vm9, %v4232_v63, %v4207_v10  ;;  %v4144_v49 = vmax.f32 %v3976_v38, %v4086_v16 }
 0x46e   :  { %v4235_v52 = vsel %vm529_vm0, %v4234_v30, %v4184_v20  ;;  %v4087_v35 = vrot.slane %v4039_v41, 1  ;;  %v3759_v61 = vpop.f32.mrf.mxu1 }
 0x46f   :  { %v4236_v26 = vsel %vm530_vm1, %v4235_v52, %v4209_v9  ;;  %v4167_v53 = vadd.f32 %v9149_v40, %v4144_v49  ;;  %v3760_v34 = vadd.f32 %v3759_v61, %v8992_v60 }
 0x470   :  { %v4088_v38 = vsel %vm1816_vm5, %v4085_v45, %v4087_v35  ;;  %v6545_v14 = vpop.f32.mrf.mxu1 }
 0x471   :  { %v4185_v27 = vmax.f32 %v4167_v53, 0.0  ;;  %v4145_v1 = vmax.f32 %v9163_v7, %v4088_v38  ;;  %v3921_v36 = vrot.slane %v3760_v34, 1 }
 0x472   :  { %v3762_v29 = vpop.f32.mrf.mxu1 }
 0x473   :  { %v4212_v11 = vrot.slane %v4185_v27, 6  ;;  %v4214_v51 = vrot.slane %v4185_v27, 7  ;;  %v3763_v58 = vadd.f32 %v3762_v29, %v8996_v39 }
 0x474   :  { %v6546_v21 = vpop.f32.mrf.mxu1 }
 0x475   :  { %v4238_v43 = vsel %vm2267_vm11, %v4236_v26, %v4212_v11  ;;  %v3922_v23 = vrot.slane %v3763_v58, 1 }
 0x476   :  { %v9189_v60 = vsel %vm1816_vm5, %v4238_v43, %v4214_v51  ;;  %v3767_v46 = vpop.f32.mrf.mxu1 }
 0x477   :  { %v3923_v20 = vsel %vm1816_vm5, %v3921_v36, %v3922_v23  ;;  %v3768_v19 = vadd.f32 %v3767_v46, %v9004_v17 }
 0x478   :  { %v3978_v7 = vmax.f32 %v3760_v34, %v3923_v20  ;;  %v6549_v44 = vpop.f32.mrf.mxu1  ;;  %v4168_v34 = vadd.f32 %v9149_v40, %v4145_v1 }
 0x479   :  { %v3924_v45 = vrot.slane %v3768_v19, 1 }
 0x47a   :  { %v3770_v12 = vpop.f32.mrf.mxu1  ;;  %v4186_v21 = vmax.f32 %v4168_v34, 0.0 }
 0x47b   :  { %v4006_v10 = vsel %vm1816_vm5, %v3922_v23, %v3924_v45  ;;  %v3771_v39 = vadd.f32 %v3770_v12, %v9008_v59 }
 0x47c   :  { %v4040_v57 = vmax.f32 %v3763_v58, %v4006_v10  ;;  %v6550_v63 = vpop.f32.mrf.mxu1 }
 0x47d   :  { %v3925_v16 = vrot.slane %v3771_v39, 1 }
 0x47e   :  { %v3775_v41 = vpop.f32.mrf.mxu1  ;;  %v4089_v17 = vrot.slane %v4040_v57, 1 }
 0x47f   :  { %v3926_v15 = vsel %vm1816_vm5, %v3924_v45, %v3925_v16  ;;  %v3776_v9 = vadd.f32 %v3775_v41, %v9014_v54 }
 0x480   :  { %v3979_v30 = vmax.f32 %v3768_v19, %v3926_v15  ;;  %v6553_v49 = vpop.f32.mrf.mxu1 }
 0x481   :  { %v3927_v52 = vrot.slane %v3776_v9, 1 }
 0x482   :  { %v4090_v35 = vrot.slane %v3979_v30, 1  ;;  %v3778_v61 = vpop.f32.mrf.mxu1 }
 0x483   :  { %v4007_v24 = vsel %vm1816_vm5, %v3925_v16, %v3927_v52  ;;  %v3779_v3 = vadd.f32 %v3778_v61, %v9018_v37 }
 0x484   :  { %v4091_v59 = vsel %vm1816_vm5, %v4089_v17, %v4090_v35  ;;  %v4041_v26 = vmax.f32 %v3771_v39, %v4007_v24  ;;  %v6554_v53 = vpop.f32.mrf.mxu1 }
 0x485   :  { %v4146_v38 = vmax.f32 %v3978_v7, %v4091_v59  ;;  %v3928_v14 = vrot.slane %v3779_v3, 1 }
 0x486   :  { %v3783_v27 = vpop.f32.mrf.mxu1  ;;  %v4092_v36 = vrot.slane %v4041_v26, 1 }
 0x487   :  { %v4169_v54 = vadd.f32 %v9149_v40, %v4146_v38  ;;  %v3929_v29 = vsel %vm1816_vm5, %v3927_v52, %v3928_v14  ;;  %v3784_v11 = vadd.f32 %v3783_v27, %v9024_v56 }
 0x488   :  { %v3980_v51 = vmax.f32 %v3776_v9, %v3929_v29  ;;  %v6557_v58 = vpop.f32.mrf.mxu1 }
 0x489   :  { %v4187_v43 = vmax.f32 %v4169_v54, 0.0  ;;  %v3930_v37 = vrot.slane %v3784_v11, 1 }
 0x48a   :  { %v4093_v23 = vrot.slane %v3980_v51, 1  ;;  %v3786_v46 = vpop.f32.mrf.mxu1 }
 0x48b   :  { %v4217_v20 = vrot.slane %v4187_v43, 1  ;;  %v4219_v19 = vrot.slane %v4187_v43, 2  ;;  %v4240_v1 = vsel %vm4229_vm12, %v4186_v21, %v4187_v43  ;;  %v3931_v7 = vsel %vm1816_vm5, %v3928_v14, %v3930_v37 }
 0x48c   :  { %v4094_v44 = vsel %vm1816_vm5, %v4092_v36, %v4093_v23  ;;  %v3981_v45 = vmax.f32 %v3779_v3, %v3931_v7  ;;  %v3787_v12 = vadd.f32 %v3786_v46, %v9028_v48  ;;  %v6558_v56 = vpop.f32.mrf.mxu1 }
 0x48d   :  { %v4241_v10 = vsel %vm4231_vm13, %v4240_v1, %v4217_v20  ;;  %v4147_v39 = vmax.f32 %v3979_v30, %v4094_v44 }
 0x48e   :  { %v4242_v57 = vsel %vm1984_vm9, %v4241_v10, %v4219_v19  ;;  %v4008_v63 = vrot.slane %v3787_v12, 1  ;;  %v3791_v16 = vpop.f32.mrf.mxu1  ;;  %v4095_v24 = vrot.slane %v3981_v45, 1 }
 0x48f   :  { %v4170_v41 = vadd.f32 %v9149_v40, %v4147_v39  ;;  %v3792_v15 = vadd.f32 %v3791_v16, %v9034_v22 }
 0x490   :  { %v4009_v9 = vsel %vm1816_vm5, %v3930_v37, %v4008_v63  ;;  %v6561_v49 = vpop.f32.mrf.mxu1 }
 0x491   :  { %v4188_v52 = vmax.f32 %v4170_v41, 0.0  ;;  %v4042_v17 = vmax.f32 %v3784_v11, %v4009_v9  ;;  %v4010_v35 = vrot.slane %v3792_v15, 1 }
 0x492   :  { %v3794_v61 = vpop.f32.mrf.mxu1 }
 0x493   :  { %v4222_v48 = vrot.slane %v4188_v52, 7  ;;  %v4096_v3 = vrot.slane %v4042_v17, 1  ;;  %v4011_v30 = vsel %vm1816_vm5, %v4008_v63, %v4010_v35  ;;  %v4224_v53 = vrot.slane %v4188_v52, 1 }
 0x494   :  { %v4043_v59 = vmax.f32 %v3787_v12, %v4011_v30  ;;  %v6562_v26 = vpop.f32.mrf.mxu1 }
 0x495   :  { %v4243_v34 = vsel %vm529_vm0, %v4242_v57, %v4222_v48  ;;  %v4097_v38 = vsel %vm1816_vm5, %v4095_v24, %v4096_v3 }
 0x496   :  { %v4244_v22 = vsel %vm530_vm1, %v4243_v34, %v4188_v52  ;;  %v4148_v14 = vmax.f32 %v3980_v51, %v4097_v38  ;;  %v4098_v27 = vrot.slane %v4043_v59, 1  ;;  %v3798_v54 = vpop.f32.mrf.mxu1 }
 0x497   :  { %v4245_v29 = vsel %vm2267_vm11, %v4244_v22, %v4224_v53  ;;  %v3799_v11 = vadd.f32 %v3798_v54, %v9041_v0 }
 0x498   :  { %v4171_v58 = vadd.f32 %v9149_v40, %v4148_v14  ;;  %v4099_v21 = vsel %vm1816_vm5, %v4096_v3, %v4098_v27  ;;  %v6565_v43 = vpop.f32.mrf.mxu1 }
 0x499   :  { %v4149_v37 = vmax.f32 %v3981_v45, %v4099_v21  ;;  %v3932_v44 = vrot.slane %v3799_v11, 1 }
 0x49a   :  { %v4189_v36 = vmax.f32 %v4171_v58, 0.0  ;;  %v3801_v23 = vpop.f32.mrf.mxu1 }
 0x49b   :  { %v4172_v46 = vadd.f32 %v9149_v40, %v4149_v37  ;;  %v3802_v20 = vadd.f32 %v3801_v23, %v9045_v5 }
 0x49c   :  { %v4227_v19 = vrot.slane %v4189_v36, 6  ;;  %v6566_v51 = vpop.f32.mrf.mxu1  ;;  %v4247_v1 = vrot.slane %v4189_v36, 7 }
 0x49d   :  { %v4190_v7 = vmax.f32 %v4172_v46, 0.0  ;;  %v3933_v12 = vrot.slane %v3802_v20, 1 }
 0x49e   :  { %v9224_v0 = vsel %vm1816_vm5, %v4245_v29, %v4227_v19  ;;  %v3806_v56 = vpop.f32.mrf.mxu1 }
 0x49f   :  { %v9228_v10 = vadd.f32 %v9224_v0, %v9189_v60  ;;  %v4274_v45 = vsel %vm4229_vm12, %v4247_v1, %v4190_v7  ;;  %v3934_v39 = vsel %vm1816_vm5, %v3932_v44, %v3933_v12  ;;  %v3807_v5 = vadd.f32 %v3806_v56, %v9051_v42 }
 0x4a0   :  { %v3982_v57 = vmax.f32 %v3799_v11, %v3934_v39  ;;  %v6569_v63 = vpop.f32.mrf.mxu1  ;;  %v6804_v39 = vld [vmem:[%s9944_s3 + $0xf0] sm:$0xff]  }
 0x4a1   :  { %v3935_v16 = vrot.slane %v3807_v5, 1  ;;  %6218 = vmatprep.subr.bf16.mxu1 %v6804_v39  ;;  %v6820_v39 = vld [vmem:[%s9944_s3 + $0xd0] sm:$0xff]  }
 0x4a2   :  { %v3809_v41 = vpop.f32.mrf.mxu1 }
 0x4a3   :  { %v4012_v15 = vsel %vm1816_vm5, %v3933_v12, %v3935_v16  ;;  %v3810_v9 = vadd.f32 %v3809_v41, %v9055_v6  ;;  %v6807_v41 = vld [vmem:[%s9944_s3 + $0x18] sm:$0xff]  }
 0x4a4   :  { %v4044_v49 = vmax.f32 %v3802_v20, %v4012_v15  ;;  %v6570_v52 = vpop.f32.mrf.mxu1  ;;  %v6808_v15 = vld [vmem:[%s9944_s3 + $0xe8] sm:$0xff]  }
 0x4a5   :  { %v3936_v17 = vrot.slane %v3810_v9, 1  ;;  %v6810_v52 = vld [vmem:[%s9944_s3 + $0x50] sm:$0xff]  }
 0x4a6   :  { %v3814_v35 = vpop.f32.mrf.mxu1  ;;  %v4100_v42 = vrot.slane %v4044_v49, 1 }
 0x4a7   :  { %v3937_v61 = vsel %vm1816_vm5, %v3935_v16, %v3936_v17  ;;  %v3815_v48 = vadd.f32 %v3814_v35, %v9061_v28 }
 0x4a8   :  { %v3983_v24 = vmax.f32 %v3807_v5, %v3937_v61  ;;  %v6573_v3 = vpop.f32.mrf.mxu1  ;;  %v6806_v5 = vld [vmem:[%s9944_s3 + $0x58] sm:$0xff]  }
 0x4a9   :  { %v3938_v30 = vrot.slane %v3815_v48, 1  ;;  %6166 = vmatprep.subr.bf16.mxu0 %v6806_v5 }
 0x4aa   :  { %v4101_v59 = vrot.slane %v3983_v24, 1  ;;  %v3817_v26 = vpop.f32.mrf.mxu1  ;;  %6167 = vmatpush3.bf16.msra.mxu0 %v6807_v41 }
 0x4ab   :  { %v3939_v53 = vsel %vm1816_vm5, %v3936_v17, %v3938_v30  ;;  %v3818_v34 = vadd.f32 %v3817_v26, %v9065_v62  ;;  %6168 = vmatprep.subr.bf16.mxu0 %v6810_v52  ;;  %v6814_v26 = vld [vmem:[%s9944_s3 + $0x48] sm:$0xff]  }
 0x4ac   :  { %v4102_v6 = vsel %vm1816_vm5, %v4100_v42, %v4101_v59  ;;  %v3984_v38 = vmax.f32 %v3810_v9, %v3939_v53  ;;  %v6574_v22 = vpop.f32.mrf.mxu1  ;;  %v6812_v59 = vld [vmem:[%s9944_s3 + $0xe0] sm:$0xff]  }
 0x4ad   :  { %v4150_v14 = vmax.f32 %v3982_v57, %v4102_v6  ;;  %v3940_v27 = vrot.slane %v3818_v34, 1 }
 0x4ae   :  { %v3822_v54 = vpop.f32.mrf.mxu1  ;;  %v4103_v36 = vrot.slane %v3984_v38, 1 }
 0x4af   :  { %v4173_v29 = vadd.f32 %v9149_v40, %v4150_v14  ;;  %v3941_v28 = vsel %vm1816_vm5, %v3938_v30, %v3940_v27  ;;  %v3823_v11 = vadd.f32 %v3822_v54, %v9071_v47  ;;  %v6813_v54 = vld [vmem:[%s9944_s3 + $0xa0] sm:$0xff]  }
 0x4b0   :  { %v9243_v58 = vmax.f32 %v3815_v48, %v3941_v28  ;;  %v6577_v21 = vpop.f32.mrf.mxu1  ;;  %v6809_v48 = vld [vmem:[%s9944_s3 + $0xa8] sm:$0xff]  }
 0x4b1   :  { %v4191_v43 = vmax.f32 %v4173_v29, 0.0  ;;  %v3942_v37 = vrot.slane %v3823_v11, 1  ;;  %v6815_v29 = vld [vmem:[%s9944_s3 + $0x8] sm:$0xff]  }
 0x4b2   :  { %v4104_v62 = vrot.slane %v9243_v58, 1  ;;  %v3825_v23 = vpop.f32.mrf.mxu1 }
 0x4b3   :  { %v4250_v46 = vrot.slane %v4191_v43, 1  ;;  %v4252_v20 = vrot.slane %v4191_v43, 2  ;;  %v4275_v19 = vsel %vm4231_vm13, %v4274_v45, %v4191_v43  ;;  %v3943_v51 = vsel %vm1816_vm5, %v3940_v27, %v3942_v37  ;;  %v6805_v45 = vld [vmem:[%s9944_s3 + $0xb0] sm:$0xff]   ;;  %v6816_v43 = vld [vmem:[%s9944_s3 + $0xd8] sm:$0xff]  }
 0x4b4   :  { %v4105_v1 = vsel %vm1816_vm5, %v4103_v36, %v4104_v62  ;;  %v9249_v7 = vmax.f32 %v3818_v34, %v3943_v51  ;;  %v3826_v47 = vadd.f32 %v3825_v23, %v9075_v55  ;;  %v6578_v44 = vpop.f32.mrf.mxu1  ;;  %6219 = vmatpush3.bf16.msra.mxu1 %v6805_v45 }
 0x4b5   :  { %v4276_v12 = vsel %vm1984_vm9, %v4275_v19, %v4250_v46  ;;  %v4151_v56 = vmax.f32 %v3983_v24, %v4105_v1  ;;  %6220 = vmatprep.subr.bf16.mxu1 %v6808_v15  ;;  %v6819_v44 = vld [vmem:[%s9944_s3] sm:$0xff]  }
 0x4b6   :  { %v4277_v57 = vsel %vm529_vm0, %v4276_v12, %v4252_v20  ;;  %v4106_v55 = vrot.slane %v9249_v7, 1  ;;  %v4013_v63 = vrot.slane %v3826_v47, 1  ;;  %v3830_v16 = vpop.f32.mrf.mxu1 }
 0x4b7   :  { %v4174_v9 = vadd.f32 %v9149_v40, %v4151_v56  ;;  %v3831_v49 = vadd.f32 %v3830_v16, %v9081_v50  ;;  %v6811_v50 = vld [vmem:[%s9944_s3 + $0x10] sm:$0xff]  }
 0x4b8   :  { %v4107_v17 = vsel %vm1816_vm5, %v4104_v62, %v4106_v55  ;;  %v4014_v35 = vsel %vm1816_vm5, %v3942_v37, %v4013_v63  ;;  %v6581_v61 = vpop.f32.mrf.mxu1  ;;  %6221 = vmatpush3.bf16.msra.mxu1 %v6809_v48  ;;  %6169 = vmatpush3.bf16.msra.mxu0 %v6811_v50  ;;  %v6818_v37 = vld [vmem:[%s9944_s3 + $0x40] sm:$0xff]   ;;  %v6823_v50 = vld [vmem:[%s9944_s3 + $0x88] sm:$0xff]  }
 0x4b9   :  { %v4192_v24 = vmax.f32 %v4174_v9, 0.0  ;;  %v4152_v3 = vmax.f32 %v3984_v38, %v4107_v17  ;;  %v4045_v30 = vmax.f32 %v3823_v11, %v4014_v35  ;;  %v4015_v42 = vrot.slane %v3831_v49, 1  ;;  %6222 = vmatprep.subr.bf16.mxu1 %v6812_v59  ;;  %6170 = vmatprep.subr.bf16.mxu0 %v6814_v26 }
 0x4ba   :  { %v3833_v53 = vpop.f32.mrf.mxu1 }
 0x4bb   :  { %v4255_v34 = vrot.slane %v4192_v24, 7  ;;  %v4175_v6 = vadd.f32 %v9149_v40, %v4152_v3  ;;  %v4108_v22 = vrot.slane %v4045_v30, 1  ;;  %v4016_v14 = vsel %vm1816_vm5, %v4013_v63, %v4015_v42  ;;  %v6824_v30 = vld [vmem:[%s9944_s3 + $0xc0] sm:$0xff]  }
 0x4bc   :  { %v4046_v38 = vmax.f32 %v3826_v47, %v4016_v14  ;;  %v6582_v27 = vpop.f32.mrf.mxu1  ;;  %6223 = vmatpush3.bf16.msra.mxu1 %v6813_v54  ;;  %6171 = vmatpush3.bf16.msra.mxu0 %v6815_v29  ;;  %v6817_v47 = vld [vmem:[%s9944_s3 + $0x98] sm:$0xff]  }
 0x4bd   :  { %v4278_v28 = vsel %vm530_vm1, %v4277_v57, %v4255_v34  ;;  %v4193_v11 = vmax.f32 %v4175_v6, 0.0  ;;  %v4109_v21 = vsel %vm1816_vm5, %v4106_v55, %v4108_v22  ;;  %6224 = vmatprep.subr.bf16.mxu1 %v6816_v43  ;;  %6172 = vmatprep.subr.bf16.mxu0 %v6818_v37  ;;  %v6825_v6 = vld [vmem:[%s9944_s3 + $0x80] sm:$0xff]  }
 0x4be   :  { %v4279_v36 = vsel %vm2267_vm11, %v4278_v28, %v4192_v24  ;;  %v4153_v62 = vmax.f32 %v9243_v58, %v4109_v21  ;;  %v4110_v23 = vrot.slane %v4046_v38, 1  ;;  %v3837_v46 = vpop.f32.mrf.mxu1 }
 0x4bf   :  { %v4258_v20 = vrot.slane %v4193_v11, 1  ;;  %v3838_v56 = vadd.f32 %v3837_v46, %v9088_v25  ;;  %v6821_v25 = vld [vmem:[%s9944_s3 + $0x90] sm:$0xff]  }
 0x4c0   :  { %v4176_v19 = vadd.f32 %v9149_v40, %v4153_v62  ;;  %v4111_v51 = vsel %vm1816_vm5, %v4108_v22, %v4110_v23  ;;  %v6585_v1 = vpop.f32.mrf.mxu1  ;;  %6225 = vmatpush3.bf16.msra.mxu1 %v6817_v47  ;;  %6173 = vmatpush3.bf16.msra.mxu0 %v6819_v44 }
 0x4c1   :  { %v9316_v58 = vsel %vm1816_vm5, %v4279_v36, %v4258_v20  ;;  %v4154_v12 = vmax.f32 %v9249_v7, %v4111_v51  ;;  %v3944_v41 = vrot.slane %v3838_v56, 1  ;;  %6226 = vmatprep.subr.bf16.mxu1 %v6820_v39 }
 0x4c2   :  { %v9325_v45 = vadd.f32 %v9228_v10, %v9316_v58  ;;  %v3840_v5 = vpop.f32.mrf.mxu1  ;;  %v4194_v57 = vmax.f32 %v4176_v19, 0.0  ;;  %v6822_v10 = vld [vmem:[%s9944_s3 + $0xc8] sm:$0xff]  }
 0x4c3   :  { %v4177_v55 = vadd.f32 %v9149_v40, %v4154_v12  ;;  %v3841_v63 = vadd.f32 %v3840_v5, %v9092_v8  ;;  %v6826_v8 = vld [vmem:[%s9944_s3 + $0x178] sm:$0xff]  }
 0x4c4   :  { %v6586_v16 = vpop.f32.mrf.mxu1  ;;  %v4261_v49 = vrot.slane %v4194_v57, 6  ;;  %6227 = vmatpush3.bf16.msra.mxu1 %v6821_v25  ;;  %6274 = vmatprep.subr.bf16.mxu0 %v6826_v8 }
 0x4c5   :  { %v4195_v7 = vmax.f32 %v4177_v55, 0.0  ;;  %v3945_v15 = vrot.slane %v3841_v63, 1  ;;  %6228 = vmatprep.subr.bf16.mxu1 %v6822_v10 }
 0x4c6   :  { %v3845_v9 = vpop.f32.mrf.mxu1 }
 0x4c7   :  { %v4264_v52 = vrot.slane %v4195_v7, 7  ;;  %v3946_v17 = vsel %vm1816_vm5, %v3944_v41, %v3945_v15  ;;  %v3846_v35 = vadd.f32 %v3845_v9, %v9097_v31 }
 0x4c8   :  { %v3987_v61 = vmax.f32 %v3838_v56, %v3946_v17  ;;  %v6589_v48 = vpop.f32.mrf.mxu1  ;;  %6229 = vmatpush3.bf16.msra.mxu1 %v6823_v50 }
 0x4c9   :  { %v4281_v24 = vsel %vm4229_vm12, %v4261_v49, %v4264_v52  ;;  %v3947_v3 = vrot.slane %v3846_v35, 1  ;;  %6230 = vmatprep.subr.bf16.mxu1 %v6824_v30 }
 0x4ca   :  { %v4282_v42 = vsel %vm4231_vm13, %v4281_v24, %v4195_v7  ;;  %v3848_v59 = vpop.f32.mrf.mxu1 }
 0x4cb   :  { %v4017_v31 = vsel %vm1816_vm5, %v3945_v15, %v3947_v3  ;;  %v3849_v26 = vadd.f32 %v3848_v59, %v9103_v2 }
 0x4cc   :  { %v4047_v53 = vmax.f32 %v3841_v63, %v4017_v31  ;;  %v6590_v34 = vpop.f32.mrf.mxu1  ;;  %6231 = vmatpush3.bf16.msra.mxu1 %v6825_v6 }
 0x4cd   :  { %v3948_v22 = vrot.slane %v3849_v26, 1 }
 0x4ce   :  { %v3853_v14 = vpop.f32.mrf.mxu1  ;;  %v4112_v11 = vrot.slane %v4047_v53, 1 }
 0x4cf   :  { %v3949_v38 = vsel %vm1816_vm5, %v3947_v3, %v3948_v22  ;;  %v3854_v27 = vadd.f32 %v3853_v14, %v9109_v33 }
 0x4d0   :  { %v3988_v54 = vmax.f32 %v3846_v35, %v3949_v38  ;;  %v6593_v29 = vpop.f32.mrf.mxu1 }
 0x4d1   :  { %v3950_v28 = vrot.slane %v3854_v27, 1 }
 0x4d2   :  { %v4113_v2 = vrot.slane %v3988_v54, 1  ;;  %v3856_v21 = vpop.f32.mrf.mxu1 }
 0x4d3   :  { %v3951_v43 = vsel %vm1816_vm5, %v3948_v22, %v3950_v28  ;;  %v3857_v37 = vadd.f32 %v3856_v21, %v9112_v13 }
 0x4d4   :  { %v4114_v36 = vsel %vm1816_vm5, %v4112_v11, %v4113_v2  ;;  %v3989_v62 = vmax.f32 %v3849_v26, %v3951_v43  ;;  %v6594_v23 = vpop.f32.mrf.mxu1 }
 0x4d5   :  { %v4155_v46 = vmax.f32 %v3987_v61, %v4114_v36  ;;  %v3952_v20 = vrot.slane %v3857_v37, 1  ;;  %v6834_v61 = vld [vmem:[%s9944_s3 + $0x1f8] sm:$0xff]  }
 0x4d6   :  { %v3861_v19 = vpop.f32.mrf.mxu1  ;;  %v4115_v39 = vrot.slane %v3989_v62, 1  ;;  %6332 = vmatprep.subr.bf16.mxu1 %v6834_v61 }
 0x4d7   :  { %v4178_v33 = vadd.f32 %v9149_v40, %v4155_v46  ;;  %v3953_v51 = vsel %vm1816_vm5, %v3950_v28, %v3952_v20  ;;  %v3862_v1 = vadd.f32 %v3861_v19, %v9115_v18 }
 0x4d8   :  { %v3990_v47 = vmax.f32 %v3854_v27, %v3953_v51  ;;  %v6597_v44 = vpop.f32.mrf.mxu1 }
 0x4d9   :  { %v4196_v12 = vmax.f32 %v4178_v33, 0.0  ;;  %v3954_v56 = vrot.slane %v3862_v1, 1 }
 0x4da   :  { %v4116_v5 = vrot.slane %v3990_v47, 1  ;;  %v3864_v13 = vpop.f32.mrf.mxu1 }
 0x4db   :  { %v4267_v57 = vrot.slane %v4196_v12, 1  ;;  %v4269_v55 = vrot.slane %v4196_v12, 2  ;;  %v4283_v63 = vsel %vm1984_vm9, %v4282_v42, %v4196_v12  ;;  %v3955_v16 = vsel %vm1816_vm5, %v3952_v20, %v3954_v56 }
 0x4dc   :  { %v4117_v25 = vsel %vm1816_vm5, %v4115_v39, %v4116_v5  ;;  %v3991_v7 = vmax.f32 %v3857_v37, %v3955_v16  ;;  %v3865_v41 = vadd.f32 %v3864_v13, %v9118_v32  ;;  %v6598_v15 = vpop.f32.mrf.mxu1 }
 0x4dd   :  { %v4284_v18 = vsel %vm529_vm0, %v4283_v63, %v4267_v57  ;;  %v4156_v10 = vmax.f32 %v3988_v54, %v4117_v25 }
 0x4de   :  { %v4285_v9 = vsel %vm530_vm1, %v4284_v18, %v4269_v55  ;;  %v4118_v8 = vrot.slane %v3991_v7, 1  ;;  %v4018_v49 = vrot.slane %v3865_v41, 1  ;;  %v3869_v52 = vpop.f32.mrf.mxu1 }
 0x4df   :  { %v4179_v17 = vadd.f32 %v9149_v40, %v4156_v10  ;;  %v3870_v35 = vadd.f32 %v3869_v52, %v9121_v4 }
 0x4e0   :  { %v4119_v48 = vsel %vm1816_vm5, %v4116_v5, %v4118_v8  ;;  %v4019_v32 = vsel %vm1816_vm5, %v3954_v56, %v4018_v49  ;;  %v6601_v50 = vpop.f32.mrf.mxu1 }
 0x4e1   :  { %v4197_v24 = vmax.f32 %v4179_v17, 0.0  ;;  %v4157_v3 = vmax.f32 %v3989_v62, %v4119_v48  ;;  %v4048_v30 = vmax.f32 %v3862_v1, %v4019_v32  ;;  %v4020_v42 = vrot.slane %v3870_v35, 1 }
 0x4e2   :  { %v3872_v59 = vpop.f32.mrf.mxu1 }
 0x4e3   :  { %v4272_v31 = vrot.slane %v4197_v24, 7  ;;  %v4120_v26 = vrot.slane %v4048_v30, 1  ;;  %v4021_v53 = vsel %vm1816_vm5, %v4018_v49, %v4020_v42  ;;  %v4180_v4 = vadd.f32 %v9149_v40, %v4157_v3  ;;  %v6001_v42 = vld [vmem:[%s9942_s4 + $0x4] ss:$0 sm:$0xff] }
 0x4e4   :  { %v4049_v34 = vmax.f32 %v3865_v41, %v4021_v53  ;;  %v6602_v6 = vpop.f32.mrf.mxu1 }
 0x4e5   :  { %v4286_v22 = vsel %vm2267_vm11, %v4285_v9, %v4272_v31  ;;  %v4121_v14 = vsel %vm1816_vm5, %v4118_v8, %v4120_v26  ;;  %v4198_v11 = vmax.f32 %v4180_v4, 0.0 }
 0x4e6   :  { %v4287_v38 = vsel %vm1816_vm5, %v4286_v22, %v4197_v24  ;;  %v4158_v27 = vmax.f32 %v3990_v47, %v4121_v14  ;;  %v4122_v54 = vrot.slane %v4049_v34, 1  ;;  %v3876_v29 = vpop.f32.mrf.mxu1  ;;  %v6002_v34 = vld [vmem:[%s9942_s4 + $0x5] ss:$0 sm:$0xff] }
 0x4e7   :  { %v4302_v28 = vadd.f32 %v9325_v45, %v4287_v38  ;;  %v4289_v46 = vrot.slane %v4198_v11, 1 }
 0x4e8   :  { %v4181_v2 = vadd.f32 %v9149_v40, %v4158_v27  ;;  %v4123_v21 = vsel %vm1816_vm5, %v4120_v26, %v4122_v54  ;;  %v6605_v43 = vpop.f32.mrf.mxu1 }
 0x4e9   :  { %v4159_v37 = vmax.f32 %v3991_v7, %v4123_v21 }
 0x4ea   :  { %v4199_v36 = vmax.f32 %v4181_v2, 0.0  ;;  %v3878_v62 = vpop.f32.mrf.mxu1 }
 0x4eb   :  { %v4182_v23 = vadd.f32 %v9149_v40, %v4159_v37 }
 0x4ec   :  { %v4292_v20 = vrot.slane %v4199_v36, 6  ;;  %v6606_v19 = vpop.f32.mrf.mxu1 }
 0x4ed   :  { %v4200_v33 = vmax.f32 %v4182_v23, 0.0 }
 0x4ee   :  { %v4297_v51 = vsel %vm4229_vm12, %v4289_v46, %v4292_v20 }
 0x4ef   :  { %v4295_v1 = vrot.slane %v4200_v33, 7 }
 0x4f1   :  { %v4298_v45 = vsel %vm4231_vm13, %v4297_v51, %v4295_v1 }
 0x4f2   :  { %v4299_v47 = vsel %vm1984_vm9, %v4298_v45, %v4200_v33 }
 0x4f3   :  { %v4303_v44 = vsel %vm529_vm0, %v4299_v47, 0.0 }
 0x4f4   :  { %v4304_v12 = vadd.f32 %v4303_v44, %v4302_v28 }
 0x4f6   :  { %v4305_v56 = vrot.slane %v4304_v12, 4 }
 0x4f8   :  { %v4306_v39 = vadd.f32 %v4305_v56, %v4304_v12  ;;  %v9418_v12 = vld [vmem:[#allocation2] sm:$0xff] }
 0x4fa   :  { %v4307_v5 = vrot.slane %v4306_v39, 2 }
 0x4fc   :  { %v4308_v13 = vadd.f32 %v4307_v5, %v4306_v39 }
 0x4fe   :  { %v4309_v57 = vrot.slane %v4308_v13, 1 }
 0x500   :  { %v4310_v40 = vadd.f32 %v4309_v57, %v4308_v13 }
 0x502   :  { %v4311_v55 = vmul.f32 0.027777778, %v4310_v40 }
 0x504   :  { %v4312_v63 = vsub.f32 %v9189_v60, %v4311_v55  ;;  %v4313_v16 = vsub.f32 %v9224_v0, %v4311_v55  ;;  %v4314_v25 = vsub.f32 %v9316_v58, %v4311_v55  ;;  %v4315_v7 = vsub.f32 %v4287_v38, %v4311_v55 }
 0x505   :  { %v4316_v41 = vsub.f32 %v4299_v47, %v4311_v55 }
 0x506   :  { %v4317_v15 = vmul.f32 %v4312_v63, %v4312_v63  ;;  %v4318_v18 = vmul.f32 %v4313_v16, %v4313_v16  ;;  %v4319_v10 = vmul.f32 %v4314_v25, %v4314_v25  ;;  %v4320_v49 = vmul.f32 %v4315_v7, %v4315_v7 }
 0x507   :  { %v4321_v8 = vmul.f32 %v4316_v41, %v4316_v41 }
 0x508   :  { %v4322_v9 = vadd.f32 %v4318_v18, %v4317_v15 }
 0x509   :  { %v4325_v35 = vsel %vm529_vm0, %v4321_v8, 0.0 }
 0x50a   :  { %v4323_v52 = vadd.f32 %v4322_v9, %v4319_v10  ;;  %v6827_v10 = vld [vmem:[%s9944_s3 + $0x138] sm:$0xff]  }
 0x50c   :  { %v4324_v17 = vadd.f32 %v4323_v52, %v4320_v49 }
 0x50e   :  { %v4326_v61 = vadd.f32 %v4325_v35, %v4324_v17 }
 0x510   :  { %v4327_v48 = vrot.slane %v4326_v61, 4 }
 0x512   :  { %v4328_v32 = vadd.f32 %v4327_v48, %v4326_v61 }
 0x514   :  { %v4329_v60 = vrot.slane %v4328_v32, 2 }
 0x516   :  { %v4330_v50 = vadd.f32 %v4329_v60, %v4328_v32  ;;  %v6828_v60 = vld [vmem:[%s9944_s3 + $0x170] sm:$0xff]  }
 0x518   :  { %v4331_v0 = vrot.slane %v4330_v50, 1 }
 0x51a   :  { %v4332_v24 = vadd.f32 %v4331_v0, %v4330_v50  ;;  %v6835_v50 = vld [vmem:[%s9944_s3 + $0x1b8] sm:$0xff]  }
 0x51c   :  { %v4333_v58 = vmul.f32 0.027777778, %v4332_v24 }
 0x51e   :  { %v4334_v3 = vadd.f32 1e-05, %v4333_v58  ;;  %v6838_v58 = vld [vmem:[%s9944_s3 + $0x1f0] sm:$0xff]  }
 0x520   :  { %6868 = vrsqrt.f32 %v4334_v3 }
 0x52d   :  { %v6869_v30 = vpop.eup %6868 }
 0x52e   :  { %v4336_v59 = vmul.f32 %v6869_v30, %v4312_v63  ;;  %v4337_v31 = vmul.f32 %v6869_v30, %v4313_v16  ;;  %v4338_v26 = vmul.f32 %v6869_v30, %v4314_v25  ;;  %v4339_v53 = vmul.f32 %v6869_v30, %v4315_v7 }
 0x52f   :  { %v4340_v4 = vmul.f32 %v6869_v30, %v4316_v41  ;;  %v6829_v30 = vld [vmem:[%s9944_s3 + $0x130] sm:$0xff]  }
 0x530   :  { %v4346_v6 = vmul.f32 %v6001_v42, %v4336_v59  ;;  %v4347_v22 = vmul.f32 %v6001_v42, %v4337_v31  ;;  %v4348_v14 = vmul.f32 %v6001_v42, %v4338_v26  ;;  %v4349_v38 = vmul.f32 %v6001_v42, %v4339_v53  ;;  %v6830_v26 = vld [vmem:[%s9944_s3 + $0x168] sm:$0xff]   ;;  %v6839_v53 = vld [vmem:[%s9944_s3 + $0x1b0] sm:$0xff]  }
 0x531   :  { %v4350_v27 = vmul.f32 %v6001_v42, %v4340_v4 }
 0x532   :  { %v4356_v54 = vadd.f32 %v6002_v34, %v4346_v6  ;;  %v4357_v29 = vadd.f32 %v6002_v34, %v4347_v22  ;;  %v4358_v28 = vadd.f32 %v6002_v34, %v4348_v14  ;;  %v4359_v11 = vadd.f32 %v6002_v34, %v4349_v38  ;;  %v6840_v6 = vld [vmem:[%s9944_s3 + $0x1e8] sm:$0xff]  }
 0x533   :  { %v4360_v2 = vadd.f32 %v6002_v34, %v4350_v27 }
 0x534   :  { %4375 = vst [vmem:[#allocation3 + $0x6] ss:$8 sps:$4 sm:$0xc7] %v4356_v54   ;;  %4376 = vst [vmem:[#allocation3 + $0x8] sm:$0x38] %v4356_v54  ;;  %v6831_v54 = vld [vmem:[%s9944_s3 + $0x128] sm:$0xff]  }
 0x535   :  { %4378 = vst [vmem:[#allocation3 + $0x12] ss:$18 sps:$4 sm:$0x71] %v4357_v29   ;;  %4379 = vst [vmem:[#allocation3 + $0x1e] ss:$8 sps:$4 sm:$0x8e] %v4357_v29  }
 0x536   :  { %4382 = vst [vmem:[#allocation3 + $0x2a] ss:$18 sps:$4 sm:$0xe3] %v4358_v28   ;;  %4383 = vst [vmem:[#allocation3 + $0x36] sm:$0x1c] %v4358_v28 }
 0x537   :  { %4385 = vst [vmem:[#allocation3 + $0x42] ss:$18 sps:$4 sm:$0xc7] %v4359_v11   ;;  %4386 = vst [vmem:[#allocation3 + $0x4e] sm:$0x38] %v4359_v11  ;;  %v6832_v11 = vld [vmem:[%s9944_s3 + $0x160] sm:$0xff]  }
 0x538   :  { %4388 = vst [vmem:[#allocation3 + $0x58] sm:$0x1] %v4360_v2  ;;  %4389 = vst [vmem:[#allocation3 + $0x5a] sm:$0xe] %v4360_v2  ;;  %v6841_v2 = vld [vmem:[%s9944_s3 + $0x1a8] sm:$0xff]  }
 0x53b   :  { %v4390_v21 = vld [vmem:[#allocation3] sm:$0xff]  ;;  %v4391_v43 = vld [vmem:[#allocation3 + $0x8] sm:$0xff] }
 0x53c   :  { %v4392_v37 = vld [vmem:[#allocation3 + $0x10] sm:$0xff]  ;;  %v4393_v36 = vld [vmem:[#allocation3 + $0x18] sm:$0xff]  ;;  %v9397_v62 = vpack.c.bf16 %v4391_v43, %v4390_v21  ;;  %v4394_v23 = vld [vmem:[#allocation3 + $0x20] sm:$0xff] }
 0x53d   :  { %v4395_v46 = vld [vmem:[#allocation3 + $0x28] sm:$0xff]  ;;  %v9399_v20 = vpack.c.bf16 %v4393_v36, %v4392_v37  ;;  %v4397_v33 = vld [vmem:[#allocation3 + $0x38] sm:$0xff] }
 0x53e   :  { %v9401_v19 = vpack.c.bf16 %v4395_v46, %v4394_v23  ;;  %v9404_v51 = vshrl.u32 %v9397_v62, 16  ;;  %v9407_v1 = vshll.u32 %v9397_v62, 16  ;;  %v9421_v56 = vpack.c.bf16 %v4397_v33, %v9418_v12  ;;  %v4398_v61 = vld [vmem:[#allocation3 + $0x40] sm:$0xff]  ;;  %v4400_v29 = vld [vmem:[#allocation3 + $0x50] sm:$0xff]  ;;  %v6844_v37 = vld [vmem:[%s9944_s3 + $0x1e0] sm:$0xff]  }
 0x53f   :  { %v9410_v45 = vshll.u32 %v9399_v20, 16  ;;  %v9413_v47 = vshrl.u32 %v9399_v20, 16  ;;  %v4480_v16 = vrot.slane %v9397_v62, 1  ;;  %v4481_v41 = vrot.slane %v9399_v20, 1  ;;  %v4401_v28 = vld [vmem:[#allocation3 + $0x58] sm:$0xff] }
 0x540   :  { %v9416_v44 = vshll.u32 %v9401_v19, 16  ;;  %v4416_v39 = vrot.slane %v9407_v1, 1  ;;  %v4501_v5 = vrot.slane %v9404_v51, 2  ;;  %v4502_v13 = vrot.slane %v9407_v1, 3 }
 0x541   :  { %v9427_v57 = vshrl.u32 %v9401_v19, 16  ;;  %v4421_v40 = vrot.slane %v9410_v45, 1  ;;  %v4504_v55 = vrot.slane %v9413_v47, 2  ;;  %v4505_v63 = vrot.slane %v9410_v45, 3 }
 0x542   :  { %v4417_v25 = vor.u32 %v4416_v39, %v9404_v51  ;;  %v4503_v7 = vor.u32 %v4502_v13, %v4501_v5  ;;  %v4509_v8 = vrot.slane %v9416_v44, 3  ;;  %v4429_v52 = vrot.slane %v9416_v44, 1  ;;  %v6833_v39 = vld [vmem:[%s9944_s3 + $0x120] sm:$0xff]   ;;  %v6836_v5 = vld [vmem:[%s9944_s3 + $0x158] sm:$0xff]  }
 0x543   :  { %v4508_v15 = vrot.slane %v9427_v57, 2  ;;  %v4506_v18 = vor.u32 %v4505_v63, %v4504_v55  ;;  %v4425_v9 = vor.u32 %v9413_v47, %v4421_v40  ;;  %v9444_v17 = vshll.u32 %v9421_v56, 16  ;;  %v6845_v13 = vld [vmem:[%s9944_s3 + $0x1a0] sm:$0xff]   ;;  %v6846_v63 = vld [vmem:[%s9944_s3 + $0x1d8] sm:$0xff]  }
 0x544   :  { %v4422_v49 = vsel %vm1606_vm4, %v4417_v25, %v4421_v40  ;;  %v9447_v35 = vshrl.u32 %v9421_v56, 16  ;;  %v4482_v0 = vsel %vm1816_vm5, %v4480_v16, %v4481_v41  ;;  %v9469_v31 = vpack.c.bf16 %v9418_v12, %v4398_v61 }
 0x545   :  { %5274 = vmatprep.mubr.bf16.mxu0 %v4422_v49  ;;  %v4507_v48 = vsel %vm4500_vm14, %v4503_v7, %v4506_v18  ;;  %v4510_v32 = vor.u32 %v4509_v8, %v4508_v15  ;;  %v4430_v24 = vsel %vm1606_vm4, %v4425_v9, %v4429_v52  ;;  %v4513_v59 = vrot.slane %v9444_v17, 3  ;;  %v6837_v15 = vld [vmem:[%s9944_s3 + $0x118] sm:$0xff]  }
 0x546   :  { %5361 = vmatprep.mubr.bf16.mxu1 %v4507_v48  ;;  %5275 = vmatmul.mubr.bf16.vlgmr.msra.gmra.mxu0 %v9397_v62  ;;  %v4512_v42 = vrot.slane %v9447_v35, 2  ;;  %v4483_v4 = vrot.slane %v9401_v19, 1  ;;  %v4433_v34 = vor.u32 %v9427_v57, %v4429_v52  ;;  %v9483_v14 = vshll.u32 %v9469_v31, 16  ;;  %v6848_v9 = vld [vmem:[%s9944_s3 + $0x198] sm:$0xff]   ;;  %v6850_v52 = vld [vmem:[%s9944_s3 + $0x1d0] sm:$0xff]  }
 0x547   :  { %5362 = vmatmul.mubr.bf16.vlgmr.msra.gmra.mxu1 %v4482_v0  ;;  %6275 = vmatpush3.bf16.msra.mxu0 %v6827_v10  ;;  %v4511_v3 = vsel %vm4500_vm14, %v4506_v18, %v4510_v32  ;;  %v9486_v38 = vshrl.u32 %v9469_v31, 16  ;;  %v4437_v27 = vrot.slane %v9444_v17, 1  ;;  %v9507_v33 = vpack.c.bf16 %v4401_v28, %v4400_v29  ;;  %v6842_v10 = vld [vmem:[%s9944_s3 + $0x150] sm:$0xff]   ;;  %v6849_v28 = vld [vmem:[%s9944_s3 + $0x108] sm:$0xff]  }
 0x548   :  { %5282 = vmatprep.mubr.bf16.mxu0 %v4430_v24  ;;  %5369 = vmatprep.mubr.bf16.mxu1 %v4511_v3  ;;  %v4514_v22 = vor.u32 %v4513_v59, %v4512_v42  ;;  %v4484_v21 = vsel %vm1816_vm5, %v4481_v41, %v4483_v4  ;;  %v4517_v46 = vrot.slane %v9483_v14, 3  ;;  %v4485_v40 = vrot.slane %v9421_v56, 1  ;;  %v6843_v0 = vld [vmem:[%s9944_s3 + $0x110] sm:$0xff]   ;;  %v6847_v42 = vld [vmem:[%s9944_s3 + $0x148] sm:$0xff]  }
 0x549   :  { %6276 = vmatprep.subr.bf16.mxu0 %v6828_v60  ;;  %6333 = vmatpush3.bf16.msra.mxu1 %v6835_v50  ;;  %v4438_v43 = vsel %vm1606_vm4, %v4433_v34, %v4437_v27  ;;  %v4516_v23 = vrot.slane %v9486_v38, 2  ;;  %v4441_v55 = vor.u32 %v9447_v35, %v4437_v27  ;;  %v9526_v25 = vshll.u32 %v9507_v33, 16  ;;  %v6851_v59 = vld [vmem:[%s9944_s3 + $0x190] sm:$0xff]  }
 0x54a   :  { %6334 = vmatprep.subr.bf16.mxu1 %v6838_v58  ;;  %v4515_v36 = vsel %vm4500_vm14, %v4510_v32, %v4514_v22  ;;  %v9529_v7 = vshrl.u32 %v9507_v33, 16  ;;  %v4445_v41 = vrot.slane %v9483_v14, 1  ;;  %v9537_v18 = vpack.c.bf16 %v9418_v12, %v9418_v12 }
 0x54b   :  { %6277 = vmatpush3.bf16.msra.mxu0 %v6829_v30  ;;  %v9523_v16 = vor.u32 %v4517_v46, %v4516_v23  ;;  %v4486_v8 = vsel %vm1816_vm5, %v4483_v4, %v4485_v40  ;;  %v4539_v61 = vrot.slane %v9401_v19, 3  ;;  %v4594_v48 = vrot.slane %v9401_v19, 5  ;;  %v6853_v4 = vld [vmem:[%s9944_s3 + $0x1c8] sm:$0xff]  }
 0x54c   :  { %6278 = vmatprep.subr.bf16.mxu0 %v6830_v26  ;;  %v4446_v49 = vsel %vm1606_vm4, %v4441_v55, %v4445_v41  ;;  %v4520_v60 = vrot.slane %v9529_v7, 2  ;;  %v4521_v50 = vrot.slane %v9526_v25, 3  ;;  %v4541_v24 = vrot.slane %v9421_v56, 3 }
 0x54d   :  { %6335 = vmatpush3.bf16.msra.mxu1 %v6839_v53  ;;  %v4519_v32 = vsel %vm4500_vm14, %v4514_v22, %v9523_v16  ;;  %v4596_v58 = vrot.slane %v9421_v56, 5  ;;  %v9563_v3 = vshll.u32 %v9537_v18, 16  ;;  %v9566_v30 = vshrl.u32 %v9537_v18, 16 }
 0x54e   :  { %5283 = vmatmul.mubr.bf16.gmra.mxu0 %v9399_v20  ;;  %6336 = vmatprep.subr.bf16.mxu1 %v6840_v6  ;;  %v4487_v26 = vrot.slane %v9469_v31, 1  ;;  %v4449_v53 = vor.u32 %v9486_v38, %v4445_v41  ;;  %v9582_v34 = vsel %vm530_vm1, %v4539_v61, %v4541_v24  ;;  %v4522_v22 = vor.u32 %v4521_v50, %v4520_v60 }
 0x54f   :  { %5370 = vmatmul.mubr.bf16.gmra.mxu1 %v4484_v21  ;;  %5290 = vmatprep.mubr.bf16.mxu0 %v4438_v43  ;;  %v9587_v6 = vsel %vm1984_vm9, %v4594_v48, %v4596_v58  ;;  %v4543_v27 = vrot.slane %v9469_v31, 3  ;;  %v4453_v29 = vrot.slane %v9526_v25, 1  ;;  %v6852_v21 = vld [vmem:[%s9944_s3 + $0x140] sm:$0xff]   ;;  %v6855_v43 = vld [vmem:[%s9944_s3 + $0x188] sm:$0xff]   ;;  %v4649_v41 = vrot.slane %v9401_v19, 6 }
 0x550   :  { %5377 = vmatprep.mubr.bf16.mxu1 %v4515_v36  ;;  %6279 = vmatpush3.bf16.msra.mxu0 %v6831_v54  ;;  %v4598_v54 = vrot.slane %v9469_v31, 5  ;;  %v4488_v23 = vsel %vm1816_vm5, %v4485_v40, %v4487_v26  ;;  %v4523_v55 = vsel %vm4500_vm14, %v9523_v16, %v4522_v22  ;;  %v4647_v40 = vrot.slane %v9399_v20, 6 }
 0x551   :  { %6280 = vmatprep.subr.bf16.mxu0 %v6832_v11  ;;  %6337 = vmatpush3.bf16.msra.mxu1 %v6841_v2  ;;  %v4524_v11 = vrot.slane %v9566_v30, 2  ;;  %v4525_v2 = vrot.slane %v9563_v3, 3  ;;  %v4454_v46 = vsel %vm1606_vm4, %v4449_v53, %v4453_v29  ;;  %v4457_v60 = vor.u32 %v9529_v7, %v4453_v29 }
 0x552   :  { %6338 = vmatprep.subr.bf16.mxu1 %v6844_v37  ;;  %v9604_v37 = vsel %vm530_vm1, %v4541_v24, %v4543_v27  ;;  %v9607_v36 = vsel %vm1984_vm9, %v4596_v58, %v4598_v54 }
 0x554   :  { %6281 = vmatpush3.bf16.msra.mxu0 %v6833_v39  ;;  %v6856_v39 = vld [vmem:[%s9944_s3 + $0x1c0] sm:$0xff]  }
 0x555   :  { %6282 = vmatprep.subr.bf16.mxu0 %v6836_v5  ;;  %6339 = vmatpush3.bf16.msra.mxu1 %v6845_v13  ;;  %v4545_v5 = vrot.slane %v9507_v33, 3  ;;  %v4600_v13 = vrot.slane %v9507_v33, 5 }
 0x556   :  { %5291 = vmatmul.mubr.bf16.gmra.mxu0 %v9401_v19  ;;  %6340 = vmatprep.subr.bf16.mxu1 %v6846_v63  ;;  %v4646_v63 = vrot.slane %v9397_v62, 6  ;;  %v6861_v19 = vld [vmem:[%s9944_s3 + $0x220] sm:$0xff]  }
 0x557   :  { %5378 = vmatmul.mubr.bf16.gmra.mxu1 %v4486_v8  ;;  %5298 = vmatprep.mubr.bf16.mxu0 %v4446_v49  ;;  %v9633_v16 = vsel %vm1984_vm9, %v4598_v54, %v4600_v13  ;;  %v4461_v8 = vrot.slane %v9563_v3, 1  ;;  %v6857_v49 = vld [vmem:[%s9944_s3 + $0x180] sm:$0xff]   ;;  %v4491_v54 = vrot.slane %v9537_v18, 1 }
 0x558   :  { %5385 = vmatprep.mubr.bf16.mxu1 %v4519_v32  ;;  %6283 = vmatpush3.bf16.msra.mxu0 %v6837_v15  ;;  %v6854_v15 = vld [vmem:[%s9944_s3 + $0x100] sm:$0xff]   ;;  %v4489_v32 = vrot.slane %v9507_v33, 1  ;;  %v9644_v50 = vsel %vm4231_vm13, %v4646_v63, %v4647_v40 }
 0x559   :  { %6284 = vmatprep.subr.bf16.mxu0 %v6842_v10  ;;  %6341 = vmatpush3.bf16.msra.mxu1 %v6848_v9  ;;  %v9628_v10 = vsel %vm530_vm1, %v4543_v27, %v4545_v5  ;;  %v4651_v9 = vrot.slane %v9421_v56, 6  ;;  %v4465_v29 = vor.u32 %v9566_v30, %v4461_v8 }
 0x55a   :  { %6342 = vmatprep.subr.bf16.mxu1 %v6850_v52  ;;  %v4653_v52 = vrot.slane %v9469_v31, 6  ;;  %v4490_v53 = vsel %vm1816_vm5, %v4487_v26, %v4489_v32  ;;  %v4558_v26 = vrot.slane %v9407_v1, 4 }
 0x55b   :  { %v9650_v24 = vsel %vm4231_vm13, %v4649_v41, %v4651_v9 }
 0x55c   :  { %6285 = vmatpush3.bf16.msra.mxu0 %v6843_v0  ;;  %v4526_v0 = vor.u32 %v4525_v2, %v4524_v11  ;;  %v9653_v58 = vsel %vm4231_vm13, %v4651_v9, %v4653_v52  ;;  %v4560_v11 = vrot.slane %v9413_v47, 3  ;;  %v4561_v2 = vrot.slane %v9410_v45, 4 }
 0x55d   :  { %6286 = vmatprep.subr.bf16.mxu0 %v6847_v42  ;;  %6343 = vmatpush3.bf16.msra.mxu1 %v6851_v59  ;;  %v4655_v42 = vrot.slane %v9507_v33, 6  ;;  %v4537_v9 = vrot.slane %v9399_v20, 3 }
 0x55e   :  { %5299 = vmatmul.mubr.bf16.gmra.mxu0 %v9421_v56  ;;  %6344 = vmatprep.subr.bf16.mxu1 %v6853_v4  ;;  %v9647_v56 = vsel %vm4231_vm13, %v4647_v40, %v4649_v41  ;;  %v4462_v4 = vsel %vm1606_vm4, %v4457_v60, %v4461_v8  ;;  %v4527_v27 = vsel %vm4500_vm14, %v4522_v22, %v4526_v0  ;;  %v4611_v22 = vrot.slane %v9404_v51, 5 }
 0x55f   :  { %5386 = vmatmul.mubr.bf16.gmra.mxu1 %v4488_v23  ;;  %5306 = vmatprep.mubr.bf16.mxu0 %v4454_v46  ;;  %v9660_v59 = vsel %vm4231_vm13, %v4653_v52, %v4655_v42  ;;  %v4615_v23 = vrot.slane %v9410_v45, 6  ;;  %v4564_v41 = vrot.slane %v9427_v57, 3  ;;  %v4618_v45 = vrot.slane %v9427_v57, 5  ;;  %v6858_v52 = vld [vmem:[%s9944_s3 + $0x238] sm:$0xff]  }
 0x560   :  { %5393 = vmatprep.mubr.bf16.mxu1 %v4523_v55  ;;  %6287 = vmatpush3.bf16.msra.mxu0 %v6849_v28  ;;  %v4557_v28 = vrot.slane %v9404_v51, 3  ;;  %v4591_v8 = vrot.slane %v9397_v62, 5  ;;  %v4568_v57 = vrot.slane %v9447_v35, 3 }
 0x561   :  { %6288 = vmatprep.subr.bf16.mxu0 %v6852_v21  ;;  %6345 = vmatpush3.bf16.msra.mxu1 %v6855_v43  ;;  %v4612_v21 = vrot.slane %v9407_v1, 6  ;;  %v4614_v43 = vrot.slane %v9413_v47, 5  ;;  %v4565_v1 = vrot.slane %v9416_v44, 4  ;;  %v4619_v47 = vrot.slane %v9416_v44, 6 }
 0x562   :  { %6346 = vmatprep.subr.bf16.mxu1 %v6856_v39  ;;  %v4559_v46 = vor.u32 %v4558_v26, %v4557_v28  ;;  %v4562_v39 = vor.u32 %v4561_v2, %v4560_v11  ;;  %v4572_v11 = vrot.slane %v9486_v38, 3  ;;  %v4573_v2 = vrot.slane %v9483_v14, 4 }
 0x563   :  { %v4613_v55 = vor.u32 %v4612_v21, %v4611_v22  ;;  %v4616_v63 = vor.u32 %v4615_v23, %v4614_v43  ;;  %v4620_v60 = vor.u32 %v4619_v47, %v4618_v45  ;;  %v4627_v21 = vrot.slane %v9483_v14, 6 }
 0x564   :  { %6289 = vmatpush3.bf16.msra.mxu0 %v6854_v15  ;;  %v4563_v40 = vsel %vm4556_vm15, %v4559_v46, %v4562_v39  ;;  %v4536_v15 = vrot.slane %v9397_v62, 3  ;;  %v4576_v23 = vrot.slane %v9529_v7, 3  ;;  %v4577_v46 = vrot.slane %v9526_v25, 4 }
 0x565   :  { %6347 = vmatpush3.bf16.msra.mxu1 %v6857_v49  ;;  %6607 = vmatprep.subr.bf16.mxu0 %v9418_v12  ;;  %v4617_v51 = vsel %vm2047_vm7, %v4613_v55, %v4616_v63  ;;  %v4592_v49 = vrot.slane %v9399_v20, 5  ;;  %v4621_v20 = vsel %vm2047_vm7, %v4616_v63, %v4620_v60  ;;  %v4630_v55 = vrot.slane %v9529_v7, 5  ;;  %v6864_v7 = vld [vmem:[%s9944_s3 + $0x208] sm:$0xff]  }
 0x566   :  { %5307 = vmatmul.mubr.bf16.gmra.mxu0 %v9469_v31  ;;  %6651 = vmatprep.subr.bf16.mxu1 %v9418_v12  ;;  %v4492_v31 = vsel %vm1816_vm5, %v4489_v32, %v4491_v54  ;;  %v4566_v32 = vor.u32 %v4565_v1, %v4564_v41  ;;  %v4631_v63 = vrot.slane %v9526_v25, 6  ;;  %v4580_v41 = vrot.slane %v9566_v30, 3 }
 0x567   :  { %5394 = vmatmul.mubr.bf16.gmra.mxu1 %v4490_v53  ;;  %5314 = vmatprep.mubr.bf16.mxu0 %v4462_v4  ;;  %v4593_v44 = vsel %vm1984_vm9, %v4591_v8, %v4592_v49  ;;  %v4569_v53 = vrot.slane %v9444_v17, 4  ;;  %v6859_v4 = vld [vmem:[%s9944_s3 + $0x230] sm:$0xff]   ;;  %v4634_v45 = vrot.slane %v9566_v30, 5  ;;  %v4635_v47 = vrot.slane %v9563_v3, 6 }
 0x568   :  { %5401 = vmatprep.mubr.bf16.mxu1 %v4527_v27  ;;  %v4567_v62 = vsel %vm4556_vm15, %v4562_v39, %v4566_v32  ;;  %v4622_v27 = vrot.slane %v9447_v35, 5  ;;  %v4595_v35 = vsel %vm1984_vm9, %v4592_v49, %v4594_v48  ;;  %v4574_v48 = vor.u32 %v4573_v2, %v4572_v11 }
 0x569   :  { %v4602_v8 = vrot.slane %v9537_v18, 5 }
 0x56e   :  { %5315 = vmatmul.mubr.bf16.gmra.mxu0 %v9507_v33 }
 0x56f   :  { %5402 = vmatmul.mubr.bf16.gmra.mxu1 %v4492_v31  ;;  %5322 = vmatprep.mubr.bf16.mxu0 %v4465_v29  ;;  %v4570_v29 = vor.u32 %v4569_v53, %v4568_v57  ;;  %v6860_v31 = vld [vmem:[%s9944_s3 + $0x228] sm:$0xff]  }
 0x570   :  { %5409 = vmatprep.mubr.bf16.mxu1 %v4526_v0  ;;  %v4538_v0 = vsel %vm530_vm1, %v4536_v15, %v4537_v9 }
 0x571   :  { %v4571_v26 = vsel %vm4556_vm15, %v4566_v32, %v4570_v29  ;;  %v4575_v14 = vsel %vm4556_vm15, %v4570_v29, %v4574_v48 }
 0x576   :  { %5323 = vmatmul.mubr.bf16.gmra.mxu0 %v9537_v18 }
 0x577   :  { %5410 = vmatmul.mubr.bf16.gmra.mxu1 %v4491_v54  ;;  %5448 = vmatprep.mubr.bf16.mxu0 %v4563_v40  ;;  %v4623_v54 = vrot.slane %v9444_v17, 6  ;;  %v4540_v17 = vsel %vm530_vm1, %v4537_v9, %v4539_v61  ;;  %v4626_v61 = vrot.slane %v9486_v38, 5  ;;  %v6862_v38 = vld [vmem:[%s9944_s3 + $0x218] sm:$0xff]   ;;  %v4578_v40 = vor.u32 %v4577_v46, %v4576_v23 }
 0x578   :  { %5535 = vmatprep.mubr.bf16.mxu1 %v4617_v51  ;;  %v4581_v51 = vrot.slane %v9563_v3, 4  ;;  %v4547_v9 = vrot.slane %v9537_v18, 3 }
 0x579   :  { %v4624_v28 = vor.u32 %v4623_v54, %v4622_v27  ;;  %v4628_v43 = vor.u32 %v4627_v21, %v4626_v61  ;;  %v4579_v25 = vsel %vm4556_vm15, %v4574_v48, %v4578_v40 }
 0x57a   :  { %v4582_v15 = vor.u32 %v4581_v51, %v4580_v41  ;;  %v4548_v49 = vsel %vm530_vm1, %v4545_v5, %v4547_v9 }
 0x57b   :  { %v4625_v22 = vsel %vm2047_vm7, %v4620_v60, %v4624_v28  ;;  %v4629_v39 = vsel %vm2047_vm7, %v4624_v28, %v4628_v43 }
 0x57c   :  { %v4583_v30 = vsel %vm4556_vm15, %v4578_v40, %v4582_v15 }
 0x57e   :  { %5449 = vmatmul.mubr.bf16.vlgmr.msra.gmra.mxu0 %v4538_v0 }
 0x57f   :  { %5536 = vmatmul.mubr.bf16.vlgmr.msra.gmra.mxu1 %v4593_v44  ;;  %6608 = vmatpush3.bf16.msra.mxu0 %v6858_v52 }
 0x580   :  { %5456 = vmatprep.mubr.bf16.mxu0 %v4567_v62  ;;  %5543 = vmatprep.mubr.bf16.mxu1 %v4621_v20 }
 0x581   :  { %6609 = vmatprep.subr.bf16.mxu0 %v9418_v12  ;;  %6659 = vmatpush3.bf16.msra.mxu1 %v6858_v52 }
 0x582   :  { %6652 = vmatprep.subr.bf16.mxu1 %v9418_v12 }
 0x583   :  { %6610 = vmatpush3.bf16.msra.mxu0 %v6859_v4 }
 0x584   :  { %6611 = vmatprep.subr.bf16.mxu0 %v9418_v12 }
 0x585   :  { %6660 = vmatpush3.bf16.msra.mxu1 %v6859_v4 }
 0x586   :  { %5457 = vmatmul.mubr.bf16.gmra.mxu0 %v4540_v17  ;;  %6653 = vmatprep.subr.bf16.mxu1 %v9418_v12 }
 0x587   :  { %5544 = vmatmul.mubr.bf16.gmra.mxu1 %v4595_v35  ;;  %5464 = vmatprep.mubr.bf16.mxu0 %v4571_v26 }
 0x588   :  { %5551 = vmatprep.mubr.bf16.mxu1 %v4625_v22  ;;  %6612 = vmatpush3.bf16.msra.mxu0 %v6860_v31 }
 0x589   :  { %6613 = vmatprep.subr.bf16.mxu0 %v9418_v12  ;;  %6661 = vmatpush3.bf16.msra.mxu1 %v6860_v31 }
 0x58a   :  { %6654 = vmatprep.subr.bf16.mxu1 %v9418_v12 }
 0x58c   :  { %6614 = vmatpush3.bf16.msra.mxu0 %v6861_v19 }
 0x58d   :  { %6615 = vmatprep.subr.bf16.mxu0 %v9418_v12  ;;  %6662 = vmatpush3.bf16.msra.mxu1 %v6861_v19 }
 0x58e   :  { %5465 = vmatmul.mubr.bf16.gmra.mxu0 %v9582_v34  ;;  %6655 = vmatprep.subr.bf16.mxu1 %v9418_v12  ;;  %v6863_v34 = vld [vmem:[%s9944_s3 + $0x210] sm:$0xff]  }
 0x58f   :  { %5552 = vmatmul.mubr.bf16.gmra.mxu1 %v9587_v6  ;;  %5472 = vmatprep.mubr.bf16.mxu0 %v4575_v14  ;;  %v4632_v6 = vor.u32 %v4631_v63, %v4630_v55 }
 0x590   :  { %5559 = vmatprep.mubr.bf16.mxu1 %v4629_v39  ;;  %6616 = vmatpush3.bf16.msra.mxu0 %v6862_v38 }
 0x591   :  { %6617 = vmatprep.subr.bf16.mxu0 %v9418_v12  ;;  %6663 = vmatpush3.bf16.msra.mxu1 %v6862_v38  ;;  %v4633_v1 = vsel %vm2047_vm7, %v4628_v43, %v4632_v6 }
 0x592   :  { %6656 = vmatprep.subr.bf16.mxu1 %v9418_v12 }
 0x594   :  { %6618 = vmatpush3.bf16.msra.mxu0 %v6863_v34 }
 0x595   :  { %6619 = vmatprep.subr.bf16.mxu0 %v9418_v12  ;;  %6664 = vmatpush3.bf16.msra.mxu1 %v6863_v34 }
 0x596   :  { %5473 = vmatmul.mubr.bf16.gmra.mxu0 %v9604_v37  ;;  %6657 = vmatprep.subr.bf16.mxu1 %v9418_v12  ;;  %v6865_v37 = vld [vmem:[%s9944_s3 + $0x200] sm:$0xff]  }
 0x597   :  { %5560 = vmatmul.mubr.bf16.gmra.mxu1 %v9607_v36  ;;  %5480 = vmatprep.mubr.bf16.mxu0 %v4579_v25  ;;  %v4636_v36 = vor.u32 %v4635_v47, %v4634_v45 }
 0x598   :  { %5567 = vmatprep.mubr.bf16.mxu1 %v4633_v1  ;;  %6620 = vmatpush3.bf16.msra.mxu0 %v6864_v7 }
 0x599   :  { %6621 = vmatprep.subr.bf16.mxu0 %v9418_v12  ;;  %6665 = vmatpush3.bf16.msra.mxu1 %v6864_v7  ;;  %v4637_v3 = vsel %vm2047_vm7, %v4632_v6, %v4636_v36 }
 0x59a   :  { %6658 = vmatprep.subr.bf16.mxu1 %v9418_v12 }
 0x59c   :  { %6622 = vmatpush3.bf16.msra.mxu0 %v6865_v37 }
 0x59d   :  { %6666 = vmatpush3.bf16.msra.mxu1 %v6865_v37 }
 0x59e   :  { %5481 = vmatmul.mubr.bf16.gmra.mxu0 %v9628_v10  ;;  %v4603_v10 = vsel %vm1984_vm9, %v4600_v13, %v4602_v8 }
 0x59f   :  { %5568 = vmatmul.mubr.bf16.gmra.mxu1 %v9633_v16  ;;  %5488 = vmatprep.mubr.bf16.mxu0 %v4583_v30  ;;  %v4657_v16 = vrot.slane %v9537_v18, 6 }
 0x5a0   :  { %5575 = vmatprep.mubr.bf16.mxu1 %v4637_v3 }
 0x5a1   :  { %v4658_v18 = vsel %vm4231_vm13, %v4655_v42, %v4657_v16 }
 0x5a6   :  { %5489 = vmatmul.mubr.bf16.gmra.mxu0 %v4548_v49 }
 0x5a7   :  { %5576 = vmatmul.mubr.bf16.gmra.mxu1 %v4603_v10  ;;  %5496 = vmatprep.mubr.bf16.mxu0 %v4582_v15 }
 0x5a8   :  { %5583 = vmatprep.mubr.bf16.mxu1 %v4636_v36 }
 0x5ae   :  { %5497 = vmatmul.mubr.bf16.gmra.mxu0 %v4547_v9 }
 0x5af   :  { %6623 = vmatprep.mubr.msk.bf16.mxu0 %vm6883_vm10, %v9418_v12  ;;  %5584 = vmatmul.mubr.bf16.gmra.mxu1 %v4602_v8 }
 0x5b0   :  { %6647 = vmatprep.mubr.msk.bf16.mxu1 %vm6883_vm10, %v9418_v12 }
 0x5b6   :  { %6624 = vmatmul.mubr.bf16.vlgmr.msra.gmra.mxu0 %v9644_v50 }
 0x5b7   :  { %6627 = vmatprep.mubr.msk.bf16.mxu0 %vm6883_vm10, %v9418_v12  ;;  %6648 = vmatmul.mubr.bf16.vlgmr.msra.gmra.mxu1 %v4657_v16 }
 0x5be   :  { %6628 = vmatmul.mubr.bf16.gmra.mxu0 %v9647_v56 }
 0x5bf   :  { %6631 = vmatprep.mubr.msk.bf16.mxu0 %vm6883_vm10, %v9418_v12 }
 0x5c6   :  { %6632 = vmatmul.mubr.bf16.gmra.mxu0 %v9650_v24 }
 0x5c7   :  { %6635 = vmatprep.mubr.msk.bf16.mxu0 %vm6883_vm10, %v9418_v12 }
 0x5ce   :  { %6636 = vmatmul.mubr.bf16.gmra.mxu0 %v9653_v58 }
 0x5cf   :  { %6639 = vmatprep.mubr.msk.bf16.mxu0 %vm6883_vm10, %v9418_v12 }
 0x5d6   :  { %6640 = vmatmul.mubr.bf16.gmra.mxu0 %v9660_v59 }
 0x5d7   :  { %6643 = vmatprep.mubr.msk.bf16.mxu0 %vm6883_vm10, %v9418_v12 }
 0x5de   :  { %6644 = vmatmul.mubr.bf16.gmra.mxu0 %v4658_v18 }
 0x606   :  { %v6174_v5 = vpop.f32.mrf.mxu0 }
 0x607   :  { %v6232_v13 = vpop.f32.mrf.mxu1 }
 0x608   :  { %v6175_v50 = vpop.f32.mrf.mxu0 }
 0x609   :  { %v6176_v56 = vadd.f32 %v6175_v50, %v6174_v5  ;;  %v6233_v24 = vpop.f32.mrf.mxu1 }
 0x60a   :  { %v6234_v52 = vadd.f32 %v6233_v24, %v6232_v13  ;;  %v6177_v58 = vpop.f32.mrf.mxu0 }
 0x60b   :  { %v6235_v32 = vpop.f32.mrf.mxu1 }
 0x60c   :  { %v9799_v60 = vadd.f32 %v6234_v52, %v6176_v56  ;;  %v6178_v0 = vpop.f32.mrf.mxu0 }
 0x60d   :  { %v6179_v59 = vadd.f32 %v6178_v0, %v6177_v58  ;;  %v6236_v44 = vpop.f32.mrf.mxu1 }
 0x60e   :  { %v6237_v57 = vadd.f32 %v6236_v44, %v6235_v32  ;;  %v6180_v12 = vpop.f32.mrf.mxu0 }
 0x60f   :  { %v6238_v53 = vpop.f32.mrf.mxu1 }
 0x610   :  { %v9801_v33 = vadd.f32 %v6237_v57, %v6179_v59  ;;  %v6181_v42 = vpop.f32.mrf.mxu0 }
 0x611   :  { %v6182_v62 = vadd.f32 %v6181_v42, %v6180_v12  ;;  %v6239_v20 = vpop.f32.mrf.mxu1 }
 0x612   :  { %v6240_v4 = vadd.f32 %v6239_v20, %v6238_v53  ;;  %v6183_v27 = vpop.f32.mrf.mxu0 }
 0x613   :  { %v6241_v54 = vpop.f32.mrf.mxu1 }
 0x614   :  { %v9803_v29 = vadd.f32 %v6240_v4, %v6182_v62  ;;  %v6184_v28 = vpop.f32.mrf.mxu0 }
 0x615   :  { %v6185_v31 = vadd.f32 %v6184_v28, %v6183_v27  ;;  %v6242_v17 = vpop.f32.mrf.mxu1 }
 0x616   :  { %v6243_v35 = vadd.f32 %v6242_v17, %v6241_v54  ;;  %v6186_v26 = vpop.f32.mrf.mxu0 }
 0x617   :  { %v6244_v11 = vpop.f32.mrf.mxu1 }
 0x618   :  { %v9805_v2 = vadd.f32 %v6243_v35, %v6185_v31  ;;  %v6187_v22 = vpop.f32.mrf.mxu0 }
 0x619   :  { %v6188_v61 = vadd.f32 %v6187_v22, %v6186_v26  ;;  %v6245_v21 = vpop.f32.mrf.mxu1 }
 0x61a   :  { %v6246_v19 = vadd.f32 %v6245_v21, %v6244_v11  ;;  %v6189_v48 = vpop.f32.mrf.mxu0 }
 0x61b   :  { %v6247_v43 = vpop.f32.mrf.mxu1 }
 0x61c   :  { %v9807_v38 = vadd.f32 %v6246_v19, %v6188_v61  ;;  %v6190_v14 = vpop.f32.mrf.mxu0 }
 0x61d   :  { %v6191_v23 = vadd.f32 %v6190_v14, %v6189_v48  ;;  %v6248_v46 = vpop.f32.mrf.mxu1 }
 0x61e   :  { %v6249_v39 = vadd.f32 %v6248_v46, %v6247_v43  ;;  %v6192_v55 = vpop.f32.mrf.mxu0 }
 0x61f   :  { %v6250_v63 = vpop.f32.mrf.mxu1 }
 0x620   :  { %v9809_v34 = vadd.f32 %v6249_v39, %v6191_v23  ;;  %v6193_v40 = vpop.f32.mrf.mxu0 }
 0x621   :  { %v6194_v6 = vadd.f32 %v6193_v40, %v6192_v55  ;;  %v6251_v7 = vpop.f32.mrf.mxu1 }
 0x622   :  { %v6252_v25 = vadd.f32 %v6251_v7, %v6250_v63  ;;  %v6195_v41 = vpop.f32.mrf.mxu0 }
 0x623   :  { %v6253_v51 = vpop.f32.mrf.mxu1 }
 0x624   :  { %v9811_v1 = vadd.f32 %v6252_v25, %v6194_v6  ;;  %v6196_v45 = vpop.f32.mrf.mxu0 }
 0x625   :  { %v6197_v47 = vadd.f32 %v6196_v45, %v6195_v41  ;;  %v6254_v37 = vpop.f32.mrf.mxu1 }
 0x626   :  { %v6255_v15 = vadd.f32 %v6254_v37, %v6253_v51  ;;  %v6198_v36 = vpop.f32.mrf.mxu0 }
 0x627   :  { %v6256_v30 = vpop.f32.mrf.mxu1 }
 0x628   :  { %v9813_v3 = vadd.f32 %v6255_v15, %v6197_v47  ;;  %v6199_v9 = vpop.f32.mrf.mxu0 }
 0x629   :  { %v6200_v8 = vadd.f32 %v6199_v9, %v6198_v36  ;;  %v6257_v49 = vpop.f32.mrf.mxu1 }
 0x62a   :  { %v6258_v10 = vadd.f32 %v6257_v49, %v6256_v30  ;;  %v6201_v16 = vpop.f32.mrf.mxu0 }
 0x62b   :  { %v6259_v18 = vpop.f32.mrf.mxu1 }
 0x62c   :  { %v9815_v5 = vadd.f32 %v6258_v10, %v6200_v8  ;;  %v6202_v13 = vpop.f32.mrf.mxu0 }
 0x62d   :  { %v6203_v50 = vadd.f32 %v6202_v13, %v6201_v16  ;;  %v6260_v56 = vpop.f32.mrf.mxu1 }
 0x62e   :  { %v6261_v24 = vadd.f32 %v6260_v56, %v6259_v18  ;;  %v6204_v52 = vpop.f32.mrf.mxu0 }
 0x62f   :  { %v6262_v58 = vpop.f32.mrf.mxu1 }
 0x630   :  { %v9817_v32 = vadd.f32 %v6261_v24, %v6203_v50  ;;  %v6205_v0 = vpop.f32.mrf.mxu0 }
 0x631   :  { %v6206_v59 = vadd.f32 %v6205_v0, %v6204_v52  ;;  %v6263_v44 = vpop.f32.mrf.mxu1 }
 0x632   :  { %v6264_v57 = vadd.f32 %v6263_v44, %v6262_v58  ;;  %v6207_v12 = vpop.f32.mrf.mxu0 }
 0x633   :  { %v6265_v53 = vpop.f32.mrf.mxu1 }
 0x634   :  { %v9819_v42 = vadd.f32 %v6264_v57, %v6206_v59  ;;  %v6208_v62 = vpop.f32.mrf.mxu0 }
 0x635   :  { %v6209_v20 = vadd.f32 %v6208_v62, %v6207_v12  ;;  %v6266_v4 = vpop.f32.mrf.mxu1 }
 0x636   :  { %v6267_v27 = vadd.f32 %v6266_v4, %v6265_v53  ;;  %v6210_v54 = vpop.f32.mrf.mxu0 }
 0x637   :  { %v6268_v28 = vpop.f32.mrf.mxu1 }
 0x638   :  { %v9821_v31 = vadd.f32 %v6267_v27, %v6209_v20  ;;  %v6211_v17 = vpop.f32.mrf.mxu0 }
 0x639   :  { %v6269_v35 = vpop.f32.mrf.mxu1 }
 0x63a   :  { %v6213_v26 = vpop.f32.mrf.mxu0 }
 0x63b   :  { %v6271_v11 = vpop.f32.mrf.mxu1 }
 0x63c   :  { %v6214_v22 = vpop.f32.mrf.mxu0 }
 0x63d   :  { %v6272_v61 = vpop.f32.mrf.mxu1 }
 0x63e   :  { %v6290_v21 = vpop.f32.mrf.mxu0 }
 0x63f   :  { %v6348_v19 = vpop.f32.mrf.mxu1 }
 0x640   :  { %v6291_v48 = vpop.f32.mrf.mxu0 }
 0x641   :  { %v6292_v43 = vadd.f32 %v6291_v48, %v6290_v21  ;;  %v6349_v14 = vpop.f32.mrf.mxu1 }
 0x642   :  { %v6350_v23 = vadd.f32 %v6349_v14, %v6348_v19  ;;  %v6293_v46 = vpop.f32.mrf.mxu0 }
 0x643   :  { %v5451_v39 = vadd.f32 %v6292_v43, %v9799_v60  ;;  %v6351_v55 = vpop.f32.mrf.mxu1 }
 0x644   :  { %v6294_v63 = vpop.f32.mrf.mxu0 }
 0x645   :  { %v6295_v40 = vadd.f32 %v6294_v63, %v6293_v46  ;;  %v6352_v6 = vpop.f32.mrf.mxu1  ;;  %v9824_v7 = vadd.f32 %v6350_v23, %v5451_v39 }
 0x646   :  { %v6353_v25 = vadd.f32 %v6352_v6, %v6351_v55  ;;  %v6296_v41 = vpop.f32.mrf.mxu0 }
 0x647   :  { %v5454_v51 = vadd.f32 %v6295_v40, %v9801_v33  ;;  %v6354_v45 = vpop.f32.mrf.mxu1 }
 0x648   :  { %v6297_v47 = vpop.f32.mrf.mxu0 }
 0x649   :  { %v6298_v37 = vadd.f32 %v6297_v47, %v6296_v41  ;;  %v6355_v15 = vpop.f32.mrf.mxu1  ;;  %v9827_v36 = vadd.f32 %v6353_v25, %v5454_v51 }
 0x64a   :  { %v6356_v30 = vadd.f32 %v6355_v15, %v6354_v45  ;;  %v6299_v9 = vpop.f32.mrf.mxu0 }
 0x64b   :  { %v5459_v60 = vadd.f32 %v6298_v37, %v9803_v29  ;;  %v6357_v8 = vpop.f32.mrf.mxu1 }
 0x64c   :  { %v6300_v49 = vpop.f32.mrf.mxu0 }
 0x64d   :  { %v6301_v10 = vadd.f32 %v6300_v49, %v6299_v9  ;;  %v6358_v16 = vpop.f32.mrf.mxu1  ;;  %v9830_v18 = vadd.f32 %v6356_v30, %v5459_v60 }
 0x64e   :  { %v6359_v13 = vadd.f32 %v6358_v16, %v6357_v8  ;;  %v6302_v50 = vpop.f32.mrf.mxu0 }
 0x64f   :  { %v5462_v33 = vadd.f32 %v6301_v10, %v9805_v2  ;;  %v6360_v56 = vpop.f32.mrf.mxu1 }
 0x650   :  { %v6303_v24 = vpop.f32.mrf.mxu0 }
 0x651   :  { %v6304_v52 = vadd.f32 %v6303_v24, %v6302_v50  ;;  %v6361_v58 = vpop.f32.mrf.mxu1  ;;  %v9833_v0 = vadd.f32 %v6359_v13, %v5462_v33 }
 0x652   :  { %v6362_v59 = vadd.f32 %v6361_v58, %v6360_v56  ;;  %v6305_v44 = vpop.f32.mrf.mxu0 }
 0x653   :  { %v5467_v29 = vadd.f32 %v6304_v52, %v9807_v38  ;;  %v6363_v57 = vpop.f32.mrf.mxu1 }
 0x654   :  { %v6306_v12 = vpop.f32.mrf.mxu0 }
 0x655   :  { %v6307_v53 = vadd.f32 %v6306_v12, %v6305_v44  ;;  %v6364_v62 = vpop.f32.mrf.mxu1  ;;  %v9836_v20 = vadd.f32 %v6362_v59, %v5467_v29 }
 0x656   :  { %v6365_v4 = vadd.f32 %v6364_v62, %v6363_v57  ;;  %v6308_v27 = vpop.f32.mrf.mxu0 }
 0x657   :  { %v5470_v2 = vadd.f32 %v6307_v53, %v9809_v34  ;;  %v6366_v54 = vpop.f32.mrf.mxu1 }
 0x658   :  { %v6309_v28 = vpop.f32.mrf.mxu0 }
 0x659   :  { %v6310_v17 = vadd.f32 %v6309_v28, %v6308_v27  ;;  %v6367_v35 = vpop.f32.mrf.mxu1  ;;  %v9839_v26 = vadd.f32 %v6365_v4, %v5470_v2 }
 0x65a   :  { %v6368_v11 = vadd.f32 %v6367_v35, %v6366_v54  ;;  %v6311_v22 = vpop.f32.mrf.mxu0 }
 0x65b   :  { %v5475_v38 = vadd.f32 %v6310_v17, %v9811_v1  ;;  %v6369_v61 = vpop.f32.mrf.mxu1 }
 0x65c   :  { %v6312_v21 = vpop.f32.mrf.mxu0 }
 0x65d   :  { %v6313_v19 = vadd.f32 %v6312_v21, %v6311_v22  ;;  %v6370_v48 = vpop.f32.mrf.mxu1  ;;  %v9842_v43 = vadd.f32 %v6368_v11, %v5475_v38 }
 0x65e   :  { %v6371_v14 = vadd.f32 %v6370_v48, %v6369_v61  ;;  %v6314_v23 = vpop.f32.mrf.mxu0 }
 0x65f   :  { %v5478_v34 = vadd.f32 %v6313_v19, %v9813_v3  ;;  %v9845_v46 = vpop.f32.mrf.mxu1 }
 0x660   :  { %v6315_v39 = vpop.f32.mrf.mxu0 }
 0x661   :  { %v9847_v55 = vpop.f32.mrf.mxu1  ;;  %v9849_v63 = vadd.f32 %v6371_v14, %v5478_v34 }
 0x662   :  { %v9851_v40 = vpop.f32.mrf.mxu0 }
 0x663   :  { %v9853_v1 = vpop.f32.mrf.mxu1 }
 0x664   :  { %v9855_v6 = vpop.f32.mrf.mxu0 }
 0x665   :  { %v9857_v25 = vpop.f32.mrf.mxu1 }
 0x666   :  { %v9859_v41 = vpop.f32.mrf.mxu0 }
 0x667   :  { %v9861_v51 = vpop.f32.mrf.mxu1 }
 0x668   :  { %v9863_v3 = vpop.f32.mrf.mxu0 }
 0x669   :  { %v9865_v45 = vpop.f32.mrf.mxu1 }
 0x66a   :  { %v9867_v47 = vpop.f32.mrf.mxu0 }
 0x66b   :  { %v9869_v37 = vpop.f32.mrf.mxu1 }
 0x66c   :  { %v9871_v15 = vpop.f32.mrf.mxu0 }
 0x66d   :  { %v9873_v30 = vpop.f32.mrf.mxu1 }
 0x66e   :  { %v6326_v9 = vpop.f32.mrf.mxu0 }
 0x66f   :  { %v6384_v60 = vpop.f32.mrf.mxu1 }
 0x670   :  { %v6327_v8 = vpop.f32.mrf.mxu0 }
 0x671   :  { %v6385_v49 = vpop.f32.mrf.mxu1 }
 0x672   :  { %v6329_v10 = vpop.f32.mrf.mxu0 }
 0x673   :  { %v6387_v16 = vpop.f32.mrf.mxu1  ;;  %v6316_v10 = vadd.f32 %v6315_v39, %v6314_v23 }
 0x674   :  { %v6330_v13 = vpop.f32.mrf.mxu0 }
 0x675   :  { %v6388_v50 = vpop.f32.mrf.mxu1 }
 0x676   :  { %v5624_v33 = vpop.f32.mrf.mxu0 }
 0x677   :  { %v5672_v56 = vpop.f32.mrf.mxu1  ;;  %v5625_v52 = vadd.f32 %v5624_v33, %v9824_v7 }
 0x678   :  { %v6625_v24 = vpop.f32.mrf.mxu0 }
 0x679   :  { %v6649_v58 = vpop.f32.mrf.mxu1  ;;  %v5685_v12 = vrot.slane %v5625_v52, 1 }
 0x67a   :  { %v5627_v59 = vpop.f32.mrf.mxu0  ;;  %v6374_v58 = vadd.f32 %v9847_v55, %v9845_v46 }
 0x67b   :  { %v5628_v44 = vadd.f32 %v5627_v59, %v9827_v36  ;;  %v5674_v29 = vpop.f32.mrf.mxu1 }
 0x67c   :  { %v6626_v57 = vpop.f32.mrf.mxu0  ;;  %v6322_v29 = vadd.f32 %v9863_v3, %v9859_v41 }
 0x67d   :  { %v5686_v53 = vrot.slane %v5628_v44, 1  ;;  %v6650_v62 = vpop.f32.mrf.mxu1 }
 0x67e   :  { %v5632_v4 = vpop.f32.mrf.mxu0  ;;  %v5491_v41 = vadd.f32 %v6322_v29, %v9819_v42 }
 0x67f   :  { %v5687_v27 = vsel %vm1816_vm5, %v5685_v12, %v5686_v53  ;;  %v5633_v2 = vadd.f32 %v5632_v4, %v9830_v18 }
 0x680   :  { %v5701_v54 = vmax.f32 %v5625_v52, %v5687_v27  ;;  %v6629_v28 = vpop.f32.mrf.mxu0 }
 0x681   :  { %v5709_v17 = vrot.slane %v5633_v2, 1  ;;  %v6325_v28 = vadd.f32 %v9871_v15, %v9867_v47 }
 0x682   :  { %v5635_v35 = vpop.f32.mrf.mxu0  ;;  %v5733_v38 = vrot.slane %v5701_v54, 5 }
 0x683   :  { %v5710_v7 = vsel %vm1816_vm5, %v5686_v53, %v5709_v17  ;;  %v5636_v36 = vadd.f32 %v5635_v35, %v9833_v0  ;;  %v5494_v42 = vadd.f32 %v6325_v28, %v9821_v31  ;;  %v10136_v28 = vlaneseq }
 0x684   :  { %v5721_v11 = vmax.f32 %v5628_v44, %v5710_v7  ;;  %v6630_v22 = vpop.f32.mrf.mxu0  ;;  %v6319_v44 = vadd.f32 %v9855_v6, %v9851_v40  ;;  %v6377_v6 = vadd.f32 %v9857_v25, %v9853_v1 }
 0x685   :  { %v5688_v18 = vrot.slane %v5636_v36, 1 }
 0x686   :  { %v5734_v61 = vrot.slane %v5721_v11, 5  ;;  %v5640_v21 = vpop.f32.mrf.mxu0  ;;  %v5486_v27 = vadd.f32 %v6319_v44, %v9817_v32  ;;  %v6380_v32 = vadd.f32 %v9865_v45, %v9861_v51 }
 0x687   :  { %v5641_v19 = vadd.f32 %v5640_v21, %v9836_v20  ;;  %v5483_v20 = vadd.f32 %v6316_v10, %v9815_v5 }
 0x688   :  { %v5735_v48 = vsel %vm1984_vm9, %v5733_v38, %v5734_v61  ;;  %v6633_v14 = vpop.f32.mrf.mxu0  ;;  %v5578_v21 = vadd.f32 %v6380_v32, %v5491_v41 }
 0x689   :  { %v5749_v34 = vmax.f32 %v5701_v54, %v5735_v48  ;;  %v5689_v9 = vrot.slane %v5641_v19, 1  ;;  %v5570_v46 = vadd.f32 %v6374_v58, %v5483_v20  ;;  %v6383_v48 = vadd.f32 %v9873_v30, %v9869_v37 }
 0x68a   :  { %v5643_v60 = vpop.f32.mrf.mxu0 }
 0x68b   :  { %v5690_v8 = vsel %vm1816_vm5, %v5688_v18, %v5689_v9  ;;  %v5644_v49 = vadd.f32 %v5643_v60, %v9839_v26  ;;  %v9893_v26 = vld [vmem:[%s9942_s4 + $0x6] ss:$0 sm:$0xff]  ;;  %v5581_v60 = vadd.f32 %v6383_v48, %v5494_v42 }
 0x68c   :  { %v5702_v16 = vmax.f32 %v5636_v36, %v5690_v8  ;;  %v6634_v13 = vpop.f32.mrf.mxu0  ;;  %v5758_v55 = vadd.f32 %v9893_v26, %v5749_v34  ;;  %v5573_v36 = vadd.f32 %v6377_v6, %v5486_v27 }
 0x68d   :  { %v5711_v0 = vrot.slane %v5644_v49, 1 }
 0x68e   :  { %v5648_v50 = vpop.f32.mrf.mxu0  ;;  %v5736_v23 = vrot.slane %v5702_v16, 5  ;;  %v5762_v17 = vmax.f32 %v5758_v55, 0.0 }
 0x68f   :  { %v5712_v33 = vsel %vm1816_vm5, %v5689_v9, %v5711_v0  ;;  %v5649_v52 = vadd.f32 %v5648_v50, %v9842_v43 }
 0x690   :  { %v5722_v56 = vmax.f32 %v5641_v19, %v5712_v33  ;;  %v6637_v24 = vpop.f32.mrf.mxu0 }
 0x691   :  { %v5691_v53 = vrot.slane %v5649_v52, 1 }
 0x692   :  { %v5737_v39 = vrot.slane %v5722_v56, 5  ;;  %v5651_v59 = vpop.f32.mrf.mxu0 }
 0x693   :  { %v5652_v5 = vadd.f32 %v5651_v59, %v9849_v63 }
 0x694   :  { %v5738_v43 = vsel %vm1984_vm9, %v5736_v23, %v5737_v39  ;;  %v6638_v57 = vpop.f32.mrf.mxu0 }
 0x695   :  { %v5750_v12 = vmax.f32 %v5702_v16, %v5738_v43  ;;  %v5692_v62 = vrot.slane %v5652_v5, 1 }
 0x696   :  { %v5656_v4 = vpop.f32.mrf.mxu0 }
 0x697   :  { %v5759_v2 = vadd.f32 %v9893_v26, %v5750_v12  ;;  %v5693_v40 = vsel %vm1816_vm5, %v5691_v53, %v5692_v62  ;;  %v5657_v63 = vadd.f32 %v5656_v4, %v5570_v46 }
 0x698   :  { %v5703_v3 = vmax.f32 %v5649_v52, %v5693_v40  ;;  %v6641_v54 = vpop.f32.mrf.mxu0 }
 0x699   :  { %v5763_v35 = vmax.f32 %v5759_v2, 0.0  ;;  %v5713_v7 = vrot.slane %v5657_v63, 1  ;;  %v6076_v54 = vld [vmem:[%s9942_s4 + $0x7] ss:$0 sm:$0xff] }
 0x69a   :  { %v5659_v11 = vpop.f32.mrf.mxu0  ;;  %v5739_v19 = vrot.slane %v5703_v3, 5 }
 0x69b   :  { %v5714_v22 = vsel %vm1816_vm5, %v5692_v62, %v5713_v7  ;;  %v5766_v38 = vsel %vm4229_vm12, %v5762_v17, %v5763_v35  ;;  %v5660_v61 = vadd.f32 %v5659_v11, %v5573_v36  ;;  %v5803_v17 = vand.u32 127, %v10136_v28  ;;  %v6077_v7 = vld [vmem:[%s9942_s4 + $0x8] ss:$0 sm:$0xff] }
 0x69c   :  { %v5723_v1 = vmax.f32 %v5652_v5, %v5714_v22  ;;  %v6642_v25 = vpop.f32.mrf.mxu0 }
 0x69d   :  { %v5694_v18 = vrot.slane %v5660_v61, 1  ;;  %vm5804_vm1 = vcmp.lt.s32.totalorder %v5803_v17, 10 }
 0x69e   :  { %v5740_v47 = vrot.slane %v5723_v1, 5  ;;  %v5664_v15 = vpop.f32.mrf.mxu0 }
 0x69f   :  { %v5665_v14 = vadd.f32 %v5664_v15, %v5578_v21 }
 0x6a0   :  { %v5741_v51 = vsel %vm1984_vm9, %v5739_v19, %v5740_v47  ;;  %v6645_v45 = vpop.f32.mrf.mxu0 }
 0x6a1   :  { %v5751_v34 = vmax.f32 %v5703_v3, %v5741_v51  ;;  %v5695_v9 = vrot.slane %v5665_v14, 1 }
 0x6a2   :  { %v5667_v8 = vpop.f32.mrf.mxu0 }
 0x6a3   :  { %v5760_v49 = vadd.f32 %v9893_v26, %v5751_v34  ;;  %v5696_v31 = vsel %vm1816_vm5, %v5694_v18, %v5695_v9  ;;  %v5668_v10 = vadd.f32 %v5667_v8, %v5581_v60 }
 0x6a4   :  { %v5704_v16 = vmax.f32 %v5660_v61, %v5696_v31  ;;  %v6646_v13 = vpop.f32.mrf.mxu0 }
 0x6a5   :  { %v5764_v0 = vmax.f32 %v5760_v49, 0.0  ;;  %v5715_v50 = vrot.slane %v5668_v10, 1 }
 0x6a6   :  { %v5742_v20 = vrot.slane %v5704_v16, 5 }
 0x6a7   :  { %v5716_v37 = vsel %vm1816_vm5, %v5695_v9, %v5715_v50  ;;  %v5767_v30 = vsel %vm4231_vm13, %v5766_v38, %v5764_v0 }
 0x6a8   :  { %v5724_v33 = vmax.f32 %v5665_v14, %v5716_v37 }
 0x6aa   :  { %v5743_v56 = vrot.slane %v5724_v33, 5 }
 0x6ac   :  { %v5744_v24 = vsel %vm1984_vm9, %v5742_v20, %v5743_v56 }
 0x6ad   :  { %v5752_v52 = vmax.f32 %v5704_v16, %v5744_v24 }
 0x6af   :  { %v5761_v58 = vadd.f32 %v9893_v26, %v5752_v52 }
 0x6b1   :  { %v5765_v23 = vmax.f32 %v5761_v58, 0.0 }
 0x6b3   :  { %v5768_v39 = vsel %vm1984_vm9, %v5767_v30, %v5765_v23 }
 0x6b4   :  { %v5769_v59 = vsel %vm529_vm0, %v5768_v39, 0.0 }
 0x6b5   :  { %v5770_v44 = vrot.slane %v5769_v59, 4 }
 0x6b7   :  { %v5771_v5 = vadd.f32 %v5770_v44, %v5769_v59 }
 0x6b9   :  { %v5772_v29 = vrot.slane %v5771_v5, 2 }
 0x6bb   :  { %v5773_v43 = vadd.f32 %v5772_v29, %v5771_v5 }
 0x6bd   :  { %v5774_v57 = vrot.slane %v5773_v43, 1 }
 0x6bf   :  { %v5775_v46 = vadd.f32 %v5774_v57, %v5773_v43 }
 0x6c1   :  { %v5776_v55 = vmul.f32 0.25, %v5775_v46 }
 0x6c3   :  { %v5777_v12 = vsub.f32 %v5768_v39, %v5776_v55 }
 0x6c5   :  { %v5778_v53 = vmul.f32 %v5777_v12, %v5777_v12 }
 0x6c7   :  { %v5779_v62 = vsel %vm529_vm0, %v5778_v53, 0.0 }
 0x6c8   :  { %v5780_v4 = vrot.slane %v5779_v62, 4 }
 0x6ca   :  { %v5781_v27 = vadd.f32 %v5780_v4, %v5779_v62 }
 0x6cc   :  { %v5782_v2 = vrot.slane %v5781_v27, 2 }
 0x6ce   :  { %v5783_v26 = vadd.f32 %v5782_v2, %v5781_v27 }
 0x6d0   :  { %v5784_v40 = vrot.slane %v5783_v26, 1 }
 0x6d2   :  { %v5785_v63 = vadd.f32 %v5784_v40, %v5783_v26 }
 0x6d4   :  { %v5786_v6 = vmul.f32 0.25, %v5785_v63 }
 0x6d6   :  { %v5787_v41 = vadd.f32 1e-05, %v5786_v6 }
 0x6d8   :  { %6870 = vrsqrt.f32 %v5787_v41 }
 0x6e5   :  { %v6871_v3 = vpop.eup %6870 }
 0x6e6   :  { %v5789_v35 = vmul.f32 %v6871_v3, %v5777_v12 }
 0x6e8   :  { %v5795_v11 = vmul.f32 %v6076_v54, %v5789_v35 }
 0x6ea   :  { %v5801_v32 = vadd.f32 %v6077_v7, %v5795_v11 }
 0x6ec   :  { %v5805_v22 = vsel %vm5804_vm1, %v5801_v32, -1e+30 }
 0x6ed   :  { %v5806_v36 = vsel %vm529_vm0, %v5805_v22, -inf }
 0x6ee   :  { %5807 = vmax.xlane.f32.xlu0 %v5806_v36 }
 0x777   :  { %v5808_v38 = vpop.xlane.xlu0 %5807 }
 0x778   :  { %v5809_v1 = vsub.f32 %v5805_v22, %v5808_v38 }
 0x77a   :  { %v5810_v25 = vmul.f32 1.442695, %v5809_v1 }
 0x77c   :  { %6872 = vpow2.f32 %v5810_v25 }
 0x789   :  { %v6873_v42 = vpop.eup %6872 }
 0x78a   :  { %v5812_v61 = vsel %vm529_vm0, %v6873_v42, 0.0 }
 0x78b   :  { %5813 = vadd.xlane.f32.xlu0 %v5812_v61 }
 0x814   :  { %v5814_v21 = vpop.xlane.xlu0 %5813 }
 0x815   :  { %6874 = vrcp.f32 %v5814_v21 }
 0x822   :  { %v6875_v19 = vpop.eup %6874 }
 0x823   :  { %v5816_v47 = vmul.f32 %v6875_v19, %v6873_v42 }
 0x825   :  { %v5817_v15 = vsel %vm529_vm0, %v5816_v47, 0.0 }
 0x826   :  { %5818 = vst [vmem:[%s9945_s5] sm:$0xff] %v5817_v15 }

</bundles_post_ra>
